<compile_context>
chip_gen: v5e
topology: v5e:2x2
jax: 0.10.0
libtpu: 0.0.40
codegen_flags: <defaults>
</compile_context>

<pallas_src>
import numpy as np
import jax
import jax.numpy as jnp
from jax.experimental import pallas as pl
from jax.experimental.pallas import tpu as pltpu

_SENSORS = 32
_KH, _KW = 5, 7           # conv kernel (height, width)
_SH, _SW = 2, 4           # conv stride
_PH, _PW = 2, 3           # conv padding
_PK, _PS, _PP = 3, 3, 1   # maxpool along W: kernel / stride / pad (pool kernel is (1,3))


def _odim(size, k, s, p):
    return (size + 2 * p - k) // s + 1


def _geoms(n, c0, h0, w0):
    """Static geometry of the 3 ConvUnit+PoolUnit stages."""
    gs, c, h, w = [], c0, h0, w0
    for _ in range(3):
        cout = 2 * c
        oh, ow = _odim(h, _KH, _SH, _PH), _odim(w, _KW, _SW, _PW)
        owp = _odim(ow, _PK, _PS, _PP)                 # pool keeps H, shrinks W
        gs.append(dict(cin=c, h=h, w=w, cout=cout, oh=oh, ow=ow, owp=owp,
                       cinh=c * h, coh=cout * oh,
                       nw=n * w, now=n * ow, nowp=n * owp))
        c, h, w = cout, oh, owp
    return gs, c, h, w


def _gather_matrix(n, w, ow):
    """0/1 (n*w, KW*n*ow) 'im2col along W' matrix: column kw*(n*ow)+b*ow+j selects
    input column b*w + (SW*j + kw - PW); all-zero column when that index lands in
    the conv zero padding."""
    g = np.zeros((n * w, _KW * n * ow), np.float32)
    for kw in range(_KW):
        for b in range(n):
            for j in range(ow):
                src = _SW * j + kw - _PW
                if 0 <= src < w:
                    g[b * w + src, kw * n * ow + b * ow + j] = 1.0
    return g


def _pool_select_matrices(n, ow, owp):
    """0/1 (n*ow, n*owp) column selectors, one per in-range pool tap.
    MaxPool2d((1,PK),(1,PS),(0,PP)) on post-ReLU (>= 0) data equals the
    elementwise max of these selections: an out-of-range tap becomes a zero
    column, which never wins against non-negative values."""
    mats = []
    for d in range(-_PP, _PK - _PP):
        c = np.zeros((n * ow, n * owp), np.float32)
        hit = False
        for b in range(n):
            for j in range(owp):
                src = _PS * j + d
                if 0 <= src < ow:
                    c[b * ow + src, b * owp + j] = 1.0
                    hit = True
        if hit:
            mats.append(c)
    return mats


def _pack_conv_w(wconv, h, oh):
    """(cout,cin,KH,KW) -> (cout*oh, KW*cin*h): fold the H taps, H stride and H
    zero padding into a dense per-sample weight so the whole Conv2d is ONE GEMM
    against the KW-row-stacked gather buffer."""
    wconv = np.asarray(wconv, np.float32)
    cout, cin, khs, kws = wconv.shape
    out = np.zeros((cout, oh, kws, cin, h), np.float32)
    for oi in range(oh):
        for kh in range(khs):
            hh = _SH * oi + kh - _PH
            if 0 <= hh < h:
                out[:, oi, :, :, hh] = np.transpose(wconv[:, :, kh, :], (0, 2, 1))
    return out.reshape(cout * oh, kws * cin * h)


def pack_convnet(params, x_shape):
    """One-time packing (eager, OUTSIDE jit): constant 0/1 gather / pool matrices
    and H-folded, KW-stacked conv weights.  Nothing here scales with batch size."""
    n, c0, h0, w0 = x_shape
    geoms, c3, h3, w3 = _geoms(n, c0, h0, w0)
    g1, g2, g3 = geoms
    nc = int(params["fc_b"].shape[0])

    assert w3 == 1, "pool3 output width > 1 would need a per-w FC restack"
    # TODO(synk): general pool3 width > 1 and the fc_size > 0 (Linear->ReLU->Linear)
    # branch of the module are not implemented.

    packed = dict(
        gm1=jnp.asarray(_gather_matrix(n, g1["w"], g1["ow"])),
        # stage-2/3 gathers with the PREVIOUS stage's pool selection folded in
        # (column selection commutes with the pool's elementwise max).
        d2=jnp.asarray(np.stack([c @ _gather_matrix(n, g2["w"], g2["ow"])
                                 for c in _pool_select_matrices(n, g1["ow"], g1["owp"])])),
        d3=jnp.asarray(np.stack([c @ _gather_matrix(n, g3["w"], g3["ow"])
                                 for c in _pool_select_matrices(n, g2["ow"], g2["owp"])])),
        # stage-3 pool selection (feeds the FC, so it cannot be folded further)
        p3=jnp.asarray(np.stack(_pool_select_matrices(n, g3["ow"], g3["owp"]))),
        fcw=jnp.asarray(params["fc_w"], jnp.float32),     # (nc, c3*h3) since w3 == 1
        fcb=jnp.asarray(params["fc_b"], jnp.float32).reshape(nc, 1),
    )
    for i, g in enumerate(geoms):
        packed[f"wh{i + 1}"] = jnp.asarray(
            _pack_conv_w(params[f"conv{i + 1}_w"], g["h"], g["oh"]))
        packed[f"b{i + 1}"] = jnp.asarray(np.repeat(
            np.asarray(params[f"conv{i + 1}_b"], np.float32), g["oh"]).reshape(-1, 1))
    return packed


def convnet_forward(packed, x):
    """Jittable forward: a tiny NCHW -> (C*H, N*W) input transpose plus one fused
    Pallas kernel for conv1..3 (+bias+ReLU), the three max-pools, Linear and
    LogSoftmax."""
    n, c0, h0, w0 = x.shape
    geoms, c3, h3, w3 = _geoms(n, c0, h0, w0)
    g1, g2, g3 = geoms
    nc = packed["fcb"].shape[0]
    # static (trace-time only): is pool3 the identity? (true whenever its OW == 1)
    p3m = _pool_select_matrices(n, g3["ow"], g3["owp"])
    p3_identity = (len(p3m) == 1 and p3m[0].shape[0] == p3m[0].shape[1]
                   and bool(np.array_equal(
                       p3m[0], np.eye(p3m[0].shape[0], dtype=np.float32))))

    # Activations live as (Cin*H, N*W): rows = (channel, image row), batch on lanes.
    a0 = jnp.transpose(x.astype(jnp.float32), (1, 2, 0, 3)).reshape(c0 * h0, n * w0)

    bbuf_rows = _KW * max(g["cinh"] for g in geoms)
    bbuf_cols = max(g["now"] for g in geoms)
    _DOT = dict(preferred_element_type=jnp.float32)

    def kernel(a0_ref, gm1_ref, wh1_ref, b1_ref, d2_ref, wh2_hbm, b2_ref,
               d3_ref, wh3_hbm, b3_ref, p3_ref, fcw_ref, fcb_ref, o_ref,
               bbuf, wh2_buf, wh3_buf, sem):
        # Kick off the late-used packed-weight DMAs; they hide behind stage 1.
        cp2 = pltpu.make_async_copy(wh2_hbm, wh2_buf, sem.at[0])
        cp3 = pltpu.make_async_copy(wh3_hbm, wh3_buf, sem.at[1])
        cp2.start()
        cp3.start()

        def conv_stage(bwide, wh, b_ref, g):
            """bwide: (cin*h, KW*n*ow) gathered input.  Row-stack its KW blocks so
            the whole Conv2d + bias + ReLU is a single K = KW*cin*h GEMM."""
            cinh, now = g["cinh"], g["now"]
            for kw in range(_KW):
                bbuf[kw * cinh:(kw + 1) * cinh, 0:now] = (
                    bwide[:, kw * now:(kw + 1) * now])
            acc = jnp.dot(wh, bbuf[0:_KW * cinh, 0:now], **_DOT)
            return jnp.maximum(acc + b_ref[...], 0.0)          # (cout*oh, n*ow)

        def pool_gather(a, sel_ref):
            """MaxPool2d((1,3),(1,3),(0,1)) fused with the next stage's im2col
            gather: elementwise max of one 0/1 selection GEMM per in-range tap."""
            out = None
            for k in range(sel_ref.shape[0]):
                t = jnp.dot(a, sel_ref[k], **_DOT)
                out = t if out is None else jnp.maximum(out, t)
            return out

        # ---- stage 1: ConvUnit1 (+ReLU); pool1 is folded into d2 below ---------
        bw1 = jnp.dot(a0_ref[...], gm1_ref[...], **_DOT)
        a1 = conv_stage(bw1, wh1_ref[...], b1_ref, g1)
        # ---- stage 2 ------------------------------------------------------------
        cp2.wait()
        a2 = conv_stage(pool_gather(a1, d2_ref), wh2_buf[...], b2_ref, g2)
        # ---- stage 3 ------------------------------------------------------------
        cp3.wait()
        a3 = conv_stage(pool_gather(a2, d3_ref), wh3_buf[...], b3_ref, g3)
        # ---- pool3 (identity at these geometries) + Linear + LogSoftmax ---------
        pooled3 = a3 if p3_identity else pool_gather(a3, p3_ref)
        logits = jnp.dot(fcw_ref[...], pooled3, **_DOT) + fcb_ref[...]    # (nc, n)
        m = jnp.max(logits, axis=0, keepdims=True)
        z = jnp.sum(jnp.exp(logits - m), axis=0, keepdims=True)
        o_ref[...] = logits - m - jnp.log(z)

    vmem = pl.BlockSpec(memory_space=pltpu.MemorySpace.VMEM)
    anym = pl.BlockSpec(memory_space=pl.ANY)
    out = pl.pallas_call(
        kernel,
        out_shape=jax.ShapeDtypeStruct((nc, n), jnp.float32),
        in_specs=[vmem, vmem, vmem, vmem, vmem, anym, vmem,
                  vmem, anym, vmem, vmem, vmem, vmem],
        out_specs=vmem,
        scratch_shapes=[
            pltpu.VMEM((bbuf_rows, bbuf_cols), jnp.float32),   # row-stacked im2col
            pltpu.VMEM(packed["wh2"].shape, jnp.float32),      # manual-DMA targets
            pltpu.VMEM(packed["wh3"].shape, jnp.float32),
            pltpu.SemaphoreType.DMA((2,)),
        ],
    )(a0, packed["gm1"], packed["wh1"], packed["b1"], packed["d2"], packed["wh2"],
      packed["b2"], packed["d3"], packed["wh3"], packed["b3"], packed["p3"],
      packed["fcw"], packed["fcb"])
    return out.T      # (n, n_classes); trivial (5, 2) transpose outside the kernel


def init_convnet_params(key, input_shape, n_classes):
    assert input_shape[0] % _SENSORS == 0, "input_shape is not correct"
    spectrum = input_shape[0] // _SENSORS
    h, w = _SENSORS, input_shape[1]
    keys = jax.random.split(key, 8)
    params, cin, ki = {}, spectrum, 0
    for li in range(3):
        cout = cin * 2
        bound = float(1.0 / (cin * _KH * _KW) ** 0.5)
        params[f"conv{li + 1}_w"] = jax.random.uniform(
            keys[ki], (cout, cin, _KH, _KW), jnp.float32, -bound, bound); ki += 1
        params[f"conv{li + 1}_b"] = jax.random.uniform(
            keys[ki], (cout,), jnp.float32, -bound, bound); ki += 1
        h, w = _odim(h, _KH, _SH, _PH), _odim(w, _KW, _SW, _PW)
        w = _odim(w, _PK, _PS, _PP)          # maxpool keeps H, shrinks W
        cin = cout
    fc_in = cin * h * w
    bound = float(1.0 / fc_in ** 0.5)
    # fc_size < 1 branch of the module: single Linear(fc_in, n_classes), (out, in) layout.
    params["fc_w"] = jax.random.uniform(
        keys[ki], (n_classes, fc_in), jnp.float32, -bound, bound); ki += 1
    params["fc_b"] = jax.random.uniform(
        keys[ki], (n_classes,), jnp.float32, -bound, bound)
    return params


if __name__ == "__main__":
    key = jax.random.PRNGKey(0)
    k_params, k_x = jax.random.split(key)

    # ConvNet(input_shape=(64, 64), n_classes=5): spectrum_size = 64 // 32 = 2
    input_shape = (64, 64)
    n_classes = 5
    batch = 2

    params = init_convnet_params(k_params, input_shape, n_classes)
    # x is PyTorch NCHW: (batch, spectrum_size, sensors_num=32, width)
    x = jax.random.normal(
        k_x, (batch, input_shape[0] // _SENSORS, _SENSORS, input_shape[1]),
        dtype=jnp.float32)

    packed = pack_convnet(params, x.shape)           # pack once, outside jit
    fwd = jax.jit(convnet_forward)
    out = fwd(packed, x)
    jax.block_until_ready(out)

    assert out.shape == (batch, n_classes), out.shape
    assert bool(jnp.all(jnp.isfinite(out)))
    print("KERNEL_OK")
</pallas_src>

<mosaic_0001>
module attributes {stable_mosaic.version = 11 : i64} {
  func.func @kernel(%arg0: memref<64x128xf32, #tpu.memory_space<vmem>>, %arg1: memref<128x224xf32, #tpu.memory_space<vmem>>, %arg2: memref<64x448xf32, #tpu.memory_space<vmem>>, %arg3: memref<64x1xf32, #tpu.memory_space<vmem>>, %arg4: memref<3x32x28xf32, #tpu.memory_space<vmem>>, %arg5: memref<64x448xf32, #tpu.memory_space<any>>, %arg6: memref<64x1xf32, #tpu.memory_space<vmem>>, %arg7: memref<2x4x14xf32, #tpu.memory_space<vmem>>, %arg8: memref<64x448xf32, #tpu.memory_space<any>>, %arg9: memref<64x1xf32, #tpu.memory_space<vmem>>, %arg10: memref<1x2x2xf32, #tpu.memory_space<vmem>>, %arg11: memref<5x64xf32, #tpu.memory_space<vmem>>, %arg12: memref<5x1xf32, #tpu.memory_space<vmem>>, %arg13: memref<5x2xf32, #tpu.memory_space<vmem>>, %arg14: memref<448x32xf32, #tpu.memory_space<vmem>>, %arg15: memref<64x448xf32, #tpu.memory_space<vmem>>, %arg16: memref<64x448xf32, #tpu.memory_space<vmem>>, %arg17: memref<2x!tpu.dma_semaphore, #tpu.memory_space<semaphore_mem>>) attributes {dimension_semantics = [], scalar_prefetch = 0 : i64, scratch_operands = 4 : i64, tpu.core_type = #tpu.core_type<tc>} {
    %c0_i32 = arith.constant 0 : i32
    %0 = tpu.memref_slice %arg17[%c0_i32] : memref<2x!tpu.dma_semaphore, #tpu.memory_space<semaphore_mem>> -> memref<1x!tpu.dma_semaphore, #tpu.memory_space<semaphore_mem>>
    %1 = tpu.memref_squeeze %0 : memref<1x!tpu.dma_semaphore, #tpu.memory_space<semaphore_mem>> -> memref<!tpu.dma_semaphore, #tpu.memory_space<semaphore_mem>>
    tpu.enqueue_dma source(%arg5 : memref<64x448xf32, #tpu.memory_space<any>>) target(%arg15 : memref<64x448xf32, #tpu.memory_space<vmem>>) target_semaphore(%1 : memref<!tpu.dma_semaphore, #tpu.memory_space<semaphore_mem>>)
    %c1_i32 = arith.constant 1 : i32
    %2 = tpu.memref_slice %arg17[%c1_i32] : memref<2x!tpu.dma_semaphore, #tpu.memory_space<semaphore_mem>> -> memref<1x!tpu.dma_semaphore, #tpu.memory_space<semaphore_mem>>
    %3 = tpu.memref_squeeze %2 : memref<1x!tpu.dma_semaphore, #tpu.memory_space<semaphore_mem>> -> memref<!tpu.dma_semaphore, #tpu.memory_space<semaphore_mem>>
    tpu.enqueue_dma source(%arg8 : memref<64x448xf32, #tpu.memory_space<any>>) target(%arg16 : memref<64x448xf32, #tpu.memory_space<vmem>>) target_semaphore(%3 : memref<!tpu.dma_semaphore, #tpu.memory_space<semaphore_mem>>)
    %c0 = arith.constant 0 : index
    %c0_0 = arith.constant 0 : index
    %4 = vector.load %arg0[%c0, %c0_0] : memref<64x128xf32, #tpu.memory_space<vmem>>, vector<64x128xf32>
    %c0_1 = arith.constant 0 : index
    %c0_2 = arith.constant 0 : index
    %5 = vector.load %arg1[%c0_1, %c0_2] : memref<128x224xf32, #tpu.memory_space<vmem>>, vector<128x224xf32>
    %cst = arith.constant dense<0.000000e+00> : vector<64x224xf32>
    %6 = tpu.matmul %4, %5, %cst {dimension_numbers = #tpu.dot_dimension_numbers<[1], [0], [0], [1], [0, 0, 1, 1], [], []>} : vector<64x128xf32>, vector<128x224xf32>, vector<64x224xf32> -> vector<64x224xf32>
    %c0_3 = arith.constant 0 : index
    %c0_4 = arith.constant 0 : index
    %7 = vector.load %arg2[%c0_3, %c0_4] : memref<64x448xf32, #tpu.memory_space<vmem>>, vector<64x448xf32>
    %8 = vector.extract_strided_slice %6 {offsets = [0, 0], sizes = [64, 32], strides = [1, 1]} : vector<64x224xf32> to vector<64x32xf32>
    %c0_5 = arith.constant 0 : index
    %c0_6 = arith.constant 0 : index
    %9 = vector.load %arg14[%c0_5, %c0_6] : memref<448x32xf32, #tpu.memory_space<vmem>>, vector<64x32xf32>
    tpu.vector_store %arg14[%c0_5, %c0_6], %8 {strides = array<i32>} : memref<448x32xf32, #tpu.memory_space<vmem>>, vector<64x32xf32>,
    %10 = vector.extract_strided_slice %6 {offsets = [0, 32], sizes = [64, 32], strides = [1, 1]} : vector<64x224xf32> to vector<64x32xf32>
    %c64 = arith.constant 64 : index
    %c0_7 = arith.constant 0 : index
    %11 = vector.load %arg14[%c64, %c0_7] : memref<448x32xf32, #tpu.memory_space<vmem>>, vector<64x32xf32>
    tpu.vector_store %arg14[%c64, %c0_7], %10 {strides = array<i32>} : memref<448x32xf32, #tpu.memory_space<vmem>>, vector<64x32xf32>,
    %12 = vector.extract_strided_slice %6 {offsets = [0, 64], sizes = [64, 32], strides = [1, 1]} : vector<64x224xf32> to vector<64x32xf32>
    %c128 = arith.constant 128 : index
    %c0_8 = arith.constant 0 : index
    %13 = vector.load %arg14[%c128, %c0_8] : memref<448x32xf32, #tpu.memory_space<vmem>>, vector<64x32xf32>
    tpu.vector_store %arg14[%c128, %c0_8], %12 {strides = array<i32>} : memref<448x32xf32, #tpu.memory_space<vmem>>, vector<64x32xf32>,
    %14 = vector.extract_strided_slice %6 {offsets = [0, 96], sizes = [64, 32], strides = [1, 1]} : vector<64x224xf32> to vector<64x32xf32>
    %c192 = arith.constant 192 : index
    %c0_9 = arith.constant 0 : index
    %15 = vector.load %arg14[%c192, %c0_9] : memref<448x32xf32, #tpu.memory_space<vmem>>, vector<64x32xf32>
    tpu.vector_store %arg14[%c192, %c0_9], %14 {strides = array<i32>} : memref<448x32xf32, #tpu.memory_space<vmem>>, vector<64x32xf32>,
    %16 = vector.extract_strided_slice %6 {offsets = [0, 128], sizes = [64, 32], strides = [1, 1]} : vector<64x224xf32> to vector<64x32xf32>
    %c256 = arith.constant 256 : index
    %c0_10 = arith.constant 0 : index
    %17 = vector.load %arg14[%c256, %c0_10] : memref<448x32xf32, #tpu.memory_space<vmem>>, vector<64x32xf32>
    tpu.vector_store %arg14[%c256, %c0_10], %16 {strides = array<i32>} : memref<448x32xf32, #tpu.memory_space<vmem>>, vector<64x32xf32>,
    %18 = vector.extract_strided_slice %6 {offsets = [0, 160], sizes = [64, 32], strides = [1, 1]} : vector<64x224xf32> to vector<64x32xf32>
    %c320 = arith.constant 320 : index
    %c0_11 = arith.constant 0 : index
    %19 = vector.load %arg14[%c320, %c0_11] : memref<448x32xf32, #tpu.memory_space<vmem>>, vector<64x32xf32>
    tpu.vector_store %arg14[%c320, %c0_11], %18 {strides = array<i32>} : memref<448x32xf32, #tpu.memory_space<vmem>>, vector<64x32xf32>,
    %20 = vector.extract_strided_slice %6 {offsets = [0, 192], sizes = [64, 32], strides = [1, 1]} : vector<64x224xf32> to vector<64x32xf32>
    %c384 = arith.constant 384 : index
    %c0_12 = arith.constant 0 : index
    %21 = vector.load %arg14[%c384, %c0_12] : memref<448x32xf32, #tpu.memory_space<vmem>>, vector<64x32xf32>
    tpu.vector_store %arg14[%c384, %c0_12], %20 {strides = array<i32>} : memref<448x32xf32, #tpu.memory_space<vmem>>, vector<64x32xf32>,
    %c0_13 = arith.constant 0 : index
    %c0_14 = arith.constant 0 : index
    %22 = vector.load %arg14[%c0_13, %c0_14] : memref<448x32xf32, #tpu.memory_space<vmem>>, vector<448x32xf32>
    %cst_15 = arith.constant dense<0.000000e+00> : vector<64x32xf32>
    %23 = tpu.matmul %7, %22, %cst_15 {dimension_numbers = #tpu.dot_dimension_numbers<[1], [0], [0], [1], [0, 0, 1, 1], [], []>} : vector<64x448xf32>, vector<448x32xf32>, vector<64x32xf32> -> vector<64x32xf32>
    %c0_16 = arith.constant 0 : index
    %c0_17 = arith.constant 0 : index
    %24 = vector.load %arg3[%c0_16, %c0_17] : memref<64x1xf32, #tpu.memory_space<vmem>>, vector<64x1xf32>
    %25 = vector.broadcast %24 : vector<64x1xf32> to vector<64x32xf32>
    %26 = arith.addf %23, %25 : vector<64x32xf32>
    %cst_18 = arith.constant 0.000000e+00 : f32
    %27 = vector.broadcast %cst_18 : f32 to vector<64x32xf32>
    %28 = arith.maximumf %26, %27 : vector<64x32xf32>
    %c0_i32_19 = arith.constant 0 : i32
    %29 = tpu.memref_slice %arg17[%c0_i32_19] : memref<2x!tpu.dma_semaphore, #tpu.memory_space<semaphore_mem>> -> memref<1x!tpu.dma_semaphore, #tpu.memory_space<semaphore_mem>>
    %30 = tpu.memref_squeeze %29 : memref<1x!tpu.dma_semaphore, #tpu.memory_space<semaphore_mem>> -> memref<!tpu.dma_semaphore, #tpu.memory_space<semaphore_mem>>
    tpu.wait_dma2 semaphore(%30 : memref<!tpu.dma_semaphore, #tpu.memory_space<semaphore_mem>>) src(%arg5 : memref<64x448xf32, #tpu.memory_space<any>>) dst(%arg15 : memref<64x448xf32, #tpu.memory_space<vmem>>)
    %c0_20 = arith.constant 0 : index
    %c0_21 = arith.constant 0 : index
    %c0_22 = arith.constant 0 : index
    %31 = vector.load %arg4[%c0_20, %c0_21, %c0_22] : memref<3x32x28xf32, #tpu.memory_space<vmem>>, vector<1x32x28xf32>
    %32 = vector.shape_cast %31 : vector<1x32x28xf32> to vector<32x28xf32>
    %cst_23 = arith.constant dense<0.000000e+00> : vector<64x28xf32>
    %33 = tpu.matmul %28, %32, %cst_23 {dimension_numbers = #tpu.dot_dimension_numbers<[1], [0], [0], [1], [0, 0, 1, 1], [], []>} : vector<64x32xf32>, vector<32x28xf32>, vector<64x28xf32> -> vector<64x28xf32>
    %c1 = arith.constant 1 : index
    %c0_24 = arith.constant 0 : index
    %c0_25 = arith.constant 0 : index
    %34 = vector.load %arg4[%c1, %c0_24, %c0_25] : memref<3x32x28xf32, #tpu.memory_space<vmem>>, vector<1x32x28xf32>
    %35 = vector.shape_cast %34 : vector<1x32x28xf32> to vector<32x28xf32>
    %cst_26 = arith.constant dense<0.000000e+00> : vector<64x28xf32>
    %36 = tpu.matmul %28, %35, %cst_26 {dimension_numbers = #tpu.dot_dimension_numbers<[1], [0], [0], [1], [0, 0, 1, 1], [], []>} : vector<64x32xf32>, vector<32x28xf32>, vector<64x28xf32> -> vector<64x28xf32>
    %37 = arith.maximumf %33, %36 : vector<64x28xf32>
    %c2 = arith.constant 2 : index
    %c0_27 = arith.constant 0 : index
    %c0_28 = arith.constant 0 : index
    %38 = vector.load %arg4[%c2, %c0_27, %c0_28] : memref<3x32x28xf32, #tpu.memory_space<vmem>>, vector<1x32x28xf32>
    %39 = vector.shape_cast %38 : vector<1x32x28xf32> to vector<32x28xf32>
    %cst_29 = arith.constant dense<0.000000e+00> : vector<64x28xf32>
    %40 = tpu.matmul %28, %39, %cst_29 {dimension_numbers = #tpu.dot_dimension_numbers<[1], [0], [0], [1], [0, 0, 1, 1], [], []>} : vector<64x32xf32>, vector<32x28xf32>, vector<64x28xf32> -> vector<64x28xf32>
    %41 = arith.maximumf %37, %40 : vector<64x28xf32>
    %c0_30 = arith.constant 0 : index
    %c0_31 = arith.constant 0 : index
    %42 = vector.load %arg15[%c0_30, %c0_31] : memref<64x448xf32, #tpu.memory_space<vmem>>, vector<64x448xf32>
    %43 = vector.extract_strided_slice %41 {offsets = [0, 0], sizes = [64, 4], strides = [1, 1]} : vector<64x28xf32> to vector<64x4xf32>
    %c0_32 = arith.constant 0 : index
    %c0_33 = arith.constant 0 : index
    %44 = vector.load %arg14[%c0_32, %c0_33] : memref<448x32xf32, #tpu.memory_space<vmem>>, vector<64x4xf32>
    tpu.vector_store %arg14[%c0_32, %c0_33], %43 {strides = array<i32>} : memref<448x32xf32, #tpu.memory_space<vmem>>, vector<64x4xf32>,
    %45 = vector.extract_strided_slice %41 {offsets = [0, 4], sizes = [64, 4], strides = [1, 1]} : vector<64x28xf32> to vector<64x4xf32>
    %c64_34 = arith.constant 64 : index
    %c0_35 = arith.constant 0 : index
    %46 = vector.load %arg14[%c64_34, %c0_35] : memref<448x32xf32, #tpu.memory_space<vmem>>, vector<64x4xf32>
    tpu.vector_store %arg14[%c64_34, %c0_35], %45 {strides = array<i32>} : memref<448x32xf32, #tpu.memory_space<vmem>>, vector<64x4xf32>,
    %47 = vector.extract_strided_slice %41 {offsets = [0, 8], sizes = [64, 4], strides = [1, 1]} : vector<64x28xf32> to vector<64x4xf32>
    %c128_36 = arith.constant 128 : index
    %c0_37 = arith.constant 0 : index
    %48 = vector.load %arg14[%c128_36, %c0_37] : memref<448x32xf32, #tpu.memory_space<vmem>>, vector<64x4xf32>
    tpu.vector_store %arg14[%c128_36, %c0_37], %47 {strides = array<i32>} : memref<448x32xf32, #tpu.memory_space<vmem>>, vector<64x4xf32>,
    %49 = vector.extract_strided_slice %41 {offsets = [0, 12], sizes = [64, 4], strides = [1, 1]} : vector<64x28xf32> to vector<64x4xf32>
    %c192_38 = arith.constant 192 : index
    %c0_39 = arith.constant 0 : index
    %50 = vector.load %arg14[%c192_38, %c0_39] : memref<448x32xf32, #tpu.memory_space<vmem>>, vector<64x4xf32>
    tpu.vector_store %arg14[%c192_38, %c0_39], %49 {strides = array<i32>} : memref<448x32xf32, #tpu.memory_space<vmem>>, vector<64x4xf32>,
    %51 = vector.extract_strided_slice %41 {offsets = [0, 16], sizes = [64, 4], strides = [1, 1]} : vector<64x28xf32> to vector<64x4xf32>
    %c256_40 = arith.constant 256 : index
    %c0_41 = arith.constant 0 : index
    %52 = vector.load %arg14[%c256_40, %c0_41] : memref<448x32xf32, #tpu.memory_space<vmem>>, vector<64x4xf32>
    tpu.vector_store %arg14[%c256_40, %c0_41], %51 {strides = array<i32>} : memref<448x32xf32, #tpu.memory_space<vmem>>, vector<64x4xf32>,
    %53 = vector.extract_strided_slice %41 {offsets = [0, 20], sizes = [64, 4], strides = [1, 1]} : vector<64x28xf32> to vector<64x4xf32>
    %c320_42 = arith.constant 320 : index
    %c0_43 = arith.constant 0 : index
    %54 = vector.load %arg14[%c320_42, %c0_43] : memref<448x32xf32, #tpu.memory_space<vmem>>, vector<64x4xf32>
    tpu.vector_store %arg14[%c320_42, %c0_43], %53 {strides = array<i32>} : memref<448x32xf32, #tpu.memory_space<vmem>>, vector<64x4xf32>,
    %55 = vector.extract_strided_slice %41 {offsets = [0, 24], sizes = [64, 4], strides = [1, 1]} : vector<64x28xf32> to vector<64x4xf32>
    %c384_44 = arith.constant 384 : index
    %c0_45 = arith.constant 0 : index
    %56 = vector.load %arg14[%c384_44, %c0_45] : memref<448x32xf32, #tpu.memory_space<vmem>>, vector<64x4xf32>
    tpu.vector_store %arg14[%c384_44, %c0_45], %55 {strides = array<i32>} : memref<448x32xf32, #tpu.memory_space<vmem>>, vector<64x4xf32>,
    %c0_46 = arith.constant 0 : index
    %c0_47 = arith.constant 0 : index
    %57 = vector.load %arg14[%c0_46, %c0_47] : memref<448x32xf32, #tpu.memory_space<vmem>>, vector<448x4xf32>
    %cst_48 = arith.constant dense<0.000000e+00> : vector<64x4xf32>
    %58 = tpu.matmul %42, %57, %cst_48 {dimension_numbers = #tpu.dot_dimension_numbers<[1], [0], [0], [1], [0, 0, 1, 1], [], []>} : vector<64x448xf32>, vector<448x4xf32>, vector<64x4xf32> -> vector<64x4xf32>
    %c0_49 = arith.constant 0 : index
    %c0_50 = arith.constant 0 : index
    %59 = vector.load %arg6[%c0_49, %c0_50] : memref<64x1xf32, #tpu.memory_space<vmem>>, vector<64x1xf32>
    %60 = vector.broadcast %59 : vector<64x1xf32> to vector<64x4xf32>
    %61 = arith.addf %58, %60 : vector<64x4xf32>
    %cst_51 = arith.constant 0.000000e+00 : f32
    %62 = vector.broadcast %cst_51 : f32 to vector<64x4xf32>
    %63 = arith.maximumf %61, %62 : vector<64x4xf32>
    %c1_i32_52 = arith.constant 1 : i32
    %64 = tpu.memref_slice %arg17[%c1_i32_52] : memref<2x!tpu.dma_semaphore, #tpu.memory_space<semaphore_mem>> -> memref<1x!tpu.dma_semaphore, #tpu.memory_space<semaphore_mem>>
    %65 = tpu.memref_squeeze %64 : memref<1x!tpu.dma_semaphore, #tpu.memory_space<semaphore_mem>> -> memref<!tpu.dma_semaphore, #tpu.memory_space<semaphore_mem>>
    tpu.wait_dma2 semaphore(%65 : memref<!tpu.dma_semaphore, #tpu.memory_space<semaphore_mem>>) src(%arg8 : memref<64x448xf32, #tpu.memory_space<any>>) dst(%arg16 : memref<64x448xf32, #tpu.memory_space<vmem>>)
    %c0_53 = arith.constant 0 : index
    %c0_54 = arith.constant 0 : index
    %c0_55 = arith.constant 0 : index
    %66 = vector.load %arg7[%c0_53, %c0_54, %c0_55] : memref<2x4x14xf32, #tpu.memory_space<vmem>>, vector<1x4x14xf32>
    %67 = vector.shape_cast %66 : vector<1x4x14xf32> to vector<4x14xf32>
    %cst_56 = arith.constant dense<0.000000e+00> : vector<64x14xf32>
    %68 = tpu.matmul %63, %67, %cst_56 {dimension_numbers = #tpu.dot_dimension_numbers<[1], [0], [0], [1], [0, 0, 1, 1], [], []>} : vector<64x4xf32>, vector<4x14xf32>, vector<64x14xf32> -> vector<64x14xf32>
    %c1_57 = arith.constant 1 : index
    %c0_58 = arith.constant 0 : index
    %c0_59 = arith.constant 0 : index
    %69 = vector.load %arg7[%c1_57, %c0_58, %c0_59] : memref<2x4x14xf32, #tpu.memory_space<vmem>>, vector<1x4x14xf32>
    %70 = vector.shape_cast %69 : vector<1x4x14xf32> to vector<4x14xf32>
    %cst_60 = arith.constant dense<0.000000e+00> : vector<64x14xf32>
    %71 = tpu.matmul %63, %70, %cst_60 {dimension_numbers = #tpu.dot_dimension_numbers<[1], [0], [0], [1], [0, 0, 1, 1], [], []>} : vector<64x4xf32>, vector<4x14xf32>, vector<64x14xf32> -> vector<64x14xf32>
    %72 = arith.maximumf %68, %71 : vector<64x14xf32>
    %c0_61 = arith.constant 0 : index
    %c0_62 = arith.constant 0 : index
    %73 = vector.load %arg16[%c0_61, %c0_62] : memref<64x448xf32, #tpu.memory_space<vmem>>, vector<64x448xf32>
    %74 = vector.extract_strided_slice %72 {offsets = [0, 0], sizes = [64, 2], strides = [1, 1]} : vector<64x14xf32> to vector<64x2xf32>
    %c0_63 = arith.constant 0 : index
    %c0_64 = arith.constant 0 : index
    %75 = vector.load %arg14[%c0_63, %c0_64] : memref<448x32xf32, #tpu.memory_space<vmem>>, vector<64x2xf32>
    tpu.vector_store %arg14[%c0_63, %c0_64], %74 {strides = array<i32>} : memref<448x32xf32, #tpu.memory_space<vmem>>, vector<64x2xf32>,
    %76 = vector.extract_strided_slice %72 {offsets = [0, 2], sizes = [64, 2], strides = [1, 1]} : vector<64x14xf32> to vector<64x2xf32>
    %c64_65 = arith.constant 64 : index
    %c0_66 = arith.constant 0 : index
    %77 = vector.load %arg14[%c64_65, %c0_66] : memref<448x32xf32, #tpu.memory_space<vmem>>, vector<64x2xf32>
    tpu.vector_store %arg14[%c64_65, %c0_66], %76 {strides = array<i32>} : memref<448x32xf32, #tpu.memory_space<vmem>>, vector<64x2xf32>,
    %78 = vector.extract_strided_slice %72 {offsets = [0, 4], sizes = [64, 2], strides = [1, 1]} : vector<64x14xf32> to vector<64x2xf32>
    %c128_67 = arith.constant 128 : index
    %c0_68 = arith.constant 0 : index
    %79 = vector.load %arg14[%c128_67, %c0_68] : memref<448x32xf32, #tpu.memory_space<vmem>>, vector<64x2xf32>
    tpu.vector_store %arg14[%c128_67, %c0_68], %78 {strides = array<i32>} : memref<448x32xf32, #tpu.memory_space<vmem>>, vector<64x2xf32>,
    %80 = vector.extract_strided_slice %72 {offsets = [0, 6], sizes = [64, 2], strides = [1, 1]} : vector<64x14xf32> to vector<64x2xf32>
    %c192_69 = arith.constant 192 : index
    %c0_70 = arith.constant 0 : index
    %81 = vector.load %arg14[%c192_69, %c0_70] : memref<448x32xf32, #tpu.memory_space<vmem>>, vector<64x2xf32>
    tpu.vector_store %arg14[%c192_69, %c0_70], %80 {strides = array<i32>} : memref<448x32xf32, #tpu.memory_space<vmem>>, vector<64x2xf32>,
    %82 = vector.extract_strided_slice %72 {offsets = [0, 8], sizes = [64, 2], strides = [1, 1]} : vector<64x14xf32> to vector<64x2xf32>
    %c256_71 = arith.constant 256 : index
    %c0_72 = arith.constant 0 : index
    %83 = vector.load %arg14[%c256_71, %c0_72] : memref<448x32xf32, #tpu.memory_space<vmem>>, vector<64x2xf32>
    tpu.vector_store %arg14[%c256_71, %c0_72], %82 {strides = array<i32>} : memref<448x32xf32, #tpu.memory_space<vmem>>, vector<64x2xf32>,
    %84 = vector.extract_strided_slice %72 {offsets = [0, 10], sizes = [64, 2], strides = [1, 1]} : vector<64x14xf32> to vector<64x2xf32>
    %c320_73 = arith.constant 320 : index
    %c0_74 = arith.constant 0 : index
    %85 = vector.load %arg14[%c320_73, %c0_74] : memref<448x32xf32, #tpu.memory_space<vmem>>, vector<64x2xf32>
    tpu.vector_store %arg14[%c320_73, %c0_74], %84 {strides = array<i32>} : memref<448x32xf32, #tpu.memory_space<vmem>>, vector<64x2xf32>,
    %86 = vector.extract_strided_slice %72 {offsets = [0, 12], sizes = [64, 2], strides = [1, 1]} : vector<64x14xf32> to vector<64x2xf32>
    %c384_75 = arith.constant 384 : index
    %c0_76 = arith.constant 0 : index
    %87 = vector.load %arg14[%c384_75, %c0_76] : memref<448x32xf32, #tpu.memory_space<vmem>>, vector<64x2xf32>
    tpu.vector_store %arg14[%c384_75, %c0_76], %86 {strides = array<i32>} : memref<448x32xf32, #tpu.memory_space<vmem>>, vector<64x2xf32>,
    %c0_77 = arith.constant 0 : index
    %c0_78 = arith.constant 0 : index
    %88 = vector.load %arg14[%c0_77, %c0_78] : memref<448x32xf32, #tpu.memory_space<vmem>>, vector<448x2xf32>
    %cst_79 = arith.constant dense<0.000000e+00> : vector<64x2xf32>
    %89 = tpu.matmul %73, %88, %cst_79 {dimension_numbers = #tpu.dot_dimension_numbers<[1], [0], [0], [1], [0, 0, 1, 1], [], []>} : vector<64x448xf32>, vector<448x2xf32>, vector<64x2xf32> -> vector<64x2xf32>
    %c0_80 = arith.constant 0 : index
    %c0_81 = arith.constant 0 : index
    %90 = vector.load %arg9[%c0_80, %c0_81] : memref<64x1xf32, #tpu.memory_space<vmem>>, vector<64x1xf32>
    %91 = vector.broadcast %90 : vector<64x1xf32> to vector<64x2xf32>
    %92 = arith.addf %89, %91 : vector<64x2xf32>
    %cst_82 = arith.constant 0.000000e+00 : f32
    %93 = vector.broadcast %cst_82 : f32 to vector<64x2xf32>
    %94 = arith.maximumf %92, %93 : vector<64x2xf32>
    %c0_83 = arith.constant 0 : index
    %c0_84 = arith.constant 0 : index
    %95 = vector.load %arg11[%c0_83, %c0_84] : memref<5x64xf32, #tpu.memory_space<vmem>>, vector<5x64xf32>
    %cst_85 = arith.constant dense<0.000000e+00> : vector<5x2xf32>
    %96 = tpu.matmul %95, %94, %cst_85 {dimension_numbers = #tpu.dot_dimension_numbers<[1], [0], [0], [1], [0, 0, 1, 1], [], []>} : vector<5x64xf32>, vector<64x2xf32>, vector<5x2xf32> -> vector<5x2xf32>
    %c0_86 = arith.constant 0 : index
    %c0_87 = arith.constant 0 : index
    %97 = vector.load %arg12[%c0_86, %c0_87] : memref<5x1xf32, #tpu.memory_space<vmem>>, vector<5x1xf32>
    %98 = vector.broadcast %97 : vector<5x1xf32> to vector<5x2xf32>
    %99 = arith.addf %96, %98 : vector<5x2xf32>
    %cst_88 = arith.constant dense<0xFF800000> : vector<2xf32>
    %100 = vector.multi_reduction <maximumf>, %99, %cst_88 [0] : vector<5x2xf32> to vector<2xf32>
    %101 = vector.shape_cast %100 : vector<2xf32> to vector<1x2xf32>
    %102 = vector.broadcast %101 : vector<1x2xf32> to vector<5x2xf32>
    %103 = arith.subf %99, %102 : vector<5x2xf32>
    %104 = math.exp %103 : vector<5x2xf32>
    %cst_89 = arith.constant dense<0.000000e+00> : vector<2xf32>
    %105 = vector.multi_reduction <add>, %104, %cst_89 [0] : vector<5x2xf32> to vector<2xf32>
    %106 = vector.shape_cast %105 : vector<2xf32> to vector<1x2xf32>
    %107 = vector.broadcast %101 : vector<1x2xf32> to vector<5x2xf32>
    %108 = arith.subf %99, %107 : vector<5x2xf32>
    %109 = math.log %106 : vector<1x2xf32>
    %110 = vector.broadcast %109 : vector<1x2xf32> to vector<5x2xf32>
    %111 = arith.subf %108, %110 : vector<5x2xf32>
    %c0_90 = arith.constant 0 : index
    %c0_91 = arith.constant 0 : index
    %112 = vector.load %arg13[%c0_90, %c0_91] : memref<5x2xf32, #tpu.memory_space<vmem>>, vector<5x2xf32>
    tpu.vector_store %arg13[%c0_90, %c0_91], %111 {strides = array<i32>} : memref<5x2xf32, #tpu.memory_space<vmem>>, vector<5x2xf32>,
    return
  }
}

</mosaic_0001>

<bundles_post_ra>
// kernel: convnet_forward.1
= control target key start
LH: loop header
LB: loop body
LE: loop exit
PB: predicated region body
PF: predicated region fallthrough
CT: control target
= control target key end

     0   :  { %18 = vsyncpa [#allocation7], 0  ;;  %s2489_s28 = smov [#allocation6]   ;;  %s2490_s30 = smov 128   ;;  %s3749_s0 = inlined_call_operand.vmem [shape: f32[64,128], index: 0, kind: input, shape index: {}]   ;;  %s3750_s1 = inlined_call_operand.vmem [shape: f32[128,224], index: 1, kind: input, shape index: {}]   ;;  %s3751_s2 = inlined_call_operand.vmem [shape: f32[64,448], index: 2, kind: input, shape index: {}]   ;;  %s3752_s3 = inlined_call_operand.vmem [shape: f32[64,1], index: 3, kind: input, shape index: {}]   ;;  %s3753_s4 = inlined_call_operand.hbm [shape: f32[3,32,28], index: 4, kind: input, shape index: {}]   ;;  %s3754_s5 = inlined_call_operand.vmem [shape: f32[64,448], index: 5, kind: input, shape index: {}]   ;;  %s3755_s6 = inlined_call_operand.vmem [shape: f32[64,1], index: 6, kind: input, shape index: {}]   ;;  %s3756_s7 = inlined_call_operand.vmem [shape: f32[2,4,14], index: 7, kind: input, shape index: {}]   ;;  %s3757_s8 = inlined_call_operand.vmem [shape: f32[64,448], index: 8, kind: input, shape index: {}]   ;;  %s3758_s9 = inlined_call_operand.vmem [shape: f32[64,1], index: 9, kind: input, shape index: {}]   ;;  %s3759_s10 = inlined_call_operand.vmem [shape: f32[1,2,2], index: 10, kind: input, shape index: {}]   ;;  %s3760_s11 = inlined_call_operand.vmem [shape: f32[5,64], index: 11, kind: input, shape index: {}]   ;;  %s3761_s12 = inlined_call_operand.vmem [shape: f32[5,1], index: 12, kind: input, shape index: {}]   ;;  %s3762_s13 = inlined_call_operand.vmem [shape: f32[5,2], index: 13, kind: output, shape index: {}]  }
   0x1   :  { %s31_s27 = sshll.u32 %s3753_s4, 4  ;;  %s33_s29 = sshll.u32 %s2489_s28, 4  ;;  %s32_s27 = int_to_ptr.hbm [resolvable:$true] %s31_s27  ;;  %s34_s29 = int_to_ptr.vmem [resolvable:$true] %s33_s29 }
   0x2   :  { %s2491_s10 = smov 8  }
   0x3   :  { %39 = dma.hbm_to_vmem [thread:$0]  %s32_s27, 1536, %s34_s29, [#allocation7], %s2490_s30, %s2490_s30, %s2491_s10  }
   0x4   :  { %2483 = dma.done.wait [#allocation7], 1536  }
   0x5   :  { %2484 = vsyncadd [#allocation7], 4294965760  ;;  %v2581_v0 = vld [vmem:[%s3754_s5] sm:$0xff]  ;;  %v2586_v1 = vld [vmem:[%s3754_s5 + $0x8] sm:$0xff] }
   0x6   :  { %v2591_v2 = vld [vmem:[%s3754_s5 + $0x10] sm:$0xff]  ;;  %v2596_v3 = vld [vmem:[%s3754_s5 + $0x18] sm:$0xff]  ;;  %v2601_v4 = vld [vmem:[%s3754_s5 + $0x20] sm:$0xff] }
   0x7   :  { %v2606_v5 = vld [vmem:[%s3754_s5 + $0x28] sm:$0xff]  ;;  %v2611_v6 = vld [vmem:[%s3754_s5 + $0x30] sm:$0xff]  ;;  %v2616_v7 = vld [vmem:[%s3754_s5 + $0x38] sm:$0xff] }
   0x8   :  { %v2621_v8 = vld [vmem:[%s3754_s5 + $0x40] sm:$0xff]  ;;  %v2626_v9 = vld [vmem:[%s3754_s5 + $0x48] sm:$0xff]  ;;  %v2631_v10 = vld [vmem:[%s3754_s5 + $0x50] sm:$0xff] }
   0x9   :  { %v2636_v11 = vld [vmem:[%s3754_s5 + $0x58] sm:$0xff]  ;;  %v2641_v12 = vld [vmem:[%s3754_s5 + $0x60] sm:$0xff]  ;;  %v2646_v13 = vld [vmem:[%s3754_s5 + $0x68] sm:$0xff] }
   0xa   :  { %v2651_v14 = vld [vmem:[%s3754_s5 + $0x70] sm:$0xff]  ;;  %v2656_v15 = vld [vmem:[%s3754_s5 + $0x78] sm:$0xff]  ;;  %v2661_v16 = vld [vmem:[%s3754_s5 + $0x80] sm:$0xff] }
   0xb   :  { %v2666_v17 = vld [vmem:[%s3754_s5 + $0x88] sm:$0xff]  ;;  %v2671_v18 = vld [vmem:[%s3754_s5 + $0x90] sm:$0xff]  ;;  %v2676_v19 = vld [vmem:[%s3754_s5 + $0x98] sm:$0xff] }
   0xc   :  { %v2681_v20 = vld [vmem:[%s3754_s5 + $0xa0] sm:$0xff]  ;;  %v2686_v21 = vld [vmem:[%s3754_s5 + $0xa8] sm:$0xff]  ;;  %v2691_v22 = vld [vmem:[%s3754_s5 + $0xb0] sm:$0xff] }
   0xd   :  { %v2696_v23 = vld [vmem:[%s3754_s5 + $0xb8] sm:$0xff]  ;;  %v2701_v24 = vld [vmem:[%s3754_s5 + $0xc0] sm:$0xff]  ;;  %v2706_v25 = vld [vmem:[%s3754_s5 + $0xc8] sm:$0xff] }
   0xe   :  { %v2711_v26 = vld [vmem:[%s3754_s5 + $0xd0] sm:$0xff]  ;;  %v2716_v27 = vld [vmem:[%s3754_s5 + $0xd8] sm:$0xff]  ;;  %v2721_v28 = vld [vmem:[%s3754_s5 + $0xe0] sm:$0xff] }
   0xf   :  { %v2726_v29 = vld [vmem:[%s3754_s5 + $0xe8] sm:$0xff]  ;;  %v2731_v30 = vld [vmem:[%s3754_s5 + $0xf0] sm:$0xff]  ;;  %v2736_v31 = vld [vmem:[%s3754_s5 + $0xf8] sm:$0xff] }
  0x10   :  { %135 = vsyncadd [#allocation5], 4096  ;;  %v2741_v32 = vld [vmem:[%s3757_s8] sm:$0xff]  ;;  %v2746_v33 = vld [vmem:[%s3757_s8 + $0x8] sm:$0xff] }
  0x11   :  { %3765 = vst [vmem:[#allocation13_spill] sm:$0xff] %v2741_v32  ;;  %v2751_v34 = vld [vmem:[%s3757_s8 + $0x10] sm:$0xff]  ;;  %v2756_v35 = vld [vmem:[%s3757_s8 + $0x18] sm:$0xff]  ;;  %v2761_v36 = vld [vmem:[%s3757_s8 + $0x20] sm:$0xff] }
  0x12   :  { %3766 = vst [vmem:[#allocation14_spill] sm:$0xff] %v2746_v33  ;;  %v2766_v37 = vld [vmem:[%s3757_s8 + $0x28] sm:$0xff]  ;;  %v2771_v38 = vld [vmem:[%s3757_s8 + $0x30] sm:$0xff]  ;;  %v2776_v39 = vld [vmem:[%s3757_s8 + $0x38] sm:$0xff] }
  0x13   :  { %3767 = vst [vmem:[#allocation15_spill] sm:$0xff] %v2751_v34  ;;  %v2781_v40 = vld [vmem:[%s3757_s8 + $0x40] sm:$0xff]  ;;  %v2786_v41 = vld [vmem:[%s3757_s8 + $0x48] sm:$0xff]  ;;  %v2791_v42 = vld [vmem:[%s3757_s8 + $0x50] sm:$0xff] }
  0x14   :  { %3768 = vst [vmem:[#allocation16_spill] sm:$0xff] %v2756_v35  ;;  %v2796_v43 = vld [vmem:[%s3757_s8 + $0x58] sm:$0xff]  ;;  %v2801_v44 = vld [vmem:[%s3757_s8 + $0x60] sm:$0xff]  ;;  %v2806_v45 = vld [vmem:[%s3757_s8 + $0x68] sm:$0xff] }
  0x15   :  { %3769 = vst [vmem:[#allocation17_spill] sm:$0xff] %v2761_v36  ;;  %v2811_v46 = vld [vmem:[%s3757_s8 + $0x70] sm:$0xff]  ;;  %v2816_v47 = vld [vmem:[%s3757_s8 + $0x78] sm:$0xff]  ;;  %v2821_v48 = vld [vmem:[%s3757_s8 + $0x80] sm:$0xff] }
  0x16   :  { %3770 = vst [vmem:[#allocation18_spill] sm:$0xff] %v2766_v37  ;;  %v2826_v49 = vld [vmem:[%s3757_s8 + $0x88] sm:$0xff]  ;;  %v2831_v50 = vld [vmem:[%s3757_s8 + $0x90] sm:$0xff]  ;;  %v2836_v51 = vld [vmem:[%s3757_s8 + $0x98] sm:$0xff] }
  0x17   :  { %3771 = vst [vmem:[#allocation19_spill] sm:$0xff] %v2771_v38  ;;  %v2841_v52 = vld [vmem:[%s3757_s8 + $0xa0] sm:$0xff]  ;;  %v2846_v53 = vld [vmem:[%s3757_s8 + $0xa8] sm:$0xff]  ;;  %v2851_v54 = vld [vmem:[%s3757_s8 + $0xb0] sm:$0xff] }
  0x18   :  { %3772 = vst [vmem:[#allocation20_spill] sm:$0xff] %v2776_v39  ;;  %v2856_v55 = vld [vmem:[%s3757_s8 + $0xb8] sm:$0xff]  ;;  %v2861_v56 = vld [vmem:[%s3757_s8 + $0xc0] sm:$0xff]  ;;  %v2866_v57 = vld [vmem:[%s3757_s8 + $0xc8] sm:$0xff] }
  0x19   :  { %3773 = vst [vmem:[#allocation21_spill] sm:$0xff] %v2781_v40  ;;  %v2871_v58 = vld [vmem:[%s3757_s8 + $0xd0] sm:$0xff]  ;;  %v2876_v59 = vld [vmem:[%s3757_s8 + $0xd8] sm:$0xff]  ;;  %v2881_v60 = vld [vmem:[%s3757_s8 + $0xe0] sm:$0xff] }
  0x1a   :  { %3774 = vst [vmem:[#allocation22_spill] sm:$0xff] %v2786_v41  ;;  %v2886_v61 = vld [vmem:[%s3757_s8 + $0xe8] sm:$0xff]  ;;  %v2891_v62 = vld [vmem:[%s3757_s8 + $0xf0] sm:$0xff]  ;;  %v2896_v63 = vld [vmem:[%s3757_s8 + $0xf8] sm:$0xff] }
  0x1b   :  { %3775 = vst [vmem:[#allocation23_spill] sm:$0xff] %v2791_v42 }
  0x1c   :  { %3776 = vst [vmem:[#allocation24_spill] sm:$0xff] %v2796_v43 }
  0x1d   :  { %3777 = vst [vmem:[#allocation25_spill] sm:$0xff] %v2801_v44 }
  0x1e   :  { %3778 = vst [vmem:[#allocation26_spill] sm:$0xff] %v2806_v45 }
  0x1f   :  { %3779 = vst [vmem:[#allocation27_spill] sm:$0xff] %v2811_v46 }
  0x20   :  { %3780 = vst [vmem:[#allocation28_spill] sm:$0xff] %v2816_v47 }
  0x21   :  { %3781 = vst [vmem:[#allocation29_spill] sm:$0xff] %v2821_v48 }
  0x22   :  { %3782 = vst [vmem:[#allocation30_spill] sm:$0xff] %v2826_v49 }
  0x23   :  { %3783 = vst [vmem:[#allocation31_spill] sm:$0xff] %v2831_v50 }
  0x24   :  { %3784 = vst [vmem:[#allocation32_spill] sm:$0xff] %v2836_v51 }
  0x25   :  { %3785 = vst [vmem:[#allocation33_spill] sm:$0xff] %v2841_v52 }
  0x26   :  { %3786 = vst [vmem:[#allocation34_spill] sm:$0xff] %v2846_v53 }
  0x27   :  { %3787 = vst [vmem:[#allocation35_spill] sm:$0xff] %v2851_v54 }
  0x28   :  { %3788 = vst [vmem:[#allocation36_spill] sm:$0xff] %v2856_v55 }
  0x29   :  { %3789 = vst [vmem:[#allocation37_spill] sm:$0xff] %v2861_v56 }
  0x2a   :  { %3790 = vst [vmem:[#allocation38_spill] sm:$0xff] %v2866_v57 }
  0x2b   :  { %3791 = vst [vmem:[#allocation39_spill] sm:$0xff] %v2871_v58 }
  0x2c   :  { %3792 = vst [vmem:[#allocation40_spill] sm:$0xff] %v2876_v59 }
  0x2d   :  { %3793 = vst [vmem:[#allocation41_spill] sm:$0xff] %v2881_v60 }
  0x2e   :  { %3794 = vst [vmem:[#allocation42_spill] sm:$0xff] %v2886_v61 }
  0x2f   :  { %3795 = vst [vmem:[#allocation43_spill] sm:$0xff] %v2891_v62 }
  0x30   :  { %3796 = vst [vmem:[#allocation44_spill] sm:$0xff] %v2896_v63 }
  0x31   :  { %216 = vsyncadd [#allocation5 + $0x1], 4096  ;;  %v255_v58 = vld [vmem:[%s3750_s1 + $0xf0] sm:$0xff]  ;;  %v256_v57 = vld [vmem:[%s3750_s1 + $0xf8] sm:$0xff]  ;;  %vm371_vm0 = vcmask 261120   ;;  %s2492_s19 = smov 96  }
  0x32   :  { %257 = vmatpush.msra.mxu0 %v255_v58  ;;  %2402 = vmatpush.msra.mxu3 %v255_v58  ;;  %v253_v62 = vld [vmem:[%s3750_s1 + $0xe0] sm:$0xff]  ;;  %v254_v61 = vld [vmem:[%s3750_s1 + $0xe8] sm:$0xff]  ;;  %v251_v54 = vld [vmem:[%s3750_s1 + $0xd0] sm:$0xff]  ;;  %s2494_s20 = smov 64   ;;  %vm668_vm1 = vcmask 523264  }
  0x33   :  { %298 = vmatpush.msra.mxu1 %v256_v57  ;;  %v252_v60 = vld [vmem:[%s3750_s1 + $0xd8] sm:$0xff]  ;;  %v249_v58 = vld [vmem:[%s3750_s1 + $0xc0] sm:$0xff]  ;;  %v250_v57 = vld [vmem:[%s3750_s1 + $0xc8] sm:$0xff] }
  0x34   :  { %258 = vmatpush.msra.mxu0 %v253_v62  ;;  %2403 = vmatpush.msra.mxu3 %v253_v62  ;;  %v247_v62 = vld [vmem:[%s3750_s1 + $0xb0] sm:$0xff]  ;;  %v217_v63 = vld [vmem:[%s3749_s0] sm:$0xff] }
  0x35   :  { %299 = vmatpush.msra.mxu1 %v254_v61  ;;  %v248_v61 = vld [vmem:[%s3750_s1 + $0xb8] sm:$0xff] }
  0x36   :  { %259 = vmatpush.msra.mxu0 %v251_v54  ;;  %2404 = vmatpush.msra.mxu3 %v251_v54  ;;  %v245_v54 = vld [vmem:[%s3750_s1 + $0xa0] sm:$0xff] }
  0x37   :  { %300 = vmatpush.msra.mxu1 %v252_v60  ;;  %v246_v60 = vld [vmem:[%s3750_s1 + $0xa8] sm:$0xff] }
  0x38   :  { %260 = vmatpush.msra.mxu0 %v249_v58  ;;  %2405 = vmatpush.msra.mxu3 %v249_v58  ;;  %v243_v58 = vld [vmem:[%s3750_s1 + $0x90] sm:$0xff] }
  0x39   :  { %301 = vmatpush.msra.mxu1 %v250_v57  ;;  %v244_v57 = vld [vmem:[%s3750_s1 + $0x98] sm:$0xff] }
  0x3a   :  { %261 = vmatpush.msra.mxu0 %v247_v62  ;;  %2406 = vmatpush.msra.mxu3 %v247_v62  ;;  %v241_v62 = vld [vmem:[%s3750_s1 + $0x80] sm:$0xff] }
  0x3b   :  { %302 = vmatpush.msra.mxu1 %v248_v61  ;;  %v242_v61 = vld [vmem:[%s3750_s1 + $0x88] sm:$0xff] }
  0x3c   :  { %262 = vmatpush.msra.mxu0 %v245_v54  ;;  %2407 = vmatpush.msra.mxu3 %v245_v54  ;;  %v239_v54 = vld [vmem:[%s3750_s1 + $0x70] sm:$0xff] }
  0x3d   :  { %303 = vmatpush.msra.mxu1 %v246_v60  ;;  %v240_v60 = vld [vmem:[%s3750_s1 + $0x78] sm:$0xff] }
  0x3e   :  { %263 = vmatpush.msra.mxu0 %v243_v58  ;;  %2408 = vmatpush.msra.mxu3 %v243_v58  ;;  %v237_v58 = vld [vmem:[%s3750_s1 + $0x60] sm:$0xff] }
  0x3f   :  { %304 = vmatpush.msra.mxu1 %v244_v57  ;;  %v238_v57 = vld [vmem:[%s3750_s1 + $0x68] sm:$0xff] }
  0x40   :  { %264 = vmatpush.msra.mxu0 %v241_v62  ;;  %2409 = vmatpush.msra.mxu3 %v241_v62  ;;  %v235_v62 = vld [vmem:[%s3750_s1 + $0x50] sm:$0xff] }
  0x41   :  { %305 = vmatpush.msra.mxu1 %v242_v61  ;;  %v236_v61 = vld [vmem:[%s3750_s1 + $0x58] sm:$0xff] }
  0x42   :  { %265 = vmatpush.msra.mxu0 %v239_v54  ;;  %2410 = vmatpush.msra.mxu3 %v239_v54  ;;  %v233_v54 = vld [vmem:[%s3750_s1 + $0x40] sm:$0xff] }
  0x43   :  { %306 = vmatpush.msra.mxu1 %v240_v60  ;;  %v234_v60 = vld [vmem:[%s3750_s1 + $0x48] sm:$0xff] }
  0x44   :  { %266 = vmatpush.msra.mxu0 %v237_v58  ;;  %2411 = vmatpush.msra.mxu3 %v237_v58  ;;  %v231_v58 = vld [vmem:[%s3750_s1 + $0x30] sm:$0xff] }
  0x45   :  { %307 = vmatpush.msra.mxu1 %v238_v57  ;;  %v232_v57 = vld [vmem:[%s3750_s1 + $0x38] sm:$0xff] }
  0x46   :  { %267 = vmatpush.msra.mxu0 %v235_v62  ;;  %2412 = vmatpush.msra.mxu3 %v235_v62  ;;  %v229_v62 = vld [vmem:[%s3750_s1 + $0x20] sm:$0xff] }
  0x47   :  { %308 = vmatpush.msra.mxu1 %v236_v61  ;;  %v230_v61 = vld [vmem:[%s3750_s1 + $0x28] sm:$0xff] }
  0x48   :  { %268 = vmatpush.msra.mxu0 %v233_v54  ;;  %2413 = vmatpush.msra.mxu3 %v233_v54  ;;  %v227_v54 = vld [vmem:[%s3750_s1 + $0x10] sm:$0xff] }
  0x49   :  { %309 = vmatpush.msra.mxu1 %v234_v60  ;;  %v228_v60 = vld [vmem:[%s3750_s1 + $0x18] sm:$0xff] }
  0x4a   :  { %269 = vmatpush.msra.mxu0 %v231_v58  ;;  %2414 = vmatpush.msra.mxu3 %v231_v58  ;;  %v225_v58 = vld [vmem:[%s3750_s1] sm:$0xff] }
  0x4b   :  { %310 = vmatpush.msra.mxu1 %v232_v57  ;;  %v226_v57 = vld [vmem:[%s3750_s1 + $0x8] sm:$0xff] }
  0x4c   :  { %270 = vmatpush.msra.mxu0 %v229_v62  ;;  %2415 = vmatpush.msra.mxu3 %v229_v62  ;;  %v221_v62 = vld [vmem:[%s3749_s0 + $0x20] sm:$0xff] }
  0x4d   :  { %311 = vmatpush.msra.mxu1 %v230_v61  ;;  %v218_v61 = vld [vmem:[%s3749_s0 + $0x8] sm:$0xff] }
  0x4e   :  { %271 = vmatpush.msra.mxu0 %v227_v54  ;;  %2416 = vmatpush.msra.mxu3 %v227_v54  ;;  %v222_v54 = vld [vmem:[%s3749_s0 + $0x28] sm:$0xff] }
  0x4f   :  { %312 = vmatpush.msra.mxu1 %v228_v60  ;;  %v219_v60 = vld [vmem:[%s3749_s0 + $0x10] sm:$0xff] }
  0x50   :  { %272 = vmatpush.msra.mxu0 %v225_v58  ;;  %2417 = vmatpush.msra.mxu3 %v225_v58  ;;  %v223_v58 = vld [vmem:[%s3749_s0 + $0x30] sm:$0xff] }
  0x51   :  { %313 = vmatpush.msra.mxu1 %v226_v57  ;;  %273 = vmatmul.f32.vlgmr.msra.gmra.mxu0 %v217_v63  ;;  %v224_v57 = vld [vmem:[%s3749_s0 + $0x38] sm:$0xff] }
  0x52   :  { %285 = vmatmul.f32.vlgmr.msra.gmra.mxu3 %v221_v62  ;;  %314 = vmatmul.f32.vlgmr.msra.gmra.mxu1 %v217_v63  ;;  %v220_v63 = vld [vmem:[%s3749_s0 + $0x18] sm:$0xff]  ;;  %s2493_s0 = smov 32  }
  0x59   :  { %276 = vmatmul.f32.gmra.mxu0 %v218_v61 }
  0x5a   :  { %317 = vmatmul.f32.gmra.mxu1 %v218_v61  ;;  %288 = vmatmul.f32.gmra.mxu3 %v222_v54 }
  0x61   :  { %279 = vmatmul.f32.gmra.mxu0 %v219_v60 }
  0x62   :  { %320 = vmatmul.f32.gmra.mxu1 %v219_v60  ;;  %291 = vmatmul.f32.gmra.mxu3 %v223_v58 }
  0x69   :  { %282 = vmatmul.f32.gmra.mxu0 %v220_v63 }
  0x6a   :  { %323 = vmatmul.f32.gmra.mxu1 %v220_v63  ;;  %294 = vmatmul.f32.gmra.mxu3 %v224_v57 }
  0x72   :  { %326 = vmatmul.f32.gmra.mxu1 %v221_v62 }
  0x7a   :  { %329 = vmatmul.f32.gmra.mxu1 %v222_v54 }
  0x82   :  { %332 = vmatmul.f32.gmra.mxu1 %v223_v58 }
  0x8a   :  { %335 = vmatmul.f32.gmra.mxu1 %v224_v57 }
  0xce   :  { %v3018_v61 = vpop.f32.mrf.mxu0 }
  0xcf   :  { %372 = vst.msk [vmem:[#allocation2] sm:$0xff] %vm371_vm0, %v3018_v61  ;;  %v3022_v60 = vpop.f32.mrf.mxu1  ;;  %388 = vrot.lane.b32.xlu0 %v3018_v61, %s2492_s19 }
  0xd0   :  { %484 = vst.msk [vmem:[#allocation2 + $0x100] sm:$0xff] %vm371_vm0, %v3022_v60 }
  0xd5   :  { %v286_v63 = vpop.f32.mrf.mxu3 }
  0xd6   :  { %376 = vst.msk [vmem:[#allocation2 + $0x20] sm:$0xff] %vm371_vm0, %v286_v63  ;;  %460 = vrot.lane.b32.xlu1 %v286_v63, %s2493_s0  ;;  %v277_v62 = vpop.f32.mrf.mxu0 }
  0xd7   :  { %v3030_v54 = vpop.f32.mrf.mxu1  ;;  %396 = vrot.lane.b32.xlu0 %v286_v63, %s2492_s19  ;;  %373 = vst.msk [vmem:[#allocation2 + $0x8] sm:$0xff] %vm371_vm0, %v277_v62 }
  0xd8   :  { %485 = vst.msk [vmem:[#allocation2 + $0x108] sm:$0xff] %vm371_vm0, %v3030_v54 }
  0xdd   :  { %v289_v58 = vpop.f32.mrf.mxu3 }
  0xde   :  { %454 = vrot.lane.b32.xlu1 %v277_v62, %s2493_s0  ;;  %377 = vst.msk [vmem:[#allocation2 + $0x28] sm:$0xff] %vm371_vm0, %v289_v58  ;;  %v280_v57 = vpop.f32.mrf.mxu0 }
  0xdf   :  { %v321_v53 = vpop.f32.mrf.mxu1  ;;  %390 = vrot.lane.b32.xlu0 %v277_v62, %s2492_s19  ;;  %374 = vst.msk [vmem:[#allocation2 + $0x10] sm:$0xff] %vm371_vm0, %v280_v57 }
  0xe0   :  { %486 = vst.msk [vmem:[#allocation2 + $0x110] sm:$0xff] %vm371_vm0, %v321_v53  ;;  %504 = vrot.lane.b32.xlu2 %v321_v53, %s2492_s19 }
  0xe5   :  { %v292_v50 = vpop.f32.mrf.mxu3 }
  0xe6   :  { %398 = vrot.lane.b32.xlu1 %v289_v58, %s2492_s19  ;;  %378 = vst.msk [vmem:[#allocation2 + $0x30] sm:$0xff] %vm371_vm0, %v292_v50  ;;  %v283_v56 = vpop.f32.mrf.mxu0 }
  0xe7   :  { %392 = vrot.lane.b32.xlu0 %v280_v57, %s2492_s19  ;;  %v324_v59 = vpop.f32.mrf.mxu1  ;;  %375 = vst.msk [vmem:[#allocation2 + $0x18] sm:$0xff] %vm371_vm0, %v283_v56 }
  0xe8   :  { %464 = vrot.lane.b32.xlu2 %v292_v50, %s2493_s0  ;;  %487 = vst.msk [vmem:[#allocation2 + $0x118] sm:$0xff] %vm371_vm0, %v324_v59 }
  0xed   :  { %v295_v49 = vpop.f32.mrf.mxu3 }
  0xee   :  { %462 = vrot.lane.b32.xlu1 %v289_v58, %s2493_s0  ;;  %379 = vst.msk [vmem:[#allocation2 + $0x38] sm:$0xff] %vm371_vm0, %v295_v49 }
  0xef   :  { %400 = vrot.lane.b32.xlu0 %v292_v50, %s2492_s19  ;;  %v327_v46 = vpop.f32.mrf.mxu1 }
  0xf0   :  { %506 = vrot.lane.b32.xlu2 %v324_v59, %s2492_s19  ;;  %488 = vst.msk [vmem:[#allocation2 + $0x120] sm:$0xff] %vm371_vm0, %v327_v46 }
  0xf6   :  { %456 = vrot.lane.b32.xlu1 %v280_v57, %s2493_s0 }
  0xf7   :  { %394 = vrot.lane.b32.xlu0 %v283_v56, %s2492_s19  ;;  %v330_v52 = vpop.f32.mrf.mxu1 }
  0xf8   :  { %508 = vrot.lane.b32.xlu2 %v327_v46, %s2492_s19  ;;  %489 = vst.msk [vmem:[#allocation2 + $0x128] sm:$0xff] %vm371_vm0, %v330_v52 }
  0xfe   :  { %458 = vrot.lane.b32.xlu1 %v283_v56, %s2493_s0 }
  0xff   :  { %402 = vrot.lane.b32.xlu0 %v295_v49, %s2492_s19  ;;  %v333_v55 = vpop.f32.mrf.mxu1 }
 0x100   :  { %510 = vrot.lane.b32.xlu2 %v330_v52, %s2492_s19  ;;  %490 = vst.msk [vmem:[#allocation2 + $0x130] sm:$0xff] %vm371_vm0, %v333_v55 }
 0x106   :  { %466 = vrot.lane.b32.xlu1 %v295_v49, %s2493_s0 }
 0x107   :  { %452 = vrot.lane.b32.xlu0 %v3018_v61, %s2493_s0  ;;  %v336_v45 = vpop.f32.mrf.mxu1 }
 0x108   :  { %512 = vrot.lane.b32.xlu2 %v333_v55, %s2492_s19  ;;  %491 = vst.msk [vmem:[#allocation2 + $0x138] sm:$0xff] %vm371_vm0, %v336_v45 }
 0x10e   :  { %502 = vrot.lane.b32.xlu1 %v3030_v54, %s2492_s19 }
 0x10f   :  { %500 = vrot.lane.b32.xlu0 %v3022_v60, %s2492_s19 }
 0x110   :  { %514 = vrot.lane.b32.xlu2 %v336_v45, %s2492_s19 }
 0x116   :  { %432 = vrot.lane.b32.xlu1 %v292_v50, %s2494_s20 }
 0x117   :  { %428 = vrot.lane.b32.xlu0 %v286_v63, %s2494_s20 }
 0x118   :  { %434 = vrot.lane.b32.xlu2 %v295_v49, %s2494_s20 }
 0x11e   :  { %426 = vrot.lane.b32.xlu1 %v283_v56, %s2494_s20 }
 0x11f   :  { %422 = vrot.lane.b32.xlu0 %v277_v62, %s2494_s20 }
 0x120   :  { %430 = vrot.lane.b32.xlu2 %v289_v58, %s2494_s20 }
 0x126   :  { %420 = vrot.lane.b32.xlu1 %v3018_v61, %s2494_s20 }
 0x127   :  { %544 = vrot.lane.b32.xlu0 %v333_v55, %s2494_s20 }
 0x128   :  { %424 = vrot.lane.b32.xlu2 %v280_v57, %s2494_s20 }
 0x12e   :  { %542 = vrot.lane.b32.xlu1 %v330_v52, %s2494_s20 }
 0x12f   :  { %538 = vrot.lane.b32.xlu0 %v324_v59, %s2494_s20 }
 0x130   :  { %546 = vrot.lane.b32.xlu2 %v336_v45, %s2494_s20 }
 0x136   :  { %536 = vrot.lane.b32.xlu1 %v321_v53, %s2494_s20 }
 0x137   :  { %532 = vrot.lane.b32.xlu0 %v3022_v60, %s2494_s20 }
 0x138   :  { %540 = vrot.lane.b32.xlu2 %v327_v46, %s2494_s20 }
 0x13a   :  { %v505_v42 = vpop.permute.xlu2 %504 }
 0x13b   :  { %526 = vst.msk [vmem:[#allocation2 + $0x150] sm:$0xff] %vm371_vm0, %v505_v42 }
 0x140   :  { %534 = vrot.lane.b32.xlu2 %v3030_v54, %s2494_s20 }
 0x141   :  { %v389_v49 = vpop.permute.xlu0 %388 }
 0x142   :  { %v465_v50 = vpop.permute.xlu2 %464  ;;  %412 = vst.msk [vmem:[#allocation2 + $0x40] sm:$0xff] %vm371_vm0, %v389_v49 }
 0x143   :  { %482 = vst.msk [vmem:[#allocation2 + $0xf0] sm:$0xff] %vm371_vm0, %v465_v50 }
 0x148   :  { %v461_v55 = vpop.permute.xlu1 %460 }
 0x149   :  { %480 = vst.msk [vmem:[#allocation2 + $0xe0] sm:$0xff] %vm371_vm0, %v461_v55  ;;  %v397_v52 = vpop.permute.xlu0 %396 }
 0x14a   :  { %v507_v45 = vpop.permute.xlu2 %506  ;;  %416 = vst.msk [vmem:[#allocation2 + $0x60] sm:$0xff] %vm371_vm0, %v397_v52 }
 0x14b   :  { %527 = vst.msk [vmem:[#allocation2 + $0x158] sm:$0xff] %vm371_vm0, %v507_v45 }
 0x150   :  { %v455_v46 = vpop.permute.xlu1 %454 }
 0x151   :  { %477 = vst.msk [vmem:[#allocation2 + $0xc8] sm:$0xff] %vm371_vm0, %v455_v46  ;;  %v391_v42 = vpop.permute.xlu0 %390 }
 0x152   :  { %v509_v53 = vpop.permute.xlu2 %508  ;;  %413 = vst.msk [vmem:[#allocation2 + $0x48] sm:$0xff] %vm371_vm0, %v391_v42 }
 0x153   :  { %528 = vst.msk [vmem:[#allocation2 + $0x160] sm:$0xff] %vm371_vm0, %v509_v53 }
 0x158   :  { %v399_v56 = vpop.permute.xlu1 %398 }
 0x159   :  { %417 = vst.msk [vmem:[#allocation2 + $0x68] sm:$0xff] %vm371_vm0, %v399_v56  ;;  %v393_v59 = vpop.permute.xlu0 %392 }
 0x15a   :  { %v511_v61 = vpop.permute.xlu2 %510  ;;  %414 = vst.msk [vmem:[#allocation2 + $0x50] sm:$0xff] %vm371_vm0, %v393_v59  ;;  %v608_v53 = vld [vmem:[#allocation2 + $0x160] sm:$0xff] }
 0x15b   :  { %529 = vst.msk [vmem:[#allocation2 + $0x168] sm:$0xff] %vm371_vm0, %v511_v61 }
 0x160   :  { %v463_v60 = vpop.permute.xlu1 %462 }
 0x161   :  { %481 = vst.msk [vmem:[#allocation2 + $0xe8] sm:$0xff] %vm371_vm0, %v463_v60  ;;  %v401_v63 = vpop.permute.xlu0 %400  ;;  %v607_v60 = vld [vmem:[#allocation2 + $0x158] sm:$0xff] }
 0x162   :  { %v513_v62 = vpop.permute.xlu2 %512  ;;  %418 = vst.msk [vmem:[#allocation2 + $0x70] sm:$0xff] %vm371_vm0, %v401_v63  ;;  %v609_v46 = vld [vmem:[#allocation2 + $0x168] sm:$0xff] }
 0x163   :  { %530 = vst.msk [vmem:[#allocation2 + $0x170] sm:$0xff] %vm371_vm0, %v513_v62  ;;  %v606_v62 = vld [vmem:[#allocation2 + $0x150] sm:$0xff] }
 0x168   :  { %v457_v54 = vpop.permute.xlu1 %456 }
 0x169   :  { %478 = vst.msk [vmem:[#allocation2 + $0xd0] sm:$0xff] %vm371_vm0, %v457_v54  ;;  %v395_v58 = vpop.permute.xlu0 %394  ;;  %v578_v63 = vld [vmem:[#allocation2 + $0x70] sm:$0xff]  ;;  %v577_v54 = vld [vmem:[#allocation2 + $0x68] sm:$0xff] }
 0x16a   :  { %v515_v57 = vpop.permute.xlu2 %514  ;;  %415 = vst.msk [vmem:[#allocation2 + $0x58] sm:$0xff] %vm371_vm0, %v395_v58  ;;  %v610_v45 = vld [vmem:[#allocation2 + $0x170] sm:$0xff]  ;;  %v576_v58 = vld [vmem:[#allocation2 + $0x60] sm:$0xff] }
 0x16b   :  { %531 = vst.msk [vmem:[#allocation2 + $0x178] sm:$0xff] %vm371_vm0, %v515_v57 }
 0x170   :  { %v459_v49 = vpop.permute.xlu1 %458 }
 0x171   :  { %479 = vst.msk [vmem:[#allocation2 + $0xd8] sm:$0xff] %vm371_vm0, %v459_v49  ;;  %v403_v50 = vpop.permute.xlu0 %402 }
 0x172   :  { %v435_v55 = vpop.permute.xlu2 %434  ;;  %419 = vst.msk [vmem:[#allocation2 + $0x78] sm:$0xff] %vm371_vm0, %v403_v50  ;;  %v611_v52 = vld [vmem:[#allocation2 + $0x178] sm:$0xff] }
 0x173   :  { %451 = vst.msk [vmem:[#allocation2 + $0xb8] sm:$0xff] %vm371_vm0, %v435_v55  ;;  %775 = vmatpush.msrb.mxu0 %v611_v52  ;;  %v575_v55 = vld [vmem:[#allocation2 + $0x58] sm:$0xff] }
 0x175   :  { %776 = vmatpush.msrb.mxu0 %v610_v45  ;;  %v594_v45 = vld [vmem:[#allocation2 + $0xf0] sm:$0xff] }
 0x177   :  { %777 = vmatpush.msrb.mxu0 %v609_v46  ;;  %v574_v46 = vld [vmem:[#allocation2 + $0x50] sm:$0xff] }
 0x178   :  { %v467_v42 = vpop.permute.xlu1 %466 }
 0x179   :  { %483 = vst.msk [vmem:[#allocation2 + $0xf8] sm:$0xff] %vm371_vm0, %v467_v42  ;;  %778 = vmatpush.msrb.mxu0 %v608_v53  ;;  %v453_v56 = vpop.permute.xlu0 %452  ;;  %v579_v59 = vld [vmem:[#allocation2 + $0x78] sm:$0xff]  ;;  %v593_v42 = vld [vmem:[#allocation2 + $0xe8] sm:$0xff] }
 0x17a   :  { %v431_v61 = vpop.permute.xlu2 %430  ;;  %476 = vst.msk [vmem:[#allocation2 + $0xc0] sm:$0xff] %vm371_vm0, %v453_v56  ;;  %693 = vmatpush.msra.mxu2 %v579_v59  ;;  %v573_v53 = vld [vmem:[#allocation2 + $0x48] sm:$0xff]  ;;  %v592_v56 = vld [vmem:[#allocation2 + $0xe0] sm:$0xff] }
 0x17b   :  { %449 = vst.msk [vmem:[#allocation2 + $0xa8] sm:$0xff] %vm371_vm0, %v431_v61  ;;  %779 = vmatpush.msrb.mxu0 %v607_v60  ;;  %v572_v59 = vld [vmem:[#allocation2 + $0x40] sm:$0xff]  ;;  %v591_v60 = vld [vmem:[#allocation2 + $0xd8] sm:$0xff] }
 0x17c   :  { %694 = vmatpush.msra.mxu2 %v578_v63 }
 0x17d   :  { %780 = vmatpush.msrb.mxu0 %v606_v62 }
 0x17e   :  { %695 = vmatpush.msra.mxu2 %v577_v54  ;;  %v571_v54 = vld [vmem:[#allocation2 + $0x38] sm:$0xff] }
 0x180   :  { %v503_v57 = vpop.permute.xlu1 %502  ;;  %696 = vmatpush.msra.mxu2 %v576_v58  ;;  %v595_v49 = vld [vmem:[#allocation2 + $0xf8] sm:$0xff] }
 0x181   :  { %525 = vst.msk [vmem:[#allocation2 + $0x148] sm:$0xff] %vm371_vm0, %v503_v57  ;;  %734 = vmatpush.msrb.mxu3 %v595_v49  ;;  %v501_v50 = vpop.permute.xlu0 %500  ;;  %v590_v49 = vld [vmem:[#allocation2 + $0xd0] sm:$0xff] }
 0x182   :  { %v425_v52 = vpop.permute.xlu2 %424  ;;  %524 = vst.msk [vmem:[#allocation2 + $0x140] sm:$0xff] %vm371_vm0, %v501_v50  ;;  %697 = vmatpush.msra.mxu2 %v575_v55  ;;  %v570_v50 = vld [vmem:[#allocation2 + $0x30] sm:$0xff]  ;;  %v589_v55 = vld [vmem:[#allocation2 + $0xc8] sm:$0xff] }
 0x183   :  { %446 = vst.msk [vmem:[#allocation2 + $0x90] sm:$0xff] %vm371_vm0, %v425_v52  ;;  %735 = vmatpush.msrb.mxu3 %v594_v45  ;;  %v603_v52 = vld [vmem:[#allocation2 + $0x138] sm:$0xff]  ;;  %v569_v45 = vld [vmem:[#allocation2 + $0x28] sm:$0xff] }
 0x184   :  { %698 = vmatpush.msra.mxu2 %v574_v46  ;;  %v588_v46 = vld [vmem:[#allocation2 + $0xc0] sm:$0xff] }
 0x185   :  { %736 = vmatpush.msrb.mxu3 %v593_v42  ;;  %v602_v42 = vld [vmem:[#allocation2 + $0x130] sm:$0xff] }
 0x186   :  { %699 = vmatpush.msra.mxu2 %v573_v53  ;;  %v568_v53 = vld [vmem:[#allocation2 + $0x20] sm:$0xff] }
 0x187   :  { %737 = vmatpush.msrb.mxu3 %v592_v56 }
 0x188   :  { %v433_v61 = vpop.permute.xlu1 %432  ;;  %700 = vmatpush.msra.mxu2 %v572_v59  ;;  %v605_v63 = vld [vmem:[#allocation2 + $0x148] sm:$0xff]  ;;  %v587_v59 = vld [vmem:[#allocation2 + $0xb8] sm:$0xff] }
 0x189   :  { %450 = vst.msk [vmem:[#allocation2 + $0xb0] sm:$0xff] %vm371_vm0, %v433_v61  ;;  %738 = vmatpush.msrb.mxu3 %v591_v60  ;;  %781 = vmatpush.msrb.mxu0 %v605_v63  ;;  %v429_v62 = vpop.permute.xlu0 %428  ;;  %v604_v58 = vld [vmem:[#allocation2 + $0x140] sm:$0xff]  ;;  %v601_v61 = vld [vmem:[#allocation2 + $0x128] sm:$0xff]  ;;  %v567_v63 = vld [vmem:[#allocation2 + $0x18] sm:$0xff] }
 0x18a   :  { %v547_v57 = vpop.permute.xlu2 %546  ;;  %448 = vst.msk [vmem:[#allocation2 + $0xa0] sm:$0xff] %vm371_vm0, %v429_v62  ;;  %701 = vmatpush.msra.mxu2 %v571_v54 }
 0x18b   :  { %563 = vst.msk [vmem:[#allocation2 + $0x1b8] sm:$0xff] %vm371_vm0, %v547_v57  ;;  %739 = vmatpush.msrb.mxu3 %v590_v49  ;;  %782 = vmatpush.msrb.mxu0 %v604_v58  ;;  %v600_v58 = vld [vmem:[#allocation2 + $0x120] sm:$0xff]  ;;  %v566_v49 = vld [vmem:[#allocation2 + $0x10] sm:$0xff] }
 0x18c   :  { %702 = vmatpush.msra.mxu2 %v570_v50  ;;  %v585_v50 = vld [vmem:[#allocation2 + $0xa8] sm:$0xff] }
 0x18d   :  { %740 = vmatpush.msrb.mxu3 %v589_v55  ;;  %783 = vmatpush.msrb.mxu0 %v603_v52  ;;  %v599_v55 = vld [vmem:[#allocation2 + $0x118] sm:$0xff]  ;;  %v565_v52 = vld [vmem:[#allocation2 + $0x8] sm:$0xff] }
 0x18e   :  { %703 = vmatpush.msra.mxu2 %v569_v45  ;;  %v620_v45 = vld [vmem:[%s3752_s3] sm:$0xff] }
 0x18f   :  { %741 = vmatpush.msrb.mxu3 %v588_v46  ;;  %784 = vmatpush.msrb.mxu0 %v602_v42  ;;  %v598_v42 = vld [vmem:[#allocation2 + $0x110] sm:$0xff] }
 0x190   :  { %v427_v56 = vpop.permute.xlu1 %426  ;;  %704 = vmatpush.msra.mxu2 %v568_v53  ;;  %v586_v54 = vld [vmem:[#allocation2 + $0xb0] sm:$0xff]  ;;  %v3763_v53 = vmov 0  }
 0x191   :  { %447 = vst.msk [vmem:[#allocation2 + $0x98] sm:$0xff] %vm371_vm0, %v427_v56  ;;  %742 = vmatpush.msrb.mxu3 %v587_v59  ;;  %785 = vmatpush.msrb.mxu0 %v601_v61  ;;  %v423_v60 = vpop.permute.xlu0 %422  ;;  %v584_v46 = vld [vmem:[#allocation2 + $0xa0] sm:$0xff] }
 0x192   :  { %v541_v62 = vpop.permute.xlu2 %540  ;;  %445 = vst.msk [vmem:[#allocation2 + $0x88] sm:$0xff] %vm371_vm0, %v423_v60  ;;  %705 = vmatpush.msra.mxu2 %v567_v63  ;;  %v619_v57 = vld [vmem:[#allocation2 + $0x1b8] sm:$0xff]  ;;  %2446 = vset.pattern.permute.xlu1 %v3763_v53  ;;  %v564_v56 = vld [vmem:[#allocation2] sm:$0xff]  ;;  %v597_v63 = vld [vmem:[#allocation2 + $0x108] sm:$0xff] }
 0x193   :  { %560 = vst.msk [vmem:[#allocation2 + $0x1a0] sm:$0xff] %vm371_vm0, %v541_v62  ;;  %743 = vmatpush.msrb.mxu3 %v586_v54  ;;  %786 = vmatpush.msrb.mxu0 %v600_v58  ;;  %v339_v59 = vld [vmem:[%s3751_s2] sm:$0xff]  ;;  %v341_v54 = vld [vmem:[%s3751_s2 + $0x10] sm:$0xff] }
 0x194   :  { %2418 = vmatpush.msrb.mxu1 %v619_v57  ;;  %706 = vmatpush.msra.mxu2 %v566_v49  ;;  %v582_v49 = vld [vmem:[#allocation2 + $0x90] sm:$0xff] }
 0x195   :  { %744 = vmatpush.msrb.mxu3 %v585_v50  ;;  %787 = vmatpush.msrb.mxu0 %v599_v55  ;;  %v596_v50 = vld [vmem:[#allocation2 + $0x100] sm:$0xff] }
 0x196   :  { %707 = vmatpush.msra.mxu2 %v565_v52  ;;  %630 = vperm.xlu1 %2446, %v620_v45  }
 0x197   :  { %745 = vmatpush.msrb.mxu3 %v584_v46  ;;  %788 = vmatpush.msrb.mxu0 %v598_v42  ;;  %v340_v46 = vld [vmem:[%s3751_s2 + $0x8] sm:$0xff]  ;;  %v343_v42 = vld [vmem:[%s3751_s2 + $0x20] sm:$0xff] }
 0x198   :  { %v421_v61 = vpop.permute.xlu1 %420  ;;  %708 = vmatpush.msra.mxu2 %v564_v56  ;;  %v583_v60 = vld [vmem:[#allocation2 + $0x98] sm:$0xff]  ;;  %2448 = vset.pattern.permute.xlu0 %v3763_v53 }
 0x199   :  { %444 = vst.msk [vmem:[#allocation2 + $0x80] sm:$0xff] %vm371_vm0, %v421_v61  ;;  %746 = vmatpush.msrb.mxu3 %v583_v60  ;;  %789 = vmatpush.msrb.mxu0 %v597_v63  ;;  %v545_v62 = vpop.permute.xlu0 %544  ;;  %v581_v55 = vld [vmem:[#allocation2 + $0x88] sm:$0xff]  ;;  %v622_v61 = vld [vmem:[%s3752_s3 + $0x10] sm:$0xff] }
 0x19a   :  { %v535_v58 = vpop.permute.xlu2 %534  ;;  %562 = vst.msk [vmem:[#allocation2 + $0x1b0] sm:$0xff] %vm371_vm0, %v545_v62  ;;  %709 = vmatmul.f32.vlgmr.msra.gmra.mxu2 %v339_v59  ;;  %2447 = vset.pattern.permute.xlu2 %v3763_v53 }
 0x19b   :  { %557 = vst.msk [vmem:[#allocation2 + $0x188] sm:$0xff] %vm371_vm0, %v535_v58  ;;  %747 = vmatpush.msrb.mxu3 %v582_v49  ;;  %790 = vmatpush.msrb.mxu0 %v596_v50  ;;  %v344_v58 = vld [vmem:[%s3751_s2 + $0x28] sm:$0xff]  ;;  %v616_v49 = vld [vmem:[#allocation2 + $0x1a0] sm:$0xff] }
 0x19c   :  { %791 = vmatmul.f32.vlgmr.msrb.gmra.mxu0 %v341_v54  ;;  %640 = vperm.xlu0 %2448, %v622_v61   ;;  %v349_v54 = vld [vmem:[%s3751_s2 + $0x50] sm:$0xff]  ;;  %v347_v50 = vld [vmem:[%s3751_s2 + $0x40] sm:$0xff] }
 0x19d   :  { %824 = vmatpush.msra.mxu0 %v619_v57  ;;  %748 = vmatpush.msrb.mxu3 %v581_v55  ;;  %v345_v57 = vld [vmem:[%s3751_s2 + $0x30] sm:$0xff] }
 0x1a0   :  { %v543_v52 = vpop.permute.xlu1 %542  ;;  %v580_v45 = vld [vmem:[#allocation2 + $0x80] sm:$0xff] }
 0x1a1   :  { %561 = vst.msk [vmem:[#allocation2 + $0x1a8] sm:$0xff] %vm371_vm0, %v543_v52  ;;  %749 = vmatpush.msrb.mxu3 %v580_v45  ;;  %v539_v56 = vpop.permute.xlu0 %538  ;;  %v618_v59 = vld [vmem:[#allocation2 + $0x1b0] sm:$0xff]  ;;  %v623_v52 = vld [vmem:[%s3752_s3 + $0x18] sm:$0xff] }
 0x1a2   :  { %559 = vst.msk [vmem:[#allocation2 + $0x198] sm:$0xff] %vm371_vm0, %v539_v56  ;;  %825 = vmatpush.msra.mxu0 %v618_v59  ;;  %2419 = vmatpush.msrb.mxu1 %v618_v59  ;;  %v613_v56 = vld [vmem:[#allocation2 + $0x188] sm:$0xff]  ;;  %v346_v59 = vld [vmem:[%s3751_s2 + $0x38] sm:$0xff] }
 0x1a3   :  { %750 = vmatmul.f32.vlgmr.msrb.gmra.mxu3 %v340_v46  ;;  %712 = vmatmul.f32.gmra.mxu2 %v343_v42  ;;  %v353_v46 = vld [vmem:[%s3751_s2 + $0x70] sm:$0xff]  ;;  %v348_v42 = vld [vmem:[%s3751_s2 + $0x48] sm:$0xff] }
 0x1a4   :  { %794 = vmatmul.f32.gmra.mxu0 %v345_v57  ;;  %645 = vperm.xlu1 %2446, %v623_v52   ;;  %v351_v57 = vld [vmem:[%s3751_s2 + $0x60] sm:$0xff]  ;;  %v354_v52 = vld [vmem:[%s3751_s2 + $0x78] sm:$0xff] }
 0x1a8   :  { %v537_v60 = vpop.permute.xlu1 %536  ;;  %v617_v63 = vld [vmem:[#allocation2 + $0x1a8] sm:$0xff] }
 0x1a9   :  { %558 = vst.msk [vmem:[#allocation2 + $0x190] sm:$0xff] %vm371_vm0, %v537_v60  ;;  %826 = vmatpush.msra.mxu0 %v617_v63  ;;  %2420 = vmatpush.msrb.mxu1 %v617_v63  ;;  %v533_v62 = vpop.permute.xlu0 %532  ;;  %v615_v55 = vld [vmem:[#allocation2 + $0x198] sm:$0xff]  ;;  %v621_v60 = vld [vmem:[%s3752_s3 + $0x8] sm:$0xff]  ;;  %v357_v63 = vld [vmem:[%s3751_s2 + $0x90] sm:$0xff] }
 0x1aa   :  { %556 = vst.msk [vmem:[#allocation2 + $0x180] sm:$0xff] %vm371_vm0, %v533_v62  ;;  %635 = vperm.xlu2 %2447, %v621_v60   ;;  %v352_v62 = vld [vmem:[%s3751_s2 + $0x68] sm:$0xff]  ;;  %v626_v60 = vld [vmem:[%s3752_s3 + $0x30] sm:$0xff] }
 0x1ab   :  { %827 = vmatpush.msra.mxu0 %v616_v49  ;;  %2421 = vmatpush.msrb.mxu1 %v616_v49  ;;  %v625_v49 = vld [vmem:[%s3752_s3 + $0x28] sm:$0xff] }
 0x1ac   :  { %797 = vmatmul.f32.gmra.mxu0 %v349_v54  ;;  %753 = vmatmul.f32.gmra.mxu3 %v344_v58  ;;  %v350_v54 = vld [vmem:[%s3751_s2 + $0x58] sm:$0xff]  ;;  %v355_v58 = vld [vmem:[%s3751_s2 + $0x80] sm:$0xff] }
 0x1ad   :  { %828 = vmatpush.msra.mxu0 %v615_v55  ;;  %2422 = vmatpush.msrb.mxu1 %v615_v55  ;;  %v356_v55 = vld [vmem:[%s3751_s2 + $0x88] sm:$0xff] }
 0x1ae   :  { %715 = vmatmul.f32.gmra.mxu2 %v347_v50  ;;  %655 = vperm.xlu1 %2446, %v625_v49   ;;  %v361_v50 = vld [vmem:[%s3751_s2 + $0xb0] sm:$0xff]  ;;  %v342_v49 = vld [vmem:[%s3751_s2 + $0x18] sm:$0xff] }
 0x1b0   :  { %v614_v45 = vld [vmem:[#allocation2 + $0x190] sm:$0xff] }
 0x1b1   :  { %829 = vmatpush.msra.mxu0 %v614_v45  ;;  %2423 = vmatpush.msrb.mxu1 %v614_v45  ;;  %v612_v61 = vld [vmem:[#allocation2 + $0x180] sm:$0xff] }
 0x1b2   :  { %v359_v45 = vld [vmem:[%s3751_s2 + $0xa0] sm:$0xff] }
 0x1b3   :  { %830 = vmatpush.msra.mxu0 %v613_v56  ;;  %2424 = vmatpush.msrb.mxu1 %v613_v56  ;;  %v365_v56 = vld [vmem:[%s3751_s2 + $0xd0] sm:$0xff] }
 0x1b4   :  { %800 = vmatmul.f32.gmra.mxu0 %v353_v46  ;;  %756 = vmatmul.f32.gmra.mxu3 %v348_v42  ;;  %v627_v46 = vld [vmem:[%s3752_s3 + $0x38] sm:$0xff]  ;;  %v624_v42 = vld [vmem:[%s3752_s3 + $0x20] sm:$0xff] }
 0x1b5   :  { %831 = vmatpush.msra.mxu0 %v612_v61  ;;  %2425 = vmatpush.msrb.mxu1 %v612_v61  ;;  %v363_v61 = vld [vmem:[%s3751_s2 + $0xc0] sm:$0xff] }
 0x1b6   :  { %2333 = vmatmul.msk.f32.vlgmr.msrb.gmra.mxu1 %vm668_vm1, %v346_v59  ;;  %718 = vmatmul.f32.gmra.mxu2 %v351_v57  ;;  %v360_v59 = vld [vmem:[%s3751_s2 + $0xa8] sm:$0xff]  ;;  %v358_v57 = vld [vmem:[%s3751_s2 + $0x98] sm:$0xff] }
 0x1b7   :  { %665 = vperm.xlu0 %2448, %v627_v46   ;;  %650 = vperm.xlu2 %2447, %v624_v42  }
 0x1bc   :  { %803 = vmatmul.f32.gmra.mxu0 %v357_v63  ;;  %759 = vmatmul.f32.gmra.mxu3 %v352_v62  ;;  %v369_v63 = vld [vmem:[%s3751_s2 + $0xf0] sm:$0xff]  ;;  %v364_v62 = vld [vmem:[%s3751_s2 + $0xc8] sm:$0xff] }
 0x1be   :  { %2334 = vmatmul.msk.f32.gmra.mxu1 %vm668_vm1, %v350_v54  ;;  %721 = vmatmul.f32.gmra.mxu2 %v355_v58  ;;  %v362_v54 = vld [vmem:[%s3751_s2 + $0xb8] sm:$0xff]  ;;  %v367_v58 = vld [vmem:[%s3751_s2 + $0xe0] sm:$0xff] }
 0x1bf   :  { %660 = vperm.xlu2 %2447, %v626_v60  }
 0x1c4   :  { %806 = vmatmul.f32.gmra.mxu0 %v361_v50  ;;  %762 = vmatmul.f32.gmra.mxu3 %v356_v55  ;;  %v368_v50 = vld [vmem:[%s3751_s2 + $0xe8] sm:$0xff]  ;;  %v366_v55 = vld [vmem:[%s3751_s2 + $0xd8] sm:$0xff] }
 0x1c6   :  { %2335 = vmatmul.msk.f32.gmra.mxu1 %vm668_vm1, %v354_v52  ;;  %724 = vmatmul.f32.gmra.mxu2 %v359_v45  ;;  %v370_v52 = vld [vmem:[%s3751_s2 + $0xf8] sm:$0xff] }
 0x1cc   :  { %809 = vmatmul.f32.gmra.mxu0 %v365_v56  ;;  %765 = vmatmul.f32.gmra.mxu3 %v360_v59 }
 0x1ce   :  { %2336 = vmatmul.msk.f32.gmra.mxu1 %vm668_vm1, %v358_v57  ;;  %727 = vmatmul.f32.gmra.mxu2 %v363_v61 }
 0x1d4   :  { %812 = vmatmul.f32.gmra.mxu0 %v369_v63  ;;  %768 = vmatmul.f32.gmra.mxu3 %v364_v62 }
 0x1d6   :  { %2337 = vmatmul.msk.f32.gmra.mxu1 %vm668_vm1, %v362_v54  ;;  %730 = vmatmul.f32.gmra.mxu2 %v367_v58 }
 0x1dc   :  { %2332 = vmatmul.msk.f32.vlgmr.msra.gmra.mxu0 %vm668_vm1, %v342_v49  ;;  %771 = vmatmul.f32.gmra.mxu3 %v368_v50 }
 0x1de   :  { %2338 = vmatmul.msk.f32.gmra.mxu1 %vm668_vm1, %v366_v55 }
 0x1e6   :  { %2339 = vmatmul.msk.f32.gmra.mxu1 %vm668_vm1, %v370_v52 }
 0x204   :  { %v636_v61 = vpop.permute.xlu2 %635 }
 0x208   :  { %v631_v62 = vpop.permute.xlu1 %630 }
 0x20e   :  { %v641_v58 = vpop.permute.xlu0 %640 }
 0x211   :  { %v651_v33 = vpop.permute.xlu2 %650 }
 0x216   :  { %v646_v44 = vpop.permute.xlu1 %645 }
 0x219   :  { %v792_v45 = vpop.f32.mrf.mxu0 }
 0x21d   :  { %v710_v46 = vpop.f32.mrf.mxu2 }
 0x220   :  { %v656_v36 = vpop.permute.xlu1 %655 }
 0x221   :  { %v795_v42 = vpop.f32.mrf.mxu0 }
 0x226   :  { %v751_v56 = vpop.f32.mrf.mxu3  ;;  %v713_v59 = vpop.f32.mrf.mxu2 }
 0x227   :  { %v714_v60 = vadd.f32 %v713_v59, %v636_v61 }
 0x229   :  { %v798_v57 = vpop.f32.mrf.mxu0 }
 0x22f   :  { %v754_v63 = vpop.f32.mrf.mxu3 }
 0x230   :  { %v755_v54 = vadd.f32 %v754_v63, %v714_v60 }
 0x231   :  { %v801_v49 = vpop.f32.mrf.mxu0  ;;  %v716_v50 = vpop.f32.mrf.mxu2 }
 0x232   :  { %v796_v55 = vadd.f32 %v795_v42, %v755_v54  ;;  %v717_v51 = vadd.f32 %v716_v50, %v641_v58 }
 0x233   :  { %v836_v53 = vpop.f32.mrf.mxu1 }
 0x234   :  { %v837_v48 = vadd.f32 %v836_v53, %v796_v55 }
 0x236   :  { %v3245_v41 = vmax.f32 %v837_v48, 0.0 }
 0x237   :  { %v757_v52 = vpop.f32.mrf.mxu3 }
 0x238   :  { %v758_v38 = vadd.f32 %v757_v52, %v717_v51 }
 0x239   :  { %v804_v47 = vpop.f32.mrf.mxu0  ;;  %v719_v37 = vpop.f32.mrf.mxu2 }
 0x23a   :  { %v799_v34 = vadd.f32 %v798_v57, %v758_v38  ;;  %v720_v61 = vadd.f32 %v719_v37, %v646_v44 }
 0x23b   :  { %v839_v40 = vpop.f32.mrf.mxu1 }
 0x23c   :  { %v840_v59 = vadd.f32 %v839_v40, %v799_v34 }
 0x23e   :  { %v3247_v43 = vmax.f32 %v840_v59, 0.0 }
 0x23f   :  { %v760_v60 = vpop.f32.mrf.mxu3 }
 0x240   :  { %v761_v63 = vadd.f32 %v760_v60, %v720_v61  ;;  %v711_v60 = vadd.f32 %v710_v46, %v631_v62 }
 0x241   :  { %v807_v42 = vpop.f32.mrf.mxu0  ;;  %v722_v54 = vpop.f32.mrf.mxu2 }
 0x242   :  { %v802_v53 = vadd.f32 %v801_v49, %v761_v63  ;;  %v723_v50 = vadd.f32 %v722_v54, %v651_v33  ;;  %v661_v54 = vpop.permute.xlu2 %660 }
 0x243   :  { %v842_v58 = vpop.f32.mrf.mxu1 }
 0x244   :  { %v843_v48 = vadd.f32 %v842_v58, %v802_v53  ;;  %v752_v58 = vadd.f32 %v751_v56, %v711_v60 }
 0x246   :  { %v3249_v55 = vmax.f32 %v843_v48, 0.0 }
 0x247   :  { %v763_v51 = vpop.f32.mrf.mxu3 }
 0x248   :  { %v764_v52 = vadd.f32 %v763_v51, %v723_v50 }
 0x249   :  { %v810_v38 = vpop.f32.mrf.mxu0  ;;  %v725_v57 = vpop.f32.mrf.mxu2 }
 0x24a   :  { %v805_v34 = vadd.f32 %v804_v47, %v764_v52  ;;  %v726_v44 = vadd.f32 %v725_v57, %v656_v36  ;;  %v793_v47 = vadd.f32 %v792_v45, %v752_v58 }
 0x24b   :  { %v845_v37 = vpop.f32.mrf.mxu1 }
 0x24c   :  { %v846_v40 = vadd.f32 %v845_v37, %v805_v34  ;;  %v666_v37 = vpop.permute.xlu0 %665 }
 0x24e   :  { %v3251_v59 = vmax.f32 %v846_v40, 0.0 }
 0x24f   :  { %v766_v61 = vpop.f32.mrf.mxu3 }
 0x250   :  { %v767_v39 = vadd.f32 %v766_v61, %v726_v44 }
 0x251   :  { %v813_v49 = vpop.f32.mrf.mxu0  ;;  %v728_v63 = vpop.f32.mrf.mxu2 }
 0x252   :  { %v808_v53 = vadd.f32 %v807_v42, %v767_v39  ;;  %v729_v51 = vadd.f32 %v728_v63, %v661_v54 }
 0x253   :  { %v848_v33 = vpop.f32.mrf.mxu1 }
 0x254   :  { %v849_v48 = vadd.f32 %v848_v33, %v808_v53 }
 0x256   :  { %v3253_v50 = vmax.f32 %v849_v48, 0.0 }
 0x257   :  { %v769_v32 = vpop.f32.mrf.mxu3 }
 0x258   :  { %v770_v52 = vadd.f32 %v769_v32, %v729_v51 }
 0x259   :  { %v833_v34 = vpop.f32.mrf.mxu0  ;;  %v731_v46 = vpop.f32.mrf.mxu2 }
 0x25a   :  { %v834_v36 = vadd.f32 %v833_v34, %v793_v47  ;;  %v811_v57 = vadd.f32 %v810_v38, %v770_v52  ;;  %v732_v39 = vadd.f32 %v731_v46, %v666_v37 }
 0x25b   :  { %v851_v40 = vpop.f32.mrf.mxu1 }
 0x25c   :  { %v857_v62 = vmax.f32 %v834_v36, 0.0  ;;  %v852_v44 = vadd.f32 %v851_v40, %v811_v57 }
 0x25e   :  { %v863_v61 = vmax.f32 %v852_v44, 0.0 }
 0x25f   :  { %v772_v42 = vpop.f32.mrf.mxu3 }
 0x260   :  { %v773_v35 = vadd.f32 %v772_v42, %v732_v39 }
 0x262   :  { %v814_v56 = vadd.f32 %v813_v49, %v773_v35 }
 0x263   :  { %v854_v60 = vpop.f32.mrf.mxu1 }
 0x264   :  { %v855_v53 = vadd.f32 %v854_v60, %v814_v56 }
 0x266   :  { %v864_v33 = vmax.f32 %v855_v53, 0.0 }
 0x267   :  { %2485 = dma.done.wait [#allocation5], 4096 }
 0x268   :  { %2486 = vsyncadd [#allocation5], 4294963200  ;;  %v3797_v45 = vmov 0   ;;  %v872_v32 = vld [vmem:[#allocation6 + $0x18] sm:$0xff]  ;;  %v871_v63 = vld [vmem:[#allocation6 + $0x10] sm:$0xff]  ;;  %vm1078_vm2 = vcmask 31744  }
 0x269   :  { %2449 = vset.pattern.permute.xlu0 %v3797_v45  ;;  %2450 = vset.pattern.permute.xlu1 %v3797_v45  ;;  %v942_v38 = vld [vmem:[#allocation6 + $0x38] sm:$0xff]  ;;  %v941_v54 = vld [vmem:[#allocation6 + $0x30] sm:$0xff]  ;;  %v870_v58 = vld [vmem:[#allocation6 + $0x8] sm:$0xff]  ;;  %s2496_s2 = smov 124   ;;  %s2497_s1 = smov 108  }
 0x26a   :  { %2451 = vset.pattern.permute.xlu2 %v3797_v45  ;;  %909 = vmatpush.msrb.mxu0 %v872_v32  ;;  %v940_v48 = vld [vmem:[#allocation6 + $0x28] sm:$0xff]  ;;  %v869_v35 = vld [vmem:[#allocation6] sm:$0xff]  ;;  %v996_v51 = vld [vmem:[#allocation6 + $0x58] sm:$0xff]  ;;  %s2498_s30 = smov 116   ;;  %s2499_s8 = smov 120  }
 0x26b   :  { %955 = vmatpush.msra.mxu3 %v942_v38  ;;  %2426 = vmatpush.msrb.mxu2 %v872_v32  ;;  %v939_v49 = vld [vmem:[#allocation6 + $0x20] sm:$0xff]  ;;  %v995_v47 = vld [vmem:[#allocation6 + $0x50] sm:$0xff]  ;;  %v994_v52 = vld [vmem:[#allocation6 + $0x48] sm:$0xff]  ;;  %s2500_s10 = smov 112   ;;  %s2501_s14 = smov 104  }
 0x26c   :  { %910 = vmatpush.msrb.mxu0 %v871_v63  ;;  %v993_v34 = vld [vmem:[#allocation6 + $0x40] sm:$0xff] }
 0x26d   :  { %956 = vmatpush.msra.mxu3 %v941_v54  ;;  %2427 = vmatpush.msrb.mxu2 %v871_v63 }
 0x26e   :  { %911 = vmatpush.msrb.mxu0 %v870_v58 }
 0x26f   :  { %957 = vmatpush.msra.mxu3 %v940_v48  ;;  %2428 = vmatpush.msrb.mxu2 %v870_v58 }
 0x270   :  { %912 = vmatpush.msrb.mxu0 %v869_v35 }
 0x271   :  { %958 = vmatpush.msra.mxu3 %v939_v49  ;;  %2340 = vmatmul.msk.f32.vlgmr.msrb.gmra.mxu0 %vm371_vm0, %v857_v62 }
 0x272   :  { %2348 = vmatmul.msk.f32.vlgmr.msra.gmra.mxu3 %vm371_vm0, %v857_v62  ;;  %1009 = vmatpush.msra.mxu0 %v996_v51 }
 0x273   :  { %2429 = vmatpush.msrb.mxu2 %v869_v35 }
 0x274   :  { %2341 = vmatmul.msk.f32.vlgmr.msrb.gmra.mxu2 %vm371_vm0, %v3245_v41  ;;  %1010 = vmatpush.msra.mxu0 %v995_v47 }
 0x276   :  { %1011 = vmatpush.msra.mxu0 %v994_v52 }
 0x278   :  { %1012 = vmatpush.msra.mxu0 %v993_v34 }
 0x279   :  { %2356 = vmatmul.msk.f32.vlgmr.msra.gmra.mxu0 %vm371_vm0, %v857_v62 }
 0x27a   :  { %2349 = vmatmul.msk.f32.gmra.mxu3 %vm371_vm0, %v3245_v41 }
 0x27c   :  { %2342 = vmatmul.msk.f32.gmra.mxu2 %vm371_vm0, %v3247_v43 }
 0x281   :  { %2357 = vmatmul.msk.f32.gmra.mxu0 %vm371_vm0, %v3245_v41 }
 0x282   :  { %2350 = vmatmul.msk.f32.gmra.mxu3 %vm371_vm0, %v3247_v43 }
 0x284   :  { %2343 = vmatmul.msk.f32.gmra.mxu2 %vm371_vm0, %v3249_v55 }
 0x289   :  { %2358 = vmatmul.msk.f32.gmra.mxu0 %vm371_vm0, %v3247_v43 }
 0x28a   :  { %2351 = vmatmul.msk.f32.gmra.mxu3 %vm371_vm0, %v3249_v55 }
 0x28c   :  { %2344 = vmatmul.msk.f32.gmra.mxu2 %vm371_vm0, %v3251_v59 }
 0x291   :  { %2359 = vmatmul.msk.f32.gmra.mxu0 %vm371_vm0, %v3249_v55 }
 0x292   :  { %2352 = vmatmul.msk.f32.gmra.mxu3 %vm371_vm0, %v3251_v59 }
 0x294   :  { %2345 = vmatmul.msk.f32.gmra.mxu2 %vm371_vm0, %v3253_v50 }
 0x299   :  { %2360 = vmatmul.msk.f32.gmra.mxu0 %vm371_vm0, %v3251_v59 }
 0x29a   :  { %2353 = vmatmul.msk.f32.gmra.mxu3 %vm371_vm0, %v3253_v50 }
 0x29c   :  { %2346 = vmatmul.msk.f32.gmra.mxu2 %vm371_vm0, %v863_v61 }
 0x2a1   :  { %2361 = vmatmul.msk.f32.gmra.mxu0 %vm371_vm0, %v3253_v50 }
 0x2a2   :  { %2354 = vmatmul.msk.f32.gmra.mxu3 %vm371_vm0, %v863_v61 }
 0x2a4   :  { %2347 = vmatmul.msk.f32.gmra.mxu2 %vm371_vm0, %v864_v33 }
 0x2a9   :  { %2362 = vmatmul.msk.f32.gmra.mxu0 %vm371_vm0, %v863_v61 }
 0x2aa   :  { %2355 = vmatmul.msk.f32.gmra.mxu3 %vm371_vm0, %v864_v33 }
 0x2b1   :  { %2363 = vmatmul.msk.f32.gmra.mxu0 %vm371_vm0, %v864_v33 }
 0x2ee   :  { %v914_v41 = vpop.f32.mrf.mxu0 }
 0x2f5   :  { %v960_v43 = vpop.f32.mrf.mxu3 }
 0x2f6   :  { %v984_v55 = vmax.f32 %v914_v41, %v960_v43  ;;  %v1014_v36 = vpop.f32.mrf.mxu0 }
 0x2f7   :  { %v917_v59 = vpop.f32.mrf.mxu2 }
 0x2f8   :  { %v3297_v57 = vmax.f32 %v984_v55, %v1014_v36 }
 0x2fa   :  { %1079 = vst.msk [vmem:[#allocation2] sm:$0xff] %vm1078_vm2, %v3297_v57  ;;  %1095 = vrot.lane.b32.xlu0 %v3297_v57, %s2496_s2  ;;  %1223 = vrot.lane.b32.xlu2 %v3297_v57, %s2497_s1 }
 0x2fb   :  { %1159 = vrot.lane.b32.xlu1 %v3297_v57, %s2498_s30 }
 0x2fd   :  { %v963_v50 = vpop.f32.mrf.mxu3 }
 0x2fe   :  { %v985_v37 = vmax.f32 %v917_v59, %v963_v50  ;;  %v1017_v40 = vpop.f32.mrf.mxu0 }
 0x2ff   :  { %v920_v46 = vpop.f32.mrf.mxu2 }
 0x300   :  { %v3307_v62 = vmax.f32 %v985_v37, %v1017_v40 }
 0x302   :  { %1080 = vst.msk [vmem:[#allocation2 + $0x8] sm:$0xff] %vm1078_vm2, %v3307_v62  ;;  %1097 = vrot.lane.b32.xlu0 %v3307_v62, %s2496_s2  ;;  %1225 = vrot.lane.b32.xlu2 %v3307_v62, %s2497_s1 }
 0x303   :  { %1161 = vrot.lane.b32.xlu1 %v3307_v62, %s2498_s30 }
 0x305   :  { %v966_v44 = vpop.f32.mrf.mxu3 }
 0x306   :  { %v986_v61 = vmax.f32 %v920_v46, %v966_v44  ;;  %v1020_v39 = vpop.f32.mrf.mxu0 }
 0x307   :  { %v923_v42 = vpop.f32.mrf.mxu2 }
 0x308   :  { %v3317_v56 = vmax.f32 %v986_v61, %v1020_v39 }
 0x30a   :  { %1081 = vst.msk [vmem:[#allocation2 + $0x10] sm:$0xff] %vm1078_vm2, %v3317_v56  ;;  %1099 = vrot.lane.b32.xlu0 %v3317_v56, %s2496_s2  ;;  %1227 = vrot.lane.b32.xlu2 %v3317_v56, %s2497_s1 }
 0x30b   :  { %1163 = vrot.lane.b32.xlu1 %v3317_v56, %s2498_s30 }
 0x30d   :  { %v969_v60 = vpop.f32.mrf.mxu3 }
 0x30e   :  { %v987_v53 = vmax.f32 %v923_v42, %v969_v60  ;;  %v1023_v33 = vpop.f32.mrf.mxu0 }
 0x30f   :  { %v926_v32 = vpop.f32.mrf.mxu2 }
 0x310   :  { %v3327_v38 = vmax.f32 %v987_v53, %v1023_v33 }
 0x312   :  { %1082 = vst.msk [vmem:[#allocation2 + $0x18] sm:$0xff] %vm1078_vm2, %v3327_v38  ;;  %1101 = vrot.lane.b32.xlu0 %v3327_v38, %s2496_s2  ;;  %1229 = vrot.lane.b32.xlu2 %v3327_v38, %s2497_s1 }
 0x313   :  { %1165 = vrot.lane.b32.xlu1 %v3327_v38, %s2498_s30 }
 0x315   :  { %v972_v63 = vpop.f32.mrf.mxu3 }
 0x316   :  { %v988_v54 = vmax.f32 %v926_v32, %v972_v63  ;;  %v1026_v58 = vpop.f32.mrf.mxu0 }
 0x317   :  { %v929_v35 = vpop.f32.mrf.mxu2 }
 0x318   :  { %v1042_v48 = vmax.f32 %v988_v54, %v1026_v58 }
 0x31a   :  { %1083 = vst.msk [vmem:[#allocation2 + $0x20] sm:$0xff] %vm1078_vm2, %v1042_v48  ;;  %1103 = vrot.lane.b32.xlu0 %v1042_v48, %s2496_s2  ;;  %1231 = vrot.lane.b32.xlu2 %v1042_v48, %s2497_s1 }
 0x31b   :  { %1133 = vrot.lane.b32.xlu1 %v3327_v38, %s2499_s8 }
 0x31d   :  { %v975_v49 = vpop.f32.mrf.mxu3 }
 0x31e   :  { %v989_v51 = vmax.f32 %v929_v35, %v975_v49  ;;  %v1029_v47 = vpop.f32.mrf.mxu0 }
 0x31f   :  { %v932_v34 = vpop.f32.mrf.mxu2 }
 0x320   :  { %v1043_v52 = vmax.f32 %v989_v51, %v1029_v47 }
 0x322   :  { %1084 = vst.msk [vmem:[#allocation2 + $0x28] sm:$0xff] %vm1078_vm2, %v1043_v52  ;;  %1105 = vrot.lane.b32.xlu0 %v1043_v52, %s2496_s2  ;;  %1135 = vrot.lane.b32.xlu2 %v1042_v48, %s2499_s8 }
 0x323   :  { %1167 = vrot.lane.b32.xlu1 %v1042_v48, %s2498_s30 }
 0x325   :  { %v978_v41 = vpop.f32.mrf.mxu3 }
 0x326   :  { %v990_v43 = vmax.f32 %v932_v34, %v978_v41  ;;  %v1032_v55 = vpop.f32.mrf.mxu0 }
 0x327   :  { %v935_v59 = vpop.f32.mrf.mxu2 }
 0x328   :  { %v1044_v36 = vmax.f32 %v990_v43, %v1032_v55 }
 0x32a   :  { %1085 = vst.msk [vmem:[#allocation2 + $0x30] sm:$0xff] %vm1078_vm2, %v1044_v36  ;;  %1137 = vrot.lane.b32.xlu0 %v1043_v52, %s2499_s8  ;;  %1199 = vrot.lane.b32.xlu2 %v1042_v48, %s2500_s10 }
 0x32b   :  { %1139 = vrot.lane.b32.xlu1 %v1044_v36, %s2499_s8 }
 0x32d   :  { %v981_v50 = vpop.f32.mrf.mxu3 }
 0x32e   :  { %v991_v37 = vmax.f32 %v935_v59, %v981_v50  ;;  %v1035_v40 = vpop.f32.mrf.mxu0 }
 0x330   :  { %v1045_v46 = vmax.f32 %v991_v37, %v1035_v40 }
 0x332   :  { %1201 = vrot.lane.b32.xlu0 %v1043_v52, %s2500_s10  ;;  %1169 = vrot.lane.b32.xlu2 %v1043_v52, %s2498_s30  ;;  %1086 = vst.msk [vmem:[#allocation2 + $0x38] sm:$0xff] %vm1078_vm2, %v1045_v46 }
 0x333   :  { %1203 = vrot.lane.b32.xlu1 %v1044_v36, %s2500_s10 }
 0x33a   :  { %1171 = vrot.lane.b32.xlu0 %v1044_v36, %s2498_s30  ;;  %1233 = vrot.lane.b32.xlu2 %v1043_v52, %s2497_s1 }
 0x33b   :  { %1197 = vrot.lane.b32.xlu1 %v3327_v38, %s2500_s10 }
 0x342   :  { %1107 = vrot.lane.b32.xlu0 %v1044_v36, %s2496_s2  ;;  %1235 = vrot.lane.b32.xlu2 %v1044_v36, %s2497_s1 }
 0x343   :  { %1237 = vrot.lane.b32.xlu1 %v1045_v46, %s2497_s1 }
 0x34a   :  { %1173 = vrot.lane.b32.xlu0 %v1045_v46, %s2498_s30  ;;  %1267 = vrot.lane.b32.xlu2 %v1044_v36, %s2501_s14 }
 0x34b   :  { %1109 = vrot.lane.b32.xlu1 %v1045_v46, %s2496_s2 }
 0x352   :  { %1131 = vrot.lane.b32.xlu0 %v3317_v56, %s2499_s8  ;;  %1265 = vrot.lane.b32.xlu2 %v1043_v52, %s2501_s14 }
 0x353   :  { %1195 = vrot.lane.b32.xlu1 %v3317_v56, %s2500_s10 }
 0x354   :  { %v1224_v44 = vpop.permute.xlu2 %1223 }
 0x355   :  { %1247 = vst.msk [vmem:[#allocation2 + $0x140] sm:$0xff] %vm1078_vm2, %v1224_v44 }
 0x35a   :  { %1129 = vrot.lane.b32.xlu0 %v3307_v62, %s2499_s8  ;;  %1205 = vrot.lane.b32.xlu2 %v1045_v46, %s2500_s10 }
 0x35b   :  { %1141 = vrot.lane.b32.xlu1 %v1045_v46, %s2499_s8 }
 0x35c   :  { %v1226_v61 = vpop.permute.xlu2 %1225 }
 0x35d   :  { %1248 = vst.msk [vmem:[#allocation2 + $0x148] sm:$0xff] %vm1078_vm2, %v1226_v61 }
 0x362   :  { %1127 = vrot.lane.b32.xlu0 %v3297_v57, %s2499_s8  ;;  %1269 = vrot.lane.b32.xlu2 %v1045_v46, %s2501_s14 }
 0x363   :  { %1193 = vrot.lane.b32.xlu1 %v3307_v62, %s2500_s10 }
 0x364   :  { %v1228_v39 = vpop.permute.xlu2 %1227 }
 0x365   :  { %1249 = vst.msk [vmem:[#allocation2 + $0x150] sm:$0xff] %vm1078_vm2, %v1228_v39 }
 0x36a   :  { %1191 = vrot.lane.b32.xlu0 %v3297_v57, %s2500_s10  ;;  %1261 = vrot.lane.b32.xlu2 %v3327_v38, %s2501_s14 }
 0x36b   :  { %1263 = vrot.lane.b32.xlu1 %v1042_v48, %s2501_s14 }
 0x36c   :  { %v1096_v42 = vpop.permute.xlu0 %1095  ;;  %v1230_v60 = vpop.permute.xlu2 %1229 }
 0x36d   :  { %1119 = vst.msk [vmem:[#allocation2 + $0x40] sm:$0xff] %vm1078_vm2, %v1096_v42  ;;  %v1160_v53 = vpop.permute.xlu1 %1159 }
 0x36e   :  { %1250 = vst.msk [vmem:[#allocation2 + $0x158] sm:$0xff] %vm1078_vm2, %v1230_v60 }
 0x36f   :  { %1183 = vst.msk [vmem:[#allocation2 + $0xc0] sm:$0xff] %vm1078_vm2, %v1160_v53 }
 0x372   :  { %1259 = vrot.lane.b32.xlu0 %v3317_v56, %s2501_s14  ;;  %1255 = vrot.lane.b32.xlu2 %v3297_v57, %s2501_s14 }
 0x373   :  { %1257 = vrot.lane.b32.xlu1 %v3307_v62, %s2501_s14 }
 0x374   :  { %v1098_v33 = vpop.permute.xlu0 %1097  ;;  %v1232_v32 = vpop.permute.xlu2 %1231 }
 0x375   :  { %1120 = vst.msk [vmem:[#allocation2 + $0x48] sm:$0xff] %vm1078_vm2, %v1098_v33  ;;  %v1162_v38 = vpop.permute.xlu1 %1161 }
 0x376   :  { %1251 = vst.msk [vmem:[#allocation2 + $0x160] sm:$0xff] %vm1078_vm2, %v1232_v32 }
 0x377   :  { %1184 = vst.msk [vmem:[#allocation2 + $0xc8] sm:$0xff] %vm1078_vm2, %v1162_v38 }
 0x37c   :  { %v1100_v63 = vpop.permute.xlu0 %1099  ;;  %v1136_v54 = vpop.permute.xlu2 %1135 }
 0x37d   :  { %1121 = vst.msk [vmem:[#allocation2 + $0x50] sm:$0xff] %vm1078_vm2, %v1100_v63  ;;  %v1164_v58 = vpop.permute.xlu1 %1163  ;;  %v1331_v38 = vld [vmem:[#allocation2 + $0x160] sm:$0xff] }
 0x37e   :  { %1155 = vst.msk [vmem:[#allocation2 + $0xa0] sm:$0xff] %vm1078_vm2, %v1136_v54 }
 0x37f   :  { %1185 = vst.msk [vmem:[#allocation2 + $0xd0] sm:$0xff] %vm1078_vm2, %v1164_v58 }
 0x384   :  { %v1102_v57 = vpop.permute.xlu0 %1101  ;;  %v1200_v62 = vpop.permute.xlu2 %1199 }
 0x385   :  { %1122 = vst.msk [vmem:[#allocation2 + $0x58] sm:$0xff] %vm1078_vm2, %v1102_v57  ;;  %v1166_v56 = vpop.permute.xlu1 %1165 }
 0x386   :  { %1219 = vst.msk [vmem:[#allocation2 + $0x120] sm:$0xff] %vm1078_vm2, %v1200_v62 }
 0x387   :  { %1186 = vst.msk [vmem:[#allocation2 + $0xd8] sm:$0xff] %vm1078_vm2, %v1166_v56 }
 0x38c   :  { %v1104_v48 = vpop.permute.xlu0 %1103  ;;  %v1170_v35 = vpop.permute.xlu2 %1169 }
 0x38d   :  { %1123 = vst.msk [vmem:[#allocation2 + $0x60] sm:$0xff] %vm1078_vm2, %v1104_v48  ;;  %v1134_v49 = vpop.permute.xlu1 %1133  ;;  %v1330_v48 = vld [vmem:[#allocation2 + $0x158] sm:$0xff] }
 0x38e   :  { %1188 = vst.msk [vmem:[#allocation2 + $0xe8] sm:$0xff] %vm1078_vm2, %v1170_v35 }
 0x38f   :  { %1154 = vst.msk [vmem:[#allocation2 + $0x98] sm:$0xff] %vm1078_vm2, %v1134_v49 }
 0x394   :  { %v1106_v51 = vpop.permute.xlu0 %1105  ;;  %v1234_v47 = vpop.permute.xlu2 %1233 }
 0x395   :  { %1124 = vst.msk [vmem:[#allocation2 + $0x68] sm:$0xff] %vm1078_vm2, %v1106_v51  ;;  %v1168_v52 = vpop.permute.xlu1 %1167 }
 0x396   :  { %1252 = vst.msk [vmem:[#allocation2 + $0x168] sm:$0xff] %vm1078_vm2, %v1234_v47  ;;  %v1329_v47 = vld [vmem:[#allocation2 + $0x150] sm:$0xff] }
 0x397   :  { %1187 = vst.msk [vmem:[#allocation2 + $0xe0] sm:$0xff] %vm1078_vm2, %v1168_v52  ;;  %v1316_v52 = vld [vmem:[#allocation2 + $0xe8] sm:$0xff] }
 0x39c   :  { %v1138_v34 = vpop.permute.xlu0 %1137  ;;  %v1236_v41 = vpop.permute.xlu2 %1235 }
 0x39d   :  { %1156 = vst.msk [vmem:[#allocation2 + $0xa8] sm:$0xff] %vm1078_vm2, %v1138_v34  ;;  %v1140_v43 = vpop.permute.xlu1 %1139  ;;  %v1332_v32 = vld [vmem:[#allocation2 + $0x168] sm:$0xff] }
 0x39e   :  { %1253 = vst.msk [vmem:[#allocation2 + $0x170] sm:$0xff] %vm1078_vm2, %v1236_v41  ;;  %v1300_v41 = vld [vmem:[#allocation2 + $0x68] sm:$0xff] }
 0x39f   :  { %1157 = vst.msk [vmem:[#allocation2 + $0xb0] sm:$0xff] %vm1078_vm2, %v1140_v43  ;;  %v1328_v43 = vld [vmem:[#allocation2 + $0x148] sm:$0xff] }
 0x3a4   :  { %v1202_v55 = vpop.permute.xlu0 %1201  ;;  %v1268_v36 = vpop.permute.xlu2 %1267 }
 0x3a5   :  { %1220 = vst.msk [vmem:[#allocation2 + $0x128] sm:$0xff] %vm1078_vm2, %v1202_v55  ;;  %v1204_v59 = vpop.permute.xlu1 %1203  ;;  %v1333_v33 = vld [vmem:[#allocation2 + $0x170] sm:$0xff]  ;;  %v1315_v55 = vld [vmem:[#allocation2 + $0xe0] sm:$0xff] }
 0x3a6   :  { %1285 = vst.msk [vmem:[#allocation2 + $0x1b0] sm:$0xff] %vm1078_vm2, %v1268_v36  ;;  %v1299_v36 = vld [vmem:[#allocation2 + $0x60] sm:$0xff] }
 0x3a7   :  { %1221 = vst.msk [vmem:[#allocation2 + $0x130] sm:$0xff] %vm1078_vm2, %v1204_v59  ;;  %v1327_v59 = vld [vmem:[#allocation2 + $0x140] sm:$0xff] }
 0x3ac   :  { %v1172_v50 = vpop.permute.xlu0 %1171  ;;  %v1266_v37 = vpop.permute.xlu2 %1265 }
 0x3ad   :  { %1189 = vst.msk [vmem:[#allocation2 + $0xf0] sm:$0xff] %vm1078_vm2, %v1172_v50  ;;  %v1198_v40 = vpop.permute.xlu1 %1197  ;;  %v1341_v49 = vld [vmem:[#allocation2 + $0x1b0] sm:$0xff] }
 0x3ae   :  { %1284 = vst.msk [vmem:[#allocation2 + $0x1a8] sm:$0xff] %vm1078_vm2, %v1266_v37 }
 0x3af   :  { %1218 = vst.msk [vmem:[#allocation2 + $0x118] sm:$0xff] %vm1078_vm2, %v1198_v40 }
 0x3b4   :  { %v1108_v46 = vpop.permute.xlu0 %1107  ;;  %v1206_v44 = vpop.permute.xlu2 %1205  ;;  %v1317_v35 = vld [vmem:[#allocation2 + $0xf0] sm:$0xff] }
 0x3b5   :  { %1125 = vst.msk [vmem:[#allocation2 + $0x70] sm:$0xff] %vm1078_vm2, %v1108_v46  ;;  %v1238_v61 = vpop.permute.xlu1 %1237  ;;  %v1340_v34 = vld [vmem:[#allocation2 + $0x1a8] sm:$0xff]  ;;  %v1314_v46 = vld [vmem:[#allocation2 + $0xd8] sm:$0xff] }
 0x3b6   :  { %1222 = vst.msk [vmem:[#allocation2 + $0x138] sm:$0xff] %vm1078_vm2, %v1206_v44  ;;  %v1298_v44 = vld [vmem:[#allocation2 + $0x58] sm:$0xff] }
 0x3b7   :  { %1254 = vst.msk [vmem:[#allocation2 + $0x178] sm:$0xff] %vm1078_vm2, %v1238_v61 }
 0x3bc   :  { %v1174_v39 = vpop.permute.xlu0 %1173  ;;  %v1270_v42 = vpop.permute.xlu2 %1269  ;;  %v1301_v51 = vld [vmem:[#allocation2 + $0x70] sm:$0xff] }
 0x3bd   :  { %1190 = vst.msk [vmem:[#allocation2 + $0xf8] sm:$0xff] %vm1078_vm2, %v1174_v39  ;;  %v1110_v60 = vpop.permute.xlu1 %1109  ;;  %v1326_v61 = vld [vmem:[#allocation2 + $0x138] sm:$0xff]  ;;  %v1313_v39 = vld [vmem:[#allocation2 + $0xd0] sm:$0xff] }
 0x3be   :  { %1286 = vst.msk [vmem:[#allocation2 + $0x1b8] sm:$0xff] %vm1078_vm2, %v1270_v42  ;;  %v1334_v53 = vld [vmem:[#allocation2 + $0x178] sm:$0xff]  ;;  %v1297_v42 = vld [vmem:[#allocation2 + $0x50] sm:$0xff] }
 0x3bf   :  { %1126 = vst.msk [vmem:[#allocation2 + $0x78] sm:$0xff] %vm1078_vm2, %v1110_v60  ;;  %1497 = vmatpush.msrb.mxu3 %v1334_v53  ;;  %v1325_v60 = vld [vmem:[#allocation2 + $0x130] sm:$0xff]  ;;  %v1312_v53 = vld [vmem:[#allocation2 + $0xc8] sm:$0xff] }
 0x3c1   :  { %1498 = vmatpush.msrb.mxu3 %v1333_v33  ;;  %v1296_v33 = vld [vmem:[#allocation2 + $0x48] sm:$0xff] }
 0x3c3   :  { %1499 = vmatpush.msrb.mxu3 %v1332_v32  ;;  %v1324_v32 = vld [vmem:[#allocation2 + $0x128] sm:$0xff] }
 0x3c4   :  { %v1132_v63 = vpop.permute.xlu0 %1131  ;;  %v1262_v54 = vpop.permute.xlu2 %1261  ;;  %v1318_v58 = vld [vmem:[#allocation2 + $0xf8] sm:$0xff] }
 0x3c5   :  { %1500 = vmatpush.msrb.mxu3 %v1331_v38  ;;  %1153 = vst.msk [vmem:[#allocation2 + $0x90] sm:$0xff] %vm1078_vm2, %v1132_v63  ;;  %v1196_v57 = vpop.permute.xlu1 %1195  ;;  %1456 = vmatpush.msra.mxu2 %v1318_v58  ;;  %v1342_v62 = vld [vmem:[#allocation2 + $0x1b8] sm:$0xff]  ;;  %v1311_v38 = vld [vmem:[#allocation2 + $0xc0] sm:$0xff] }
 0x3c6   :  { %1282 = vst.msk [vmem:[#allocation2 + $0x198] sm:$0xff] %vm1078_vm2, %v1262_v54  ;;  %v1302_v56 = vld [vmem:[#allocation2 + $0x78] sm:$0xff]  ;;  %1546 = vmatpush.msrb.mxu0 %v1342_v62  ;;  %v1295_v63 = vld [vmem:[#allocation2 + $0x40] sm:$0xff] }
 0x3c7   :  { %1217 = vst.msk [vmem:[#allocation2 + $0x110] sm:$0xff] %vm1078_vm2, %v1196_v57  ;;  %1415 = vmatpush.msra.mxu1 %v1302_v56  ;;  %1501 = vmatpush.msrb.mxu3 %v1330_v48  ;;  %v1323_v54 = vld [vmem:[#allocation2 + $0x120] sm:$0xff]  ;;  %v1294_v62 = vld [vmem:[#allocation2 + $0x38] sm:$0xff] }
 0x3c8   :  { %1457 = vmatpush.msra.mxu2 %v1317_v35  ;;  %1547 = vmatpush.msrb.mxu0 %v1341_v49  ;;  %v1322_v48 = vld [vmem:[#allocation2 + $0x118] sm:$0xff]  ;;  %v1293_v35 = vld [vmem:[#allocation2 + $0x30] sm:$0xff] }
 0x3c9   :  { %1416 = vmatpush.msra.mxu1 %v1301_v51  ;;  %1502 = vmatpush.msrb.mxu3 %v1329_v47  ;;  %v1309_v49 = vld [vmem:[#allocation2 + $0xb0] sm:$0xff]  ;;  %v1292_v47 = vld [vmem:[#allocation2 + $0x28] sm:$0xff] }
 0x3ca   :  { %1458 = vmatpush.msra.mxu2 %v1316_v52  ;;  %1548 = vmatpush.msrb.mxu0 %v1340_v34  ;;  %v1308_v52 = vld [vmem:[#allocation2 + $0xa8] sm:$0xff]  ;;  %v1343_v34 = vld [vmem:[%s3755_s6] sm:$0xff] }
 0x3cb   :  { %1417 = vmatpush.msra.mxu1 %v1300_v41  ;;  %1503 = vmatpush.msrb.mxu3 %v1328_v43  ;;  %v1291_v41 = vld [vmem:[#allocation2 + $0x20] sm:$0xff] }
 0x3cc   :  { %1459 = vmatpush.msra.mxu2 %v1315_v55  ;;  %v1130_v50 = vpop.permute.xlu0 %1129  ;;  %v1256_v37 = vpop.permute.xlu2 %1255  ;;  %v1307_v43 = vld [vmem:[#allocation2 + $0xa0] sm:$0xff]  ;;  %1353 = vperm.xlu0 %2449, %v1343_v34  }
 0x3cd   :  { %1418 = vmatpush.msra.mxu1 %v1299_v36  ;;  %1504 = vmatpush.msrb.mxu3 %v1327_v59  ;;  %1152 = vst.msk [vmem:[#allocation2 + $0x88] sm:$0xff] %vm1078_vm2, %v1130_v50  ;;  %v1142_v40 = vpop.permute.xlu1 %1141  ;;  %v1290_v50 = vld [vmem:[#allocation2 + $0x18] sm:$0xff] }
 0x3ce   :  { %1279 = vst.msk [vmem:[#allocation2 + $0x180] sm:$0xff] %vm1078_vm2, %v1256_v37  ;;  %1460 = vmatpush.msra.mxu2 %v1314_v46  ;;  %v1321_v51 = vld [vmem:[#allocation2 + $0x110] sm:$0xff]  ;;  %v1306_v37 = vld [vmem:[#allocation2 + $0x98] sm:$0xff] }
 0x3cf   :  { %1158 = vst.msk [vmem:[#allocation2 + $0xb8] sm:$0xff] %vm1078_vm2, %v1142_v40  ;;  %1419 = vmatpush.msra.mxu1 %v1298_v44  ;;  %1505 = vmatpush.msrb.mxu3 %v1326_v61  ;;  %v1289_v40 = vld [vmem:[#allocation2 + $0x10] sm:$0xff]  ;;  %v1288_v44 = vld [vmem:[#allocation2 + $0x8] sm:$0xff] }
 0x3d0   :  { %1461 = vmatpush.msra.mxu2 %v1313_v39  ;;  %v1305_v46 = vld [vmem:[#allocation2 + $0x90] sm:$0xff]  ;;  %v1344_v39 = vld [vmem:[%s3755_s6 + $0x8] sm:$0xff] }
 0x3d1   :  { %1420 = vmatpush.msra.mxu1 %v1297_v42  ;;  %1506 = vmatpush.msrb.mxu3 %v1325_v60  ;;  %v1287_v42 = vld [vmem:[#allocation2] sm:$0xff] }
 0x3d2   :  { %1462 = vmatpush.msra.mxu2 %v1312_v53  ;;  %1358 = vperm.xlu1 %2450, %v1344_v39  }
 0x3d3   :  { %1421 = vmatpush.msra.mxu1 %v1296_v33  ;;  %1507 = vmatpush.msrb.mxu3 %v1324_v32 }
 0x3d4   :  { %1463 = vmatpush.msra.mxu2 %v1311_v38  ;;  %v1128_v58 = vpop.permute.xlu0 %1127  ;;  %v1304_v61 = vld [vmem:[#allocation2 + $0x88] sm:$0xff] }
 0x3d5   :  { %1422 = vmatpush.msra.mxu1 %v1295_v63  ;;  %1508 = vmatpush.msrb.mxu3 %v1323_v54  ;;  %1151 = vst.msk [vmem:[#allocation2 + $0x80] sm:$0xff] %vm1078_vm2, %v1128_v58  ;;  %v1194_v57 = vpop.permute.xlu1 %1193  ;;  %v1338_v63 = vld [vmem:[#allocation2 + $0x198] sm:$0xff] }
 0x3d6   :  { %1216 = vst.msk [vmem:[#allocation2 + $0x108] sm:$0xff] %vm1078_vm2, %v1194_v57  ;;  %v1310_v56 = vld [vmem:[#allocation2 + $0xb8] sm:$0xff]  ;;  %v1335_v57 = vld [vmem:[#allocation2 + $0x180] sm:$0xff] }
 0x3d7   :  { %1423 = vmatpush.msra.mxu1 %v1294_v62  ;;  %1464 = vmatpush.msra.mxu2 %v1310_v56 }
 0x3d8   :  { %1509 = vmatpush.msrb.mxu3 %v1322_v48 }
 0x3d9   :  { %1424 = vmatpush.msra.mxu1 %v1293_v35  ;;  %1465 = vmatpush.msra.mxu2 %v1309_v49 }
 0x3da   :  { %1510 = vmatpush.msrb.mxu3 %v1321_v51 }
 0x3db   :  { %1425 = vmatpush.msra.mxu1 %v1292_v47  ;;  %1466 = vmatpush.msra.mxu2 %v1308_v52 }
 0x3dc   :  { %v1192_v55 = vpop.permute.xlu0 %1191  ;;  %v1303_v60 = vld [vmem:[#allocation2 + $0x80] sm:$0xff] }
 0x3dd   :  { %1426 = vmatpush.msra.mxu1 %v1291_v41  ;;  %1467 = vmatpush.msra.mxu2 %v1307_v43  ;;  %1215 = vst.msk [vmem:[#allocation2 + $0x100] sm:$0xff] %vm1078_vm2, %v1192_v55  ;;  %v1264_v36 = vpop.permute.xlu1 %1263  ;;  %v1320_v59 = vld [vmem:[#allocation2 + $0x108] sm:$0xff] }
 0x3de   :  { %1283 = vst.msk [vmem:[#allocation2 + $0x1a0] sm:$0xff] %vm1078_vm2, %v1264_v36  ;;  %1511 = vmatpush.msrb.mxu3 %v1320_v59 }
 0x3df   :  { %1427 = vmatpush.msra.mxu1 %v1290_v50  ;;  %1468 = vmatpush.msra.mxu2 %v1306_v37 }
 0x3e1   :  { %1428 = vmatpush.msra.mxu1 %v1289_v40  ;;  %1469 = vmatpush.msra.mxu2 %v1305_v46 }
 0x3e3   :  { %1429 = vmatpush.msra.mxu1 %v1288_v44  ;;  %1470 = vmatpush.msra.mxu2 %v1304_v61 }
 0x3e4   :  { %v1260_v53 = vpop.permute.xlu0 %1259  ;;  %v1319_v33 = vld [vmem:[#allocation2 + $0x100] sm:$0xff] }
 0x3e5   :  { %1430 = vmatpush.msra.mxu1 %v1287_v42  ;;  %1471 = vmatpush.msra.mxu2 %v1303_v60  ;;  %1281 = vst.msk [vmem:[#allocation2 + $0x190] sm:$0xff] %vm1078_vm2, %v1260_v53  ;;  %v1258_v32 = vpop.permute.xlu1 %1257  ;;  %v1339_v38 = vld [vmem:[#allocation2 + $0x1a0] sm:$0xff] }
 0x3e6   :  { %1280 = vst.msk [vmem:[#allocation2 + $0x188] sm:$0xff] %vm1078_vm2, %v1258_v32  ;;  %1512 = vmatpush.msrb.mxu3 %v1319_v33  ;;  %1549 = vmatpush.msrb.mxu0 %v1339_v38 }
 0x3e7   :  { %1472 = vmatmul.f32.vlgmr.msra.gmra.mxu2 %v2586_v1  ;;  %1513 = vmatmul.f32.vlgmr.msrb.gmra.mxu3 %v2591_v2  ;;  %v1346_v1 = vld [vmem:[%s3755_s6 + $0x18] sm:$0xff]  ;;  %v1345_v2 = vld [vmem:[%s3755_s6 + $0x10] sm:$0xff] }
 0x3e8   :  { %1550 = vmatpush.msrb.mxu0 %v1338_v63  ;;  %1431 = vmatmul.f32.vlgmr.msra.gmra.mxu1 %v2581_v0  ;;  %v1348_v0 = vld [vmem:[%s3755_s6 + $0x28] sm:$0xff] }
 0x3e9   :  { %1368 = vperm.xlu1 %2450, %v1346_v1   ;;  %1378 = vperm.xlu0 %2449, %v1348_v0  }
 0x3ea   :  { %1363 = vperm.xlu2 %2451, %v1345_v2  }
 0x3ec   :  { %v1337_v54 = vld [vmem:[#allocation2 + $0x190] sm:$0xff] }
 0x3ed   :  { %1551 = vmatpush.msrb.mxu0 %v1337_v54  ;;  %v1336_v58 = vld [vmem:[#allocation2 + $0x188] sm:$0xff] }
 0x3ef   :  { %1552 = vmatpush.msrb.mxu0 %v1336_v58  ;;  %1475 = vmatmul.f32.gmra.mxu2 %v2606_v5  ;;  %v1350_v5 = vld [vmem:[%s3755_s6 + $0x38] sm:$0xff] }
 0x3f0   :  { %1516 = vmatmul.f32.gmra.mxu3 %v2611_v6  ;;  %1434 = vmatmul.f32.gmra.mxu1 %v2601_v4  ;;  %v1347_v4 = vld [vmem:[%s3755_s6 + $0x20] sm:$0xff] }
 0x3f1   :  { %1553 = vmatpush.msrb.mxu0 %v1335_v57 }
 0x3f2   :  { %2364 = vmatmul.msk.f32.vlgmr.msrb.gmra.mxu0 %vm668_vm1, %v2596_v3  ;;  %v1349_v3 = vld [vmem:[%s3755_s6 + $0x30] sm:$0xff]  ;;  %1373 = vperm.xlu2 %2451, %v1347_v4  }
 0x3f3   :  { %1383 = vperm.xlu1 %2450, %v1349_v3  }
 0x3f7   :  { %1478 = vmatmul.f32.gmra.mxu2 %v2626_v9 }
 0x3f8   :  { %1519 = vmatmul.f32.gmra.mxu3 %v2631_v10  ;;  %1437 = vmatmul.f32.gmra.mxu1 %v2621_v8 }
 0x3fa   :  { %2365 = vmatmul.msk.f32.gmra.mxu0 %vm668_vm1, %v2616_v7  ;;  %1388 = vperm.xlu2 %2451, %v1350_v5  }
 0x3ff   :  { %1481 = vmatmul.f32.gmra.mxu2 %v2646_v13 }
 0x400   :  { %1522 = vmatmul.f32.gmra.mxu3 %v2651_v14  ;;  %1440 = vmatmul.f32.gmra.mxu1 %v2641_v12 }
 0x402   :  { %2366 = vmatmul.msk.f32.gmra.mxu0 %vm668_vm1, %v2636_v11 }
 0x407   :  { %1484 = vmatmul.f32.gmra.mxu2 %v2666_v17 }
 0x408   :  { %1525 = vmatmul.f32.gmra.mxu3 %v2671_v18  ;;  %1443 = vmatmul.f32.gmra.mxu1 %v2661_v16 }
 0x40a   :  { %2367 = vmatmul.msk.f32.gmra.mxu0 %vm668_vm1, %v2656_v15 }
 0x40f   :  { %1487 = vmatmul.f32.gmra.mxu2 %v2686_v21 }
 0x410   :  { %1528 = vmatmul.f32.gmra.mxu3 %v2691_v22  ;;  %1446 = vmatmul.f32.gmra.mxu1 %v2681_v20 }
 0x412   :  { %2368 = vmatmul.msk.f32.gmra.mxu0 %vm668_vm1, %v2676_v19 }
 0x417   :  { %1490 = vmatmul.f32.gmra.mxu2 %v2706_v25 }
 0x418   :  { %1531 = vmatmul.f32.gmra.mxu3 %v2711_v26  ;;  %1449 = vmatmul.f32.gmra.mxu1 %v2701_v24 }
 0x41a   :  { %2369 = vmatmul.msk.f32.gmra.mxu0 %vm668_vm1, %v2696_v23 }
 0x41f   :  { %1493 = vmatmul.f32.gmra.mxu2 %v2726_v29 }
 0x420   :  { %1534 = vmatmul.f32.gmra.mxu3 %v2731_v30  ;;  %1452 = vmatmul.f32.gmra.mxu1 %v2721_v28 }
 0x422   :  { %2370 = vmatmul.msk.f32.gmra.mxu0 %vm668_vm1, %v2716_v27 }
 0x42a   :  { %2371 = vmatmul.msk.f32.gmra.mxu0 %vm668_vm1, %v2736_v31 }
 0x43e   :  { %v1354_v6 = vpop.permute.xlu0 %1353 }
 0x444   :  { %v1359_v12 = vpop.permute.xlu1 %1358  ;;  %v1364_v22 = vpop.permute.xlu2 %1363 }
 0x44c   :  { %v1374_v43 = vpop.permute.xlu2 %1373 }
 0x45b   :  { %v1369_v62 = vpop.permute.xlu1 %1368  ;;  %v1379_v39 = vpop.permute.xlu0 %1378 }
 0x465   :  { %v1432_v7 = vpop.f32.mrf.mxu1  ;;  %v1384_v0 = vpop.permute.xlu1 %1383 }
 0x466   :  { %v1433_v8 = vadd.f32 %v1432_v7, %v1354_v6 }
 0x46a   :  { %v1473_v9 = vpop.f32.mrf.mxu2  ;;  %v1514_v10 = vpop.f32.mrf.mxu3 }
 0x46b   :  { %v1474_v11 = vadd.f32 %v1473_v9, %v1433_v8 }
 0x46d   :  { %v1435_v13 = vpop.f32.mrf.mxu1  ;;  %v1515_v14 = vadd.f32 %v1514_v10, %v1474_v11 }
 0x46e   :  { %v1436_v16 = vadd.f32 %v1435_v13, %v1359_v12  ;;  %v1389_v12 = vpop.permute.xlu2 %1388 }
 0x46f   :  { %v1555_v15 = vpop.f32.mrf.mxu0 }
 0x470   :  { %v3493_v17 = vadd.f32 %v1555_v15, %v1515_v14 }
 0x472   :  { %v1476_v18 = vpop.f32.mrf.mxu2  ;;  %v1579_v19 = vmax.f32 %v3493_v17, 0.0 }
 0x473   :  { %v1517_v20 = vpop.f32.mrf.mxu3  ;;  %v1477_v21 = vadd.f32 %v1476_v18, %v1436_v16 }
 0x475   :  { %v1438_v23 = vpop.f32.mrf.mxu1  ;;  %v1518_v24 = vadd.f32 %v1517_v20, %v1477_v21 }
 0x476   :  { %v1439_v26 = vadd.f32 %v1438_v23, %v1364_v22 }
 0x477   :  { %v1558_v25 = vpop.f32.mrf.mxu0 }
 0x478   :  { %v3496_v27 = vadd.f32 %v1558_v25, %v1518_v24 }
 0x47a   :  { %v1479_v28 = vpop.f32.mrf.mxu2  ;;  %v1580_v29 = vmax.f32 %v3496_v27, 0.0 }
 0x47b   :  { %v1520_v30 = vpop.f32.mrf.mxu3  ;;  %v1480_v31 = vadd.f32 %v1479_v28, %v1439_v26 }
 0x47d   :  { %v1441_v56 = vpop.f32.mrf.mxu1  ;;  %v1521_v48 = vadd.f32 %v1520_v30, %v1480_v31 }
 0x47e   :  { %v1442_v49 = vadd.f32 %v1441_v56, %v1369_v62 }
 0x47f   :  { %v1561_v35 = vpop.f32.mrf.mxu0 }
 0x480   :  { %v3499_v51 = vadd.f32 %v1561_v35, %v1521_v48 }
 0x482   :  { %v1482_v47 = vpop.f32.mrf.mxu2  ;;  %v1581_v52 = vmax.f32 %v3499_v51, 0.0 }
 0x483   :  { %v1523_v34 = vpop.f32.mrf.mxu3  ;;  %v1483_v41 = vadd.f32 %v1482_v47, %v1442_v49 }
 0x485   :  { %v1444_v55 = vpop.f32.mrf.mxu1  ;;  %v1524_v36 = vadd.f32 %v1523_v34, %v1483_v41 }
 0x486   :  { %v1445_v50 = vadd.f32 %v1444_v55, %v1374_v43 }
 0x487   :  { %v1564_v59 = vpop.f32.mrf.mxu0 }
 0x488   :  { %v1565_v37 = vadd.f32 %v1564_v59, %v1524_v36 }
 0x48a   :  { %v1485_v40 = vpop.f32.mrf.mxu2  ;;  %v1582_v46 = vmax.f32 %v1565_v37, 0.0 }
 0x48b   :  { %v1526_v44 = vpop.f32.mrf.mxu3  ;;  %v1486_v61 = vadd.f32 %v1485_v40, %v1445_v50 }
 0x48d   :  { %v1447_v42 = vpop.f32.mrf.mxu1  ;;  %v1527_v60 = vadd.f32 %v1526_v44, %v1486_v61 }
 0x48e   :  { %v1448_v33 = vadd.f32 %v1447_v42, %v1379_v39 }
 0x48f   :  { %v1567_v53 = vpop.f32.mrf.mxu0 }
 0x490   :  { %v1568_v32 = vadd.f32 %v1567_v53, %v1527_v60 }
 0x492   :  { %v1488_v38 = vpop.f32.mrf.mxu2  ;;  %v1583_v63 = vmax.f32 %v1568_v32, 0.0 }
 0x493   :  { %v1529_v54 = vpop.f32.mrf.mxu3  ;;  %v1489_v58 = vadd.f32 %v1488_v38, %v1448_v33 }
 0x495   :  { %v1450_v57 = vpop.f32.mrf.mxu1  ;;  %v1530_v1 = vadd.f32 %v1529_v54, %v1489_v58 }
 0x496   :  { %v1451_v4 = vadd.f32 %v1450_v57, %v1384_v0 }
 0x497   :  { %v1570_v2 = vpop.f32.mrf.mxu0 }
 0x498   :  { %v1571_v3 = vadd.f32 %v1570_v2, %v1530_v1 }
 0x49a   :  { %v1491_v5 = vpop.f32.mrf.mxu2  ;;  %v1584_v6 = vmax.f32 %v1571_v3, 0.0 }
 0x49b   :  { %v1532_v7 = vpop.f32.mrf.mxu3  ;;  %v1492_v8 = vadd.f32 %v1491_v5, %v1451_v4 }
 0x49d   :  { %v1533_v9 = vadd.f32 %v1532_v7, %v1492_v8  ;;  %v1453_v10 = vpop.f32.mrf.mxu1 }
 0x49e   :  { %v1454_v14 = vadd.f32 %v1453_v10, %v1389_v12 }
 0x49f   :  { %v1573_v11 = vpop.f32.mrf.mxu0 }
 0x4a0   :  { %v1574_v13 = vadd.f32 %v1573_v11, %v1533_v9 }
 0x4a2   :  { %v1585_v15 = vmax.f32 %v1574_v13, 0.0  ;;  %v1494_v16 = vpop.f32.mrf.mxu2 }
 0x4a3   :  { %v1495_v18 = vadd.f32 %v1494_v16, %v1454_v14  ;;  %v1535_v20 = vpop.f32.mrf.mxu3 }
 0x4a5   :  { %v1536_v21 = vadd.f32 %v1535_v20, %v1495_v18 }
 0x4a7   :  { %v1576_v22 = vpop.f32.mrf.mxu0 }
 0x4a8   :  { %v1577_v23 = vadd.f32 %v1576_v22, %v1536_v21 }
 0x4aa   :  { %v1586_v24 = vmax.f32 %v1577_v23, 0.0 }
 0x4ab   :  { %2487 = dma.done.wait [#allocation5 + $0x1], 4096 }
 0x4ac   :  { %2488 = vsyncadd [#allocation5 + $0x1], 4294963200  ;;  %2453 = vset.pattern.permute.xlu1 %v3797_v45  ;;  %2454 = vset.pattern.permute.xlu2 %v3797_v45  ;;  %vm1614_vm3 = vcmask 1043456   ;;  %v2381_v25 = vld [vmem:[%s3756_s7 + $0x4] sm:$0xf]  ;;  %vm1745_vm4 = vcmask 15360  }
 0x4ad   :  { %2452 = vset.pattern.permute.xlu0 %v3797_v45  ;;  %v1589_v26 = vld [vmem:[%s3756_s7] sm:$0xf]  ;;  %2382 = vmatpush.msk.msrb.mxu2 %vm1614_vm3, %v2381_v25  ;;  %s2502_s7 = smov 118   ;;  %s2503_s1 = smov 126   ;;  %vm2284_vm5 = vcmask 12288  }
 0x4ae   :  { %2372 = vmatpush.msk.msrb.mxu1 %vm1614_vm3, %v1589_v26  ;;  %2383 = vmatmul.msk.f32.vlgmr.msrb.gmra.mxu2 %vm1078_vm2, %v1579_v19  ;;  %s2504_s10 = smov 122  }
 0x4af   :  { %2373 = vmatmul.msk.f32.vlgmr.msrb.gmra.mxu1 %vm1078_vm2, %v1579_v19 }
 0x4b6   :  { %2384 = vmatmul.msk.f32.gmra.mxu2 %vm1078_vm2, %v1580_v29 }
 0x4b7   :  { %2374 = vmatmul.msk.f32.gmra.mxu1 %vm1078_vm2, %v1580_v29 }
 0x4be   :  { %2385 = vmatmul.msk.f32.gmra.mxu2 %vm1078_vm2, %v1581_v52 }
 0x4bf   :  { %2375 = vmatmul.msk.f32.gmra.mxu1 %vm1078_vm2, %v1581_v52 }
 0x4c6   :  { %2386 = vmatmul.msk.f32.gmra.mxu2 %vm1078_vm2, %v1582_v46 }
 0x4c7   :  { %2376 = vmatmul.msk.f32.gmra.mxu1 %vm1078_vm2, %v1582_v46 }
 0x4ce   :  { %2387 = vmatmul.msk.f32.gmra.mxu2 %vm1078_vm2, %v1583_v63 }
 0x4cf   :  { %2377 = vmatmul.msk.f32.gmra.mxu1 %vm1078_vm2, %v1583_v63 }
 0x4d6   :  { %2388 = vmatmul.msk.f32.gmra.mxu2 %vm1078_vm2, %v1584_v6 }
 0x4d7   :  { %2378 = vmatmul.msk.f32.gmra.mxu1 %vm1078_vm2, %v1584_v6 }
 0x4de   :  { %2389 = vmatmul.msk.f32.gmra.mxu2 %vm1078_vm2, %v1585_v15 }
 0x4df   :  { %2379 = vmatmul.msk.f32.gmra.mxu1 %vm1078_vm2, %v1585_v15 }
 0x4e6   :  { %2390 = vmatmul.msk.f32.gmra.mxu2 %vm1078_vm2, %v1586_v24 }
 0x4e7   :  { %2380 = vmatmul.msk.f32.gmra.mxu1 %vm1078_vm2, %v1586_v24 }
 0x52c   :  { %v1635_v45 = vpop.f32.mrf.mxu1 }
 0x531   :  { %v1681_v17 = vpop.f32.mrf.mxu2 }
 0x532   :  { %v3535_v19 = vmax.f32 %v1635_v45, %v1681_v17 }
 0x534   :  { %v1638_v27 = vpop.f32.mrf.mxu1  ;;  %1746 = vst.msk [vmem:[#allocation2] sm:$0xff] %vm1745_vm4, %v3535_v19  ;;  %1890 = vrot.lane.b32.xlu1 %v3535_v19, %s2502_s7  ;;  %1762 = vrot.lane.b32.xlu0 %v3535_v19, %s2503_s1 }
 0x539   :  { %v1684_v28 = vpop.f32.mrf.mxu2 }
 0x53a   :  { %v3543_v29 = vmax.f32 %v1638_v27, %v1684_v28 }
 0x53c   :  { %v1641_v30 = vpop.f32.mrf.mxu1  ;;  %1747 = vst.msk [vmem:[#allocation2 + $0x8] sm:$0xff] %vm1745_vm4, %v3543_v29  ;;  %1826 = vrot.lane.b32.xlu0 %v3535_v19, %s2504_s10  ;;  %1828 = vrot.lane.b32.xlu1 %v3543_v29, %s2504_s10 }
 0x541   :  { %v1687_v31 = vpop.f32.mrf.mxu2 }
 0x542   :  { %v3551_v62 = vmax.f32 %v1641_v30, %v1687_v31 }
 0x544   :  { %v1644_v56 = vpop.f32.mrf.mxu1  ;;  %1748 = vst.msk [vmem:[#allocation2 + $0x10] sm:$0xff] %vm1745_vm4, %v3551_v62  ;;  %1892 = vrot.lane.b32.xlu1 %v3543_v29, %s2502_s7  ;;  %1764 = vrot.lane.b32.xlu0 %v3543_v29, %s2503_s1 }
 0x545   :  { %1830 = vrot.lane.b32.xlu2 %v3551_v62, %s2504_s10 }
 0x549   :  { %v1690_v48 = vpop.f32.mrf.mxu2 }
 0x54a   :  { %v1708_v35 = vmax.f32 %v1644_v56, %v1690_v48 }
 0x54c   :  { %1749 = vst.msk [vmem:[#allocation2 + $0x18] sm:$0xff] %vm1745_vm4, %v1708_v35  ;;  %1766 = vrot.lane.b32.xlu0 %v3551_v62, %s2503_s1  ;;  %v1647_v49 = vpop.f32.mrf.mxu1 }
 0x54d   :  { %1894 = vrot.lane.b32.xlu2 %v3551_v62, %s2502_s7 }
 0x551   :  { %v1693_v51 = vpop.f32.mrf.mxu2 }
 0x552   :  { %v1709_v47 = vmax.f32 %v1647_v49, %v1693_v51 }
 0x554   :  { %1750 = vst.msk [vmem:[#allocation2 + $0x20] sm:$0xff] %vm1745_vm4, %v1709_v47  ;;  %1832 = vrot.lane.b32.xlu0 %v1708_v35, %s2504_s10  ;;  %1770 = vrot.lane.b32.xlu1 %v1709_v47, %s2503_s1  ;;  %v1650_v52 = vpop.f32.mrf.mxu1 }
 0x555   :  { %1768 = vrot.lane.b32.xlu2 %v1708_v35, %s2503_s1 }
 0x559   :  { %v1696_v34 = vpop.f32.mrf.mxu2 }
 0x55a   :  { %v1710_v41 = vmax.f32 %v1650_v52, %v1696_v34 }
 0x55c   :  { %1896 = vrot.lane.b32.xlu0 %v1708_v35, %s2502_s7  ;;  %1834 = vrot.lane.b32.xlu1 %v1709_v47, %s2504_s10  ;;  %1751 = vst.msk [vmem:[#allocation2 + $0x28] sm:$0xff] %vm1745_vm4, %v1710_v41  ;;  %v1653_v43 = vpop.f32.mrf.mxu1 }
 0x55d   :  { %1928 = vrot.lane.b32.xlu2 %v1708_v35, %s2498_s30 }
 0x561   :  { %v1699_v55 = vpop.f32.mrf.mxu2 }
 0x562   :  { %v1711_v36 = vmax.f32 %v1653_v43, %v1699_v55 }
 0x564   :  { %1802 = vrot.lane.b32.xlu0 %v1709_v47, %s2496_s2  ;;  %1898 = vrot.lane.b32.xlu1 %v1709_v47, %s2502_s7  ;;  %1752 = vst.msk [vmem:[#allocation2 + $0x30] sm:$0xff] %vm1745_vm4, %v1711_v36  ;;  %v1656_v59 = vpop.f32.mrf.mxu1 }
 0x565   :  { %1930 = vrot.lane.b32.xlu2 %v1709_v47, %s2498_s30 }
 0x569   :  { %v1702_v50 = vpop.f32.mrf.mxu2 }
 0x56a   :  { %v1712_v37 = vmax.f32 %v1656_v59, %v1702_v50 }
 0x56c   :  { %1804 = vrot.lane.b32.xlu0 %v1710_v41, %s2496_s2  ;;  %1772 = vrot.lane.b32.xlu1 %v1710_v41, %s2503_s1  ;;  %1753 = vst.msk [vmem:[#allocation2 + $0x38] sm:$0xff] %vm1745_vm4, %v1712_v37 }
 0x56d   :  { %1900 = vrot.lane.b32.xlu2 %v1710_v41, %s2502_s7 }
 0x574   :  { %1836 = vrot.lane.b32.xlu1 %v1710_v41, %s2504_s10  ;;  %1774 = vrot.lane.b32.xlu0 %v1711_v36, %s2503_s1 }
 0x575   :  { %1932 = vrot.lane.b32.xlu2 %v1710_v41, %s2498_s30 }
 0x57c   :  { %1868 = vrot.lane.b32.xlu1 %v1710_v41, %s2499_s8  ;;  %1806 = vrot.lane.b32.xlu0 %v1711_v36, %s2496_s2 }
 0x57d   :  { %1902 = vrot.lane.b32.xlu2 %v1711_v36, %s2502_s7 }
 0x584   :  { %1838 = vrot.lane.b32.xlu1 %v1711_v36, %s2504_s10  ;;  %1776 = vrot.lane.b32.xlu0 %v1712_v37, %s2503_s1 }
 0x585   :  { %1934 = vrot.lane.b32.xlu2 %v1711_v36, %s2498_s30 }
 0x58c   :  { %1870 = vrot.lane.b32.xlu1 %v1711_v36, %s2499_s8  ;;  %1800 = vrot.lane.b32.xlu0 %v1708_v35, %s2496_s2 }
 0x58d   :  { %1926 = vrot.lane.b32.xlu2 %v3551_v62, %s2498_s30 }
 0x594   :  { %1866 = vrot.lane.b32.xlu1 %v1709_v47, %s2499_s8  ;;  %1798 = vrot.lane.b32.xlu0 %v3551_v62, %s2496_s2 }
 0x595   :  { %1840 = vrot.lane.b32.xlu2 %v1712_v37, %s2504_s10 }
 0x59c   :  { %1864 = vrot.lane.b32.xlu1 %v1708_v35, %s2499_s8  ;;  %1808 = vrot.lane.b32.xlu0 %v1712_v37, %s2496_s2 }
 0x59d   :  { %1904 = vrot.lane.b32.xlu2 %v1712_v37, %s2502_s7 }
 0x59f   :  { %v1831_v40 = vpop.permute.xlu2 %1830 }
 0x5a0   :  { %1852 = vst.msk [vmem:[#allocation2 + $0xd0] sm:$0xff] %vm1745_vm4, %v1831_v40 }
 0x5a4   :  { %1872 = vrot.lane.b32.xlu1 %v1712_v37, %s2499_s8  ;;  %1796 = vrot.lane.b32.xlu0 %v3543_v29, %s2496_s2 }
 0x5a5   :  { %1936 = vrot.lane.b32.xlu2 %v1712_v37, %s2498_s30 }
 0x5a6   :  { %v1891_v46 = vpop.permute.xlu1 %1890  ;;  %v1763_v44 = vpop.permute.xlu0 %1762 }
 0x5a7   :  { %1914 = vst.msk [vmem:[#allocation2 + $0x140] sm:$0xff] %vm1745_vm4, %v1891_v46  ;;  %v1895_v61 = vpop.permute.xlu2 %1894  ;;  %v1980_v35 = vld [vmem:[#allocation2 + $0xd0] sm:$0xff] }
 0x5a8   :  { %1786 = vst.msk [vmem:[#allocation2 + $0x40] sm:$0xff] %vm1745_vm4, %v1763_v44 }
 0x5a9   :  { %1916 = vst.msk [vmem:[#allocation2 + $0x150] sm:$0xff] %vm1745_vm4, %v1895_v61 }
 0x5ac   :  { %1862 = vrot.lane.b32.xlu1 %v3551_v62, %s2499_s8  ;;  %1794 = vrot.lane.b32.xlu0 %v3535_v19, %s2496_s2 }
 0x5ad   :  { %1924 = vrot.lane.b32.xlu2 %v3543_v29, %s2498_s30 }
 0x5ae   :  { %v1827_v39 = vpop.permute.xlu0 %1826  ;;  %v1829_v42 = vpop.permute.xlu1 %1828  ;;  %v1994_v40 = vld [vmem:[#allocation2 + $0x140] sm:$0xff] }
 0x5af   :  { %1850 = vst.msk [vmem:[#allocation2 + $0xc0] sm:$0xff] %vm1745_vm4, %v1827_v39  ;;  %v1769_v60 = vpop.permute.xlu2 %1768  ;;  %v1962_v44 = vld [vmem:[#allocation2 + $0x40] sm:$0xff] }
 0x5b0   :  { %1851 = vst.msk [vmem:[#allocation2 + $0xc8] sm:$0xff] %vm1745_vm4, %v1829_v42  ;;  %v1996_v41 = vld [vmem:[#allocation2 + $0x150] sm:$0xff] }
 0x5b1   :  { %1789 = vst.msk [vmem:[#allocation2 + $0x58] sm:$0xff] %vm1745_vm4, %v1769_v60 }
 0x5b4   :  { %1860 = vrot.lane.b32.xlu1 %v3543_v29, %s2499_s8 }
 0x5b5   :  { %1922 = vrot.lane.b32.xlu2 %v3535_v19, %s2498_s30 }
 0x5b6   :  { %v1893_v53 = vpop.permute.xlu1 %1892  ;;  %v1765_v33 = vpop.permute.xlu0 %1764  ;;  %v1978_v36 = vld [vmem:[#allocation2 + $0xc0] sm:$0xff] }
 0x5b7   :  { %1915 = vst.msk [vmem:[#allocation2 + $0x148] sm:$0xff] %vm1745_vm4, %v1893_v53  ;;  %v1929_v32 = vpop.permute.xlu2 %1928  ;;  %v1979_v34 = vld [vmem:[#allocation2 + $0xc8] sm:$0xff]  ;;  %v2016_v53 = vld [vmem:[%s3758_s9 + $0x30] sm:$0xff] }
 0x5b8   :  { %1787 = vst.msk [vmem:[#allocation2 + $0x48] sm:$0xff] %vm1745_vm4, %v1765_v33  ;;  %v1965_v52 = vld [vmem:[#allocation2 + $0x58] sm:$0xff] }
 0x5b9   :  { %1949 = vst.msk [vmem:[#allocation2 + $0x198] sm:$0xff] %vm1745_vm4, %v1929_v32  ;;  %v1961_v33 = vld [vmem:[#allocation2 + $0x38] sm:$0xff] }
 0x5bc   :  { %2050 = vperm.xlu1 %2453, %v2016_v53   ;;  %v3820_v53 = vld [vmem:[#allocation37_spill] sm:$0xff] }
 0x5bd   :  { %1858 = vrot.lane.b32.xlu2 %v3535_v19, %s2499_s8 }
 0x5be   :  { %v1767_v38 = vpop.permute.xlu0 %1766  ;;  %v1995_v59 = vld [vmem:[#allocation2 + $0x148] sm:$0xff] }
 0x5bf   :  { %1788 = vst.msk [vmem:[#allocation2 + $0x50] sm:$0xff] %vm1745_vm4, %v1767_v38  ;;  %v1931_v63 = vpop.permute.xlu2 %1930  ;;  %v1963_v37 = vld [vmem:[#allocation2 + $0x48] sm:$0xff]  ;;  %v1960_v38 = vld [vmem:[#allocation2 + $0x30] sm:$0xff] }
 0x5c0   :  { %1950 = vst.msk [vmem:[#allocation2 + $0x1a0] sm:$0xff] %vm1745_vm4, %v1931_v63  ;;  %v2005_v60 = vld [vmem:[#allocation2 + $0x198] sm:$0xff] }
 0x5c6   :  { %v1833_v54 = vpop.permute.xlu0 %1832  ;;  %v1771_v58 = vpop.permute.xlu1 %1770  ;;  %v1964_v55 = vld [vmem:[#allocation2 + $0x50] sm:$0xff] }
 0x5c7   :  { %1853 = vst.msk [vmem:[#allocation2 + $0xd8] sm:$0xff] %vm1745_vm4, %v1833_v54  ;;  %v1901_v57 = vpop.permute.xlu2 %1900  ;;  %v2006_v46 = vld [vmem:[#allocation2 + $0x1a0] sm:$0xff]  ;;  %v1959_v54 = vld [vmem:[#allocation2 + $0x28] sm:$0xff] }
 0x5c8   :  { %1790 = vst.msk [vmem:[#allocation2 + $0x60] sm:$0xff] %vm1745_vm4, %v1771_v58  ;;  %v2014_v58 = vld [vmem:[%s3758_s9 + $0x20] sm:$0xff] }
 0x5c9   :  { %1919 = vst.msk [vmem:[#allocation2 + $0x168] sm:$0xff] %vm1745_vm4, %v1901_v57  ;;  %v1958_v57 = vld [vmem:[#allocation2 + $0x20] sm:$0xff]  ;;  %2040 = vperm.xlu1 %2453, %v2014_v58   ;;  %v3826_v58 = vld [vmem:[#allocation38_spill] sm:$0xff] }
 0x5ce   :  { %v1897_v1 = vpop.permute.xlu0 %1896  ;;  %v1835_v0 = vpop.permute.xlu1 %1834  ;;  %v1981_v30 = vld [vmem:[#allocation2 + $0xd8] sm:$0xff] }
 0x5cf   :  { %1917 = vst.msk [vmem:[#allocation2 + $0x158] sm:$0xff] %vm1745_vm4, %v1897_v1  ;;  %v1933_v2 = vpop.permute.xlu2 %1932  ;;  %v1966_v62 = vld [vmem:[#allocation2 + $0x60] sm:$0xff] }
 0x5d0   :  { %1854 = vst.msk [vmem:[#allocation2 + $0xe0] sm:$0xff] %vm1745_vm4, %v1835_v0  ;;  %v1999_v28 = vld [vmem:[#allocation2 + $0x168] sm:$0xff] }
 0x5d1   :  { %1951 = vst.msk [vmem:[#allocation2 + $0x1a8] sm:$0xff] %vm1745_vm4, %v1933_v2 }
 0x5d6   :  { %v1803_v3 = vpop.permute.xlu0 %1802  ;;  %v1899_v4 = vpop.permute.xlu1 %1898  ;;  %v1997_v51 = vld [vmem:[#allocation2 + $0x158] sm:$0xff] }
 0x5d7   :  { %1822 = vst.msk [vmem:[#allocation2 + $0xa0] sm:$0xff] %vm1745_vm4, %v1803_v3  ;;  %v1903_v5 = vpop.permute.xlu2 %1902  ;;  %v1982_v27 = vld [vmem:[#allocation2 + $0xe0] sm:$0xff] }
 0x5d8   :  { %1918 = vst.msk [vmem:[#allocation2 + $0x160] sm:$0xff] %vm1745_vm4, %v1899_v4  ;;  %v2007_v50 = vld [vmem:[#allocation2 + $0x1a8] sm:$0xff]  ;;  %v1957_v4 = vld [vmem:[#allocation2 + $0x18] sm:$0xff] }
 0x5d9   :  { %1920 = vst.msk [vmem:[#allocation2 + $0x170] sm:$0xff] %vm1745_vm4, %v1903_v5 }
 0x5de   :  { %v1805_v6 = vpop.permute.xlu0 %1804  ;;  %v1773_v7 = vpop.permute.xlu1 %1772 }
 0x5df   :  { %1823 = vst.msk [vmem:[#allocation2 + $0xa8] sm:$0xff] %vm1745_vm4, %v1805_v6  ;;  %v1935_v8 = vpop.permute.xlu2 %1934  ;;  %v1998_v31 = vld [vmem:[#allocation2 + $0x160] sm:$0xff]  ;;  %v1956_v6 = vld [vmem:[#allocation2 + $0x10] sm:$0xff] }
 0x5e0   :  { %1791 = vst.msk [vmem:[#allocation2 + $0x68] sm:$0xff] %vm1745_vm4, %v1773_v7  ;;  %v2000_v17 = vld [vmem:[#allocation2 + $0x170] sm:$0xff] }
 0x5e1   :  { %1952 = vst.msk [vmem:[#allocation2 + $0x1b0] sm:$0xff] %vm1745_vm4, %v1935_v8  ;;  %v3798_v8 = vld [vmem:[#allocation16_spill] sm:$0xff] }
 0x5e6   :  { %v1837_v9 = vpop.permute.xlu1 %1836  ;;  %v1775_v10 = vpop.permute.xlu0 %1774 }
 0x5e7   :  { %1855 = vst.msk [vmem:[#allocation2 + $0xe8] sm:$0xff] %vm1745_vm4, %v1837_v9  ;;  %v1927_v11 = vpop.permute.xlu2 %1926  ;;  %v1967_v29 = vld [vmem:[#allocation2 + $0x68] sm:$0xff] }
 0x5e8   :  { %1948 = vst.msk [vmem:[#allocation2 + $0x190] sm:$0xff] %vm1745_vm4, %v1927_v11  ;;  %v2008_v43 = vld [vmem:[#allocation2 + $0x1b0] sm:$0xff]  ;;  %v2015_v9 = vld [vmem:[%s3758_s9 + $0x28] sm:$0xff] }
 0x5e9   :  { %1792 = vst.msk [vmem:[#allocation2 + $0x70] sm:$0xff] %vm1745_vm4, %v1775_v10  ;;  %v2017_v10 = vld [vmem:[%s3758_s9 + $0x38] sm:$0xff]  ;;  %v1955_v11 = vld [vmem:[#allocation2 + $0x8] sm:$0xff]  ;;  %2045 = vperm.xlu2 %2454, %v2015_v9  }
 0x5ea   :  { %2055 = vperm.xlu0 %2452, %v2017_v10  }
 0x5ee   :  { %v1869_v12 = vpop.permute.xlu1 %1868  ;;  %v1807_v13 = vpop.permute.xlu0 %1806  ;;  %v1983_v45 = vld [vmem:[#allocation2 + $0xe8] sm:$0xff] }
 0x5ef   :  { %1887 = vst.msk [vmem:[#allocation2 + $0x128] sm:$0xff] %vm1745_vm4, %v1869_v12  ;;  %v1841_v14 = vpop.permute.xlu2 %1840  ;;  %v2004_v32 = vld [vmem:[#allocation2 + $0x190] sm:$0xff]  ;;  %v1975_v12 = vld [vmem:[#allocation2 + $0xa8] sm:$0xff] }
 0x5f0   :  { %1824 = vst.msk [vmem:[#allocation2 + $0xb0] sm:$0xff] %vm1745_vm4, %v1807_v13  ;;  %v1968_v19 = vld [vmem:[#allocation2 + $0x70] sm:$0xff]  ;;  %v1954_v13 = vld [vmem:[#allocation2] sm:$0xff] }
 0x5f1   :  { %1857 = vst.msk [vmem:[#allocation2 + $0xf8] sm:$0xff] %vm1745_vm4, %v1841_v14  ;;  %v1974_v14 = vld [vmem:[#allocation2 + $0xa0] sm:$0xff] }
 0x5f6   :  { %v1839_v15 = vpop.permute.xlu1 %1838  ;;  %v1777_v16 = vpop.permute.xlu0 %1776 }
 0x5f7   :  { %1856 = vst.msk [vmem:[#allocation2 + $0xf0] sm:$0xff] %vm1745_vm4, %v1839_v15  ;;  %v1905_v18 = vpop.permute.xlu2 %1904  ;;  %v1976_v7 = vld [vmem:[#allocation2 + $0xb0] sm:$0xff] }
 0x5f8   :  { %1921 = vst.msk [vmem:[#allocation2 + $0x178] sm:$0xff] %vm1745_vm4, %v1905_v18  ;;  %v1985_v20 = vld [vmem:[#allocation2 + $0xf8] sm:$0xff] }
 0x5f9   :  { %1793 = vst.msk [vmem:[#allocation2 + $0x78] sm:$0xff] %vm1745_vm4, %v1777_v16  ;;  %2123 = vmatpush.msra.mxu0 %v1985_v20  ;;  %v2011_v20 = vld [vmem:[%s3758_s9 + $0x8] sm:$0xff] }
 0x5fa   :  { %2025 = vperm.xlu1 %2453, %v2011_v20  }
 0x5fe   :  { %v1871_v21 = vpop.permute.xlu1 %1870  ;;  %v1801_v22 = vpop.permute.xlu0 %1800  ;;  %v1984_v23 = vld [vmem:[#allocation2 + $0xf0] sm:$0xff] }
 0x5ff   :  { %1888 = vst.msk [vmem:[#allocation2 + $0x130] sm:$0xff] %vm1745_vm4, %v1871_v21  ;;  %v1937_v24 = vpop.permute.xlu2 %1936  ;;  %2124 = vmatpush.msra.mxu0 %v1984_v23  ;;  %v2001_v25 = vld [vmem:[#allocation2 + $0x178] sm:$0xff] }
 0x600   :  { %1953 = vst.msk [vmem:[#allocation2 + $0x1b8] sm:$0xff] %vm1745_vm4, %v1937_v24  ;;  %v1969_v26 = vld [vmem:[#allocation2 + $0x78] sm:$0xff]  ;;  %2164 = vmatpush.msra.mxu1 %v2001_v25 }
 0x601   :  { %1821 = vst.msk [vmem:[#allocation2 + $0x98] sm:$0xff] %vm1745_vm4, %v1801_v22  ;;  %2082 = vmatpush.msra.mxu3 %v1969_v26  ;;  %2125 = vmatpush.msra.mxu0 %v1983_v45  ;;  %v3799_v22 = vld [vmem:[#allocation13_spill] sm:$0xff]  ;;  %v3800_v25 = vld [vmem:[#allocation20_spill] sm:$0xff]  ;;  %v2012_v45 = vld [vmem:[%s3758_s9 + $0x10] sm:$0xff] }
 0x602   :  { %2165 = vmatpush.msra.mxu1 %v2000_v17  ;;  %v2013_v26 = vld [vmem:[%s3758_s9 + $0x18] sm:$0xff]  ;;  %v1991_v17 = vld [vmem:[#allocation2 + $0x128] sm:$0xff]  ;;  %2030 = vperm.xlu0 %2452, %v2012_v45  }
 0x603   :  { %2083 = vmatpush.msra.mxu3 %v1968_v19  ;;  %2126 = vmatpush.msra.mxu0 %v1982_v27 }
 0x604   :  { %2166 = vmatpush.msra.mxu1 %v1999_v28  ;;  %2035 = vperm.xlu2 %2454, %v2013_v26  }
 0x605   :  { %2084 = vmatpush.msra.mxu3 %v1967_v29  ;;  %2127 = vmatpush.msra.mxu0 %v1981_v30 }
 0x606   :  { %2167 = vmatpush.msra.mxu1 %v1998_v31  ;;  %v1867_v56 = vpop.permute.xlu1 %1866  ;;  %v1799_v48 = vpop.permute.xlu0 %1798  ;;  %v1992_v23 = vld [vmem:[#allocation2 + $0x130] sm:$0xff] }
 0x607   :  { %2085 = vmatpush.msra.mxu3 %v1966_v62  ;;  %1886 = vst.msk [vmem:[#allocation2 + $0x120] sm:$0xff] %vm1745_vm4, %v1867_v56  ;;  %v1925_v49 = vpop.permute.xlu2 %1924  ;;  %2128 = vmatpush.msra.mxu0 %v1980_v35  ;;  %v2009_v47 = vld [vmem:[#allocation2 + $0x1b8] sm:$0xff]  ;;  %v3801_v62 = vld [vmem:[#allocation17_spill] sm:$0xff]  ;;  %v3802_v56 = vld [vmem:[#allocation14_spill] sm:$0xff] }
 0x608   :  { %1947 = vst.msk [vmem:[#allocation2 + $0x188] sm:$0xff] %vm1745_vm4, %v1925_v49  ;;  %2168 = vmatpush.msra.mxu1 %v1997_v51  ;;  %2213 = vmatpush.msra.mxu2 %v2009_v47  ;;  %v1973_v21 = vld [vmem:[#allocation2 + $0x98] sm:$0xff]  ;;  %v2010_v35 = vld [vmem:[%s3758_s9] sm:$0xff] }
 0x609   :  { %1820 = vst.msk [vmem:[#allocation2 + $0x90] sm:$0xff] %vm1745_vm4, %v1799_v48  ;;  %2086 = vmatpush.msra.mxu3 %v1965_v52  ;;  %2129 = vmatpush.msra.mxu0 %v1979_v34  ;;  %v3803_v48 = vld [vmem:[#allocation24_spill] sm:$0xff]  ;;  %v3804_v47 = vld [vmem:[#allocation21_spill] sm:$0xff]  ;;  %v3805_v52 = vld [vmem:[#allocation15_spill] sm:$0xff] }
 0x60a   :  { %2169 = vmatpush.msra.mxu1 %v1996_v41  ;;  %2214 = vmatpush.msra.mxu2 %v2008_v43  ;;  %v3806_v34 = vld [vmem:[#allocation18_spill] sm:$0xff]  ;;  %v3807_v41 = vld [vmem:[#allocation28_spill] sm:$0xff]  ;;  %v3808_v43 = vld [vmem:[#allocation25_spill] sm:$0xff] }
 0x60b   :  { %2087 = vmatpush.msra.mxu3 %v1964_v55  ;;  %2130 = vmatpush.msra.mxu0 %v1978_v36  ;;  %v3809_v55 = vld [vmem:[#allocation19_spill] sm:$0xff]  ;;  %v3810_v36 = vld [vmem:[#allocation22_spill] sm:$0xff] }
 0x60c   :  { %2170 = vmatpush.msra.mxu1 %v1995_v59  ;;  %2215 = vmatpush.msra.mxu2 %v2007_v50  ;;  %v3811_v59 = vld [vmem:[#allocation32_spill] sm:$0xff]  ;;  %v3812_v50 = vld [vmem:[#allocation29_spill] sm:$0xff] }
 0x60d   :  { %2088 = vmatpush.msra.mxu3 %v1963_v37  ;;  %2020 = vperm.xlu2 %2454, %v2010_v35   ;;  %v3813_v37 = vld [vmem:[#allocation23_spill] sm:$0xff] }
 0x60e   :  { %2171 = vmatpush.msra.mxu1 %v1994_v40  ;;  %2216 = vmatpush.msra.mxu2 %v2006_v46  ;;  %v1865_v61 = vpop.permute.xlu1 %1864  ;;  %v1809_v39 = vpop.permute.xlu0 %1808  ;;  %v1990_v27 = vld [vmem:[#allocation2 + $0x120] sm:$0xff]  ;;  %v3814_v40 = vld [vmem:[#allocation26_spill] sm:$0xff]  ;;  %v3815_v46 = vld [vmem:[#allocation36_spill] sm:$0xff] }
 0x60f   :  { %2089 = vmatpush.msra.mxu3 %v1962_v44  ;;  %1885 = vst.msk [vmem:[#allocation2 + $0x118] sm:$0xff] %vm1745_vm4, %v1865_v61  ;;  %v1923_v42 = vpop.permute.xlu2 %1922  ;;  %v2003_v63 = vld [vmem:[#allocation2 + $0x188] sm:$0xff]  ;;  %v3816_v44 = vld [vmem:[#allocation33_spill] sm:$0xff]  ;;  %v3817_v61 = vld [vmem:[#allocation27_spill] sm:$0xff] }
 0x610   :  { %1946 = vst.msk [vmem:[#allocation2 + $0x180] sm:$0xff] %vm1745_vm4, %v1923_v42  ;;  %2217 = vmatpush.msra.mxu2 %v2005_v60  ;;  %v1972_v24 = vld [vmem:[#allocation2 + $0x90] sm:$0xff]  ;;  %v2255_v42 = vld [vmem:[%s3761_s12] sm:$0x1f]  ;;  %v3819_v60 = vld [vmem:[#allocation40_spill] sm:$0xff] }
 0x611   :  { %1825 = vst.msk [vmem:[#allocation2 + $0xb8] sm:$0xff] %vm1745_vm4, %v1809_v39  ;;  %2090 = vmatpush.msra.mxu3 %v1961_v33  ;;  %v3818_v39 = vld [vmem:[#allocation30_spill] sm:$0xff]  ;;  %2258 = vperm.xlu0 %2452, %v2255_v42   ;;  %v3821_v33 = vld [vmem:[#allocation31_spill] sm:$0xff] }
 0x612   :  { %2218 = vmatpush.msra.mxu2 %v2004_v32  ;;  %v3822_v32 = vld [vmem:[#allocation34_spill] sm:$0xff] }
 0x613   :  { %2091 = vmatpush.msra.mxu3 %v1960_v38  ;;  %v3823_v38 = vld [vmem:[#allocation44_spill] sm:$0xff] }
 0x614   :  { %2219 = vmatpush.msra.mxu2 %v2003_v63  ;;  %v3824_v63 = vld [vmem:[#allocation41_spill] sm:$0xff] }
 0x615   :  { %2092 = vmatpush.msra.mxu3 %v1959_v54  ;;  %v3825_v54 = vld [vmem:[#allocation35_spill] sm:$0xff] }
 0x616   :  { %v1873_v1 = vpop.permute.xlu1 %1872  ;;  %v1797_v0 = vpop.permute.xlu0 %1796  ;;  %v1989_v30 = vld [vmem:[#allocation2 + $0x118] sm:$0xff] }
 0x617   :  { %2093 = vmatpush.msra.mxu3 %v1958_v57  ;;  %1889 = vst.msk [vmem:[#allocation2 + $0x138] sm:$0xff] %vm1745_vm4, %v1873_v1  ;;  %v1859_v2 = vpop.permute.xlu2 %1858  ;;  %v2002_v3 = vld [vmem:[#allocation2 + $0x180] sm:$0xff]  ;;  %v3827_v57 = vld [vmem:[#allocation39_spill] sm:$0xff]  ;;  %v3828_v1 = vld [vmem:[#allocation42_spill] sm:$0xff] }
 0x618   :  { %1882 = vst.msk [vmem:[#allocation2 + $0x100] sm:$0xff] %vm1745_vm4, %v1859_v2  ;;  %v1977_v5 = vld [vmem:[#allocation2 + $0xb8] sm:$0xff]  ;;  %2220 = vmatpush.msra.mxu2 %v2002_v3 }
 0x619   :  { %1819 = vst.msk [vmem:[#allocation2 + $0x88] sm:$0xff] %vm1745_vm4, %v1797_v0  ;;  %2094 = vmatpush.msra.mxu3 %v1957_v4  ;;  %2131 = vmatpush.msra.mxu0 %v1977_v5  ;;  %v3829_v0 = vld [vmem:[#allocation43_spill] sm:$0xff] }
 0x61a   :  { %2391 = vmatmul.msk.f32.vlgmr.msra.gmra.mxu2 %vm668_vm1, %v3798_v8 }
 0x61b   :  { %2095 = vmatpush.msra.mxu3 %v1956_v6  ;;  %2132 = vmatpush.msra.mxu0 %v1976_v7 }
 0x61d   :  { %2096 = vmatpush.msra.mxu3 %v1955_v11  ;;  %2133 = vmatpush.msra.mxu0 %v1975_v12 }
 0x61e   :  { %v1863_v15 = vpop.permute.xlu1 %1862  ;;  %v1795_v16 = vpop.permute.xlu0 %1794  ;;  %v1993_v18 = vld [vmem:[#allocation2 + $0x138] sm:$0xff] }
 0x61f   :  { %2097 = vmatpush.msra.mxu3 %v1954_v13  ;;  %2134 = vmatpush.msra.mxu0 %v1974_v14  ;;  %1884 = vst.msk [vmem:[#allocation2 + $0x110] sm:$0xff] %vm1745_vm4, %v1863_v15  ;;  %v1986_v51 = vld [vmem:[#allocation2 + $0x100] sm:$0xff] }
 0x620   :  { %1818 = vst.msk [vmem:[#allocation2 + $0x80] sm:$0xff] %vm1745_vm4, %v1795_v16  ;;  %2172 = vmatpush.msra.mxu1 %v1993_v18  ;;  %2098 = vmatmul.f32.vlgmr.msra.gmra.mxu3 %v3799_v22  ;;  %v1971_v19 = vld [vmem:[#allocation2 + $0x88] sm:$0xff] }
 0x621   :  { %2135 = vmatpush.msra.mxu0 %v1973_v21 }
 0x622   :  { %2173 = vmatpush.msra.mxu1 %v1992_v23  ;;  %2392 = vmatmul.msk.f32.gmra.mxu2 %vm668_vm1, %v3800_v25 }
 0x623   :  { %2136 = vmatpush.msra.mxu0 %v1972_v24 }
 0x624   :  { %2174 = vmatpush.msra.mxu1 %v1991_v17 }
 0x625   :  { %2137 = vmatpush.msra.mxu0 %v1971_v19 }
 0x626   :  { %2175 = vmatpush.msra.mxu1 %v1990_v27  ;;  %v1861_v28 = vpop.permute.xlu1 %1860  ;;  %v1988_v31 = vld [vmem:[#allocation2 + $0x110] sm:$0xff] }
 0x627   :  { %1883 = vst.msk [vmem:[#allocation2 + $0x108] sm:$0xff] %vm1745_vm4, %v1861_v28  ;;  %v1970_v29 = vld [vmem:[#allocation2 + $0x80] sm:$0xff] }
 0x628   :  { %2138 = vmatpush.msra.mxu0 %v1970_v29  ;;  %2176 = vmatpush.msra.mxu1 %v1989_v30 }
 0x629   :  { %2101 = vmatmul.f32.gmra.mxu3 %v3801_v62  ;;  %2139 = vmatmul.f32.vlgmr.msra.gmra.mxu0 %v3802_v56 }
 0x62a   :  { %2177 = vmatpush.msra.mxu1 %v1988_v31  ;;  %2393 = vmatmul.msk.f32.gmra.mxu2 %vm668_vm1, %v3803_v48 }
 0x62e   :  { %v1987_v49 = vld [vmem:[#allocation2 + $0x108] sm:$0xff]  ;;  %v2051_v30 = vpop.permute.xlu1 %2050 }
 0x62f   :  { %2178 = vmatpush.msra.mxu1 %v1987_v49 }
 0x631   :  { %2179 = vmatpush.msra.mxu1 %v1986_v51  ;;  %2104 = vmatmul.f32.gmra.mxu3 %v3804_v47 }
 0x632   :  { %2180 = vmatmul.f32.vlgmr.msra.gmra.mxu1 %v3805_v52  ;;  %2142 = vmatmul.f32.gmra.mxu0 %v3806_v34 }
 0x633   :  { %2394 = vmatmul.msk.f32.gmra.mxu2 %vm668_vm1, %v3807_v41 }
 0x639   :  { %2107 = vmatmul.f32.gmra.mxu3 %v3808_v43 }
 0x63a   :  { %2183 = vmatmul.f32.gmra.mxu1 %v3809_v55  ;;  %2145 = vmatmul.f32.gmra.mxu0 %v3810_v36 }
 0x63b   :  { %2395 = vmatmul.msk.f32.gmra.mxu2 %vm668_vm1, %v3811_v59  ;;  %v2041_v49 = vpop.permute.xlu1 %2040 }
 0x641   :  { %2110 = vmatmul.f32.gmra.mxu3 %v3812_v50 }
 0x642   :  { %2186 = vmatmul.f32.gmra.mxu1 %v3813_v37  ;;  %2148 = vmatmul.f32.gmra.mxu0 %v3814_v40 }
 0x643   :  { %2396 = vmatmul.msk.f32.gmra.mxu2 %vm668_vm1, %v3815_v46  ;;  %v2046_v2 = vpop.permute.xlu2 %2045 }
 0x649   :  { %2113 = vmatmul.f32.gmra.mxu3 %v3816_v44 }
 0x64a   :  { %2189 = vmatmul.f32.gmra.mxu1 %v3817_v61  ;;  %2151 = vmatmul.f32.gmra.mxu0 %v3818_v39 }
 0x64b   :  { %2397 = vmatmul.msk.f32.gmra.mxu2 %vm668_vm1, %v3819_v60 }
 0x651   :  { %2116 = vmatmul.f32.gmra.mxu3 %v3820_v53 }
 0x652   :  { %2192 = vmatmul.f32.gmra.mxu1 %v3821_v33  ;;  %2154 = vmatmul.f32.gmra.mxu0 %v3822_v32 }
 0x653   :  { %2398 = vmatmul.msk.f32.gmra.mxu2 %vm668_vm1, %v3823_v38 }
 0x659   :  { %2119 = vmatmul.f32.gmra.mxu3 %v3824_v63 }
 0x65a   :  { %2195 = vmatmul.f32.gmra.mxu1 %v3825_v54  ;;  %2157 = vmatmul.f32.gmra.mxu0 %v3826_v58 }
 0x65c   :  { %v2056_v35 = vpop.permute.xlu0 %2055 }
 0x65e   :  { %v2036_v3 = vpop.permute.xlu2 %2035 }
 0x662   :  { %2198 = vmatmul.f32.gmra.mxu1 %v3827_v57  ;;  %2160 = vmatmul.f32.gmra.mxu0 %v3828_v1 }
 0x667   :  { %v2021_v5 = vpop.permute.xlu2 %2020 }
 0x66a   :  { %2201 = vmatmul.f32.gmra.mxu1 %v3829_v0 }
 0x66c   :  { %v2026_v44 = vpop.permute.xlu1 %2025 }
 0x674   :  { %v2031_v50 = vpop.permute.xlu0 %2030 }
 0x69d   :  { %v2222_v4 = vpop.f32.mrf.mxu2 }
 0x6a3   :  { %v2099_v6 = vpop.f32.mrf.mxu3 }
 0x6a4   :  { %v2100_v7 = vadd.f32 %v2099_v6, %v2021_v5 }
 0x6a5   :  { %v3733_v10 = vpop.f32.mrf.mxu2 }
 0x6a6   :  { %v2140_v8 = vpop.f32.mrf.mxu0 }
 0x6a7   :  { %v2141_v9 = vadd.f32 %v2140_v8, %v2100_v7 }
 0x6ac   :  { %v2102_v11 = vpop.f32.mrf.mxu3 }
 0x6ad   :  { %v2228_v18 = vpop.f32.mrf.mxu2  ;;  %v2103_v33 = vadd.f32 %v2102_v11, %v2026_v44 }
 0x6af   :  { %v2181_v12 = vpop.f32.mrf.mxu1  ;;  %v2143_v13 = vpop.f32.mrf.mxu0 }
 0x6b0   :  { %v2182_v14 = vadd.f32 %v2181_v12, %v2141_v9  ;;  %v2144_v0 = vadd.f32 %v2143_v13, %v2103_v33 }
 0x6b2   :  { %v3735_v15 = vadd.f32 %v2222_v4, %v2182_v14 }
 0x6b4   :  { %v2105_v16 = vpop.f32.mrf.mxu3 }
 0x6b5   :  { %v2106_v61 = vadd.f32 %v2105_v16, %v2031_v50 }
 0x6b6   :  { %v2231_v23 = vpop.f32.mrf.mxu2 }
 0x6b7   :  { %v2184_v20 = vpop.f32.mrf.mxu1  ;;  %v2146_v21 = vpop.f32.mrf.mxu0 }
 0x6b8   :  { %v2147_v54 = vadd.f32 %v2146_v21, %v2106_v61  ;;  %v2185_v8 = vadd.f32 %v2184_v20, %v2144_v0  ;;  %v2254_v20 = vld [vmem:[%s3760_s11] sm:$0x1f] }
 0x6ba   :  { %v2226_v16 = vadd.f32 %v3733_v10, %v2185_v8 }
 0x6bc   :  { %v2108_v22 = vpop.f32.mrf.mxu3  ;;  %v2247_v13 = vmax.f32 %v2226_v16, 0.0 }
 0x6bd   :  { %v2109_v37 = vadd.f32 %v2108_v22, %v2036_v3 }
 0x6be   :  { %v2234_v19 = vpop.f32.mrf.mxu2 }
 0x6bf   :  { %v2187_v24 = vpop.f32.mrf.mxu1  ;;  %v2149_v25 = vpop.f32.mrf.mxu0 }
 0x6c0   :  { %v2150_v32 = vadd.f32 %v2149_v25, %v2109_v37  ;;  %v2188_v5 = vadd.f32 %v2187_v24, %v2147_v54  ;;  %v2246_v24 = vmax.f32 %v3735_v15, 0.0 }
 0x6c2   :  { %v2229_v11 = vadd.f32 %v2228_v18, %v2188_v5  ;;  %v2259_v18 = vpop.permute.xlu0 %2258 }
 0x6c4   :  { %v2111_v26 = vpop.f32.mrf.mxu3  ;;  %v2248_v22 = vmax.f32 %v2229_v11, 0.0 }
 0x6c5   :  { %v2112_v36 = vadd.f32 %v2111_v26, %v2041_v49 }
 0x6c6   :  { %v2237_v31 = vpop.f32.mrf.mxu2 }
 0x6c7   :  { %v2190_v45 = vpop.f32.mrf.mxu1  ;;  %v2152_v17 = vpop.f32.mrf.mxu0 }
 0x6c8   :  { %v2153_v39 = vadd.f32 %v2152_v17, %v2112_v36 }
 0x6cc   :  { %v2114_v27 = vpop.f32.mrf.mxu3 }
 0x6cd   :  { %v2115_v41 = vadd.f32 %v2114_v27, %v2046_v2  ;;  %v2191_v2 = vadd.f32 %v2190_v45, %v2150_v32 }
 0x6ce   :  { %v2240_v51 = vpop.f32.mrf.mxu2 }
 0x6cf   :  { %v2193_v28 = vpop.f32.mrf.mxu1  ;;  %v2155_v29 = vpop.f32.mrf.mxu0  ;;  %v2232_v9 = vadd.f32 %v2231_v23, %v2191_v2 }
 0x6d0   :  { %v2156_v40 = vadd.f32 %v2155_v29, %v2115_v41  ;;  %v2194_v58 = vadd.f32 %v2193_v28, %v2153_v39 }
 0x6d1   :  { %v2249_v21 = vmax.f32 %v2232_v9, 0.0 }
 0x6d2   :  { %v2235_v6 = vadd.f32 %v2234_v19, %v2194_v58 }
 0x6d4   :  { %v2117_v62 = vpop.f32.mrf.mxu3  ;;  %v2250_v14 = vmax.f32 %v2235_v6, 0.0 }
 0x6d5   :  { %v2118_v52 = vadd.f32 %v2117_v62, %v2051_v30 }
 0x6d6   :  { %v2243_v53 = vpop.f32.mrf.mxu2 }
 0x6d7   :  { %v2196_v56 = vpop.f32.mrf.mxu1  ;;  %v2158_v48 = vpop.f32.mrf.mxu0 }
 0x6d8   :  { %v2159_v59 = vadd.f32 %v2158_v48, %v2118_v52  ;;  %v2197_v38 = vadd.f32 %v2196_v56, %v2156_v40 }
 0x6da   :  { %v2238_v4 = vadd.f32 %v2237_v31, %v2197_v38 }
 0x6dc   :  { %v2120_v47 = vpop.f32.mrf.mxu3  ;;  %v2251_v12 = vmax.f32 %v2238_v4, 0.0 }
 0x6dd   :  { %v2121_v43 = vadd.f32 %v2120_v47, %v2056_v35 }
 0x6df   :  { %v2199_v34 = vpop.f32.mrf.mxu1  ;;  %v2161_v55 = vpop.f32.mrf.mxu0 }
 0x6e0   :  { %v2162_v46 = vadd.f32 %v2161_v55, %v2121_v43  ;;  %v2200_v42 = vadd.f32 %v2199_v34, %v2159_v59 }
 0x6e2   :  { %v2241_v57 = vadd.f32 %v2240_v51, %v2200_v42 }
 0x6e4   :  { %v2252_v7 = vmax.f32 %v2241_v57, 0.0 }
 0x6e7   :  { %v2202_v60 = vpop.f32.mrf.mxu1 }
 0x6e8   :  { %v2203_v63 = vadd.f32 %v2202_v60, %v2162_v46 }
 0x6ea   :  { %v2244_v1 = vadd.f32 %v2243_v53, %v2203_v63 }
 0x6ec   :  { %v2253_v3 = vmax.f32 %v2244_v1, 0.0 }
 0x6ee   :  { %2272 = vmatpush.msrb.mxu3 %v2253_v3 }
 0x6f0   :  { %2273 = vmatpush.msrb.mxu3 %v2252_v7 }
 0x6f2   :  { %2274 = vmatpush.msrb.mxu3 %v2251_v12 }
 0x6f4   :  { %2275 = vmatpush.msrb.mxu3 %v2250_v14 }
 0x6f6   :  { %2276 = vmatpush.msrb.mxu3 %v2249_v21 }
 0x6f8   :  { %2277 = vmatpush.msrb.mxu3 %v2248_v22 }
 0x6fa   :  { %2278 = vmatpush.msrb.mxu3 %v2247_v13 }
 0x6fc   :  { %2279 = vmatpush.msrb.mxu3 %v2246_v24 }
 0x6fd   :  { %2399 = vmatmul.msk.f32.vlgmr.msrb.gmra.mxu3 %vm668_vm1, %v2254_v20 }
 0x780   :  { %v2281_v23 = vpop.f32.mrf.mxu3 }
 0x781   :  { %v2282_v10 = vadd.f32 %v2281_v23, %v2259_v18 }
 0x783   :  { %v2285_v25 = vsel %vm2284_vm5, %v2282_v10, -inf }
 0x784   :  { %v2286_v26 = vrot.slane %v2285_v25, 4 }
 0x786   :  { %v2287_v45 = vmax.f32 %v2285_v25, %v2286_v26 }
 0x788   :  { %v2288_v17 = vrot.slane %v2287_v45, 2 }
 0x78a   :  { %v2289_v19 = vmax.f32 %v2287_v45, %v2288_v17 }
 0x78c   :  { %v2290_v27 = vrot.slane %v2289_v19, 1 }
 0x78e   :  { %v2291_v15 = vmax.f32 %v2289_v19, %v2290_v27 }
 0x790   :  { %v2292_v28 = vsub.f32 %v2282_v10, %v2291_v15 }
 0x792   :  { %v2293_v29 = vmul.f32 1.442695, %v2292_v28 }
 0x794   :  { %2455 = vpow2.f32 %v2293_v29 }
 0x79a   :  { %v2456_v30 = vpop.eup %2455 }
 0x79b   :  { %v2295_v31 = vsel %vm2284_vm5, %v2456_v30, 0.0 }
 0x79c   :  { %v2296_v62 = vrot.slane %v2295_v31, 4 }
 0x79e   :  { %v2297_v56 = vadd.f32 %v2296_v62, %v2295_v31 }
 0x7a0   :  { %v2298_v48 = vrot.slane %v2297_v56, 2 }
 0x7a2   :  { %v2299_v35 = vadd.f32 %v2298_v48, %v2297_v56 }
 0x7a4   :  { %v2300_v49 = vrot.slane %v2299_v35, 1 }
 0x7a6   :  { %v2301_v51 = vadd.f32 %v2300_v49, %v2299_v35 }
 0x7a8   :  { %2457 = vlog2.f32 %v2301_v51 }
 0x7ae   :  { %v2458_v47 = vpop.eup %2457 }
 0x7af   :  { %v2303_v52 = vmul.f32 0.6931472, %v2458_v47 }
 0x7b1   :  { %v2304_v34 = vsub.f32 %v2292_v28, %v2303_v52 }
 0x7b3   :  { %2305 = vst.msk [vmem:[%s3762_s13] sm:$0x1f] %vm2284_vm5, %v2304_v34 }
 0x7b4   :  { %2310 = vsyncpa [#allocation7], 1 }
 0x7b5   :  { %2311 = vsyncmov [#allocation5] }
 0x7b8   :  { %s2312_s27 = vpop.sfrf %2311 }
 0x7b9   :  { %p2400_p0 = scmp.ne.s32.totalorder %s2312_s27, 0 }
 0x7bb   :  { %2316 = shalt.err (%p2400_p0)  }
 0x7bc   :  { %2318 = vsyncmov [#allocation5 + $0x1] }
 0x7bf   :  { %s2319_s6 = vpop.sfrf %2318 }
 0x7c0   :  { %p2401_p1 = scmp.ne.s32.totalorder %s2319_s6, 0 }
 0x7c2   :  { %2323 = shalt.err (%p2401_p1)  }

</bundles_post_ra>
